<compile_context>
chip_gen: v6e
topology: v6e:2x2x1
jax: 0.10.0
libtpu: 0.0.40
codegen_flags: <defaults>
</compile_context>

<pallas_src>
import functools

import numpy as np
import jax
import jax.numpy as jnp
from jax import lax
from jax.experimental import pallas as pl
from jax.experimental.pallas import tpu as pltpu

NEG_INF = -1e9  # stand-in for float('-inf'); exp(-1e9 - rowmax) underflows to exactly 0 in f32


# ----------------------------------------------------------------------------
# Static helpers (numpy, trace-time only)
# ----------------------------------------------------------------------------
def create_mask_np(window_size, displacement, upper_lower, left_right):
    ws2 = window_size ** 2
    mask = np.zeros((ws2, ws2), dtype=np.float32)
    if upper_lower:
        mask[-displacement * window_size:, :-displacement * window_size] = NEG_INF
        mask[:-displacement * window_size, -displacement * window_size:] = NEG_INF
    if left_right:
        mask = mask.reshape(window_size, window_size, window_size, window_size)
        mask[:, -displacement:, :, :-displacement] = NEG_INF
        mask[:, :-displacement, :, -displacement:] = NEG_INF
        mask = mask.reshape(ws2, ws2)
    return mask


@functools.lru_cache(maxsize=None)
def _bias_constants(H, W, window_size, shifted):
    """Trace-time constants describing the (shifted-)window structure.

    Returns:
      same   (HW,HW) bool   : token i and j share a window (after cyclic shift)
      rel_r  (HW,HW) int    : row index into pos_embedding (valid where `same`)
      rel_c  (HW,HW) int    : col index into pos_embedding (valid where `same`)
      add    (HW,HW) float32: PyTorch upper_lower / left_right shift masks
    """
    ws = window_size
    d = ws // 2 if shifted else 0
    nw_h, nw_w = H // ws, W // ws
    HW = H * W

    win_id = np.zeros((HW,), np.int64)
    win_pos = np.zeros((HW, 2), np.int64)  # (ih, iw) inside the window
    for h in range(H):
        for w in range(W):
            t = h * W + w
            hs, wsh = (h - d) % H, (w - d) % W      # coords after cyclic shift by -d
            wh, ih = hs // ws, hs % ws
            ww, iw = wsh // ws, wsh % ws
            win_id[t] = wh * nw_w + ww
            win_pos[t] = (ih, iw)

    same = win_id[:, None] == win_id[None, :]
    rel_r = win_pos[None, :, 0] - win_pos[:, None, 0] + ws - 1
    rel_c = win_pos[None, :, 1] - win_pos[:, None, 1] + ws - 1
    rel_r = np.where(same, rel_r, 0)
    rel_c = np.where(same, rel_c, 0)

    add = np.zeros((HW, HW), np.float32)
    if shifted:
        ul = create_mask_np(ws, ws // 2, True, False)
        lr = create_mask_np(ws, ws // 2, False, True)
        for ti in range(HW):
            for tj in range(HW):
                if win_id[ti] != win_id[tj]:
                    continue
                wid = int(win_id[ti])
                wh, ww = wid // nw_w, wid % nw_w
                pi = int(win_pos[ti, 0] * ws + win_pos[ti, 1])
                pj = int(win_pos[tj, 0] * ws + win_pos[tj, 1])
                m = 0.0
                if wh == nw_h - 1:   # last window row  -> upper_lower mask
                    m += ul[pi, pj]
                if ww == nw_w - 1:   # last window col  -> left_right mask
                    m += lr[pi, pj]
                add[ti, tj] = m
    return same, rel_r, rel_c, add


# ----------------------------------------------------------------------------
# Fused whole-stage Pallas kernel
# ----------------------------------------------------------------------------
def _layer_norm(x, gamma, beta):
    mu = jnp.mean(x, axis=-1, keepdims=True)
    var = jnp.mean(jnp.square(x - mu), axis=-1, keepdims=True)
    return (x - mu) * lax.rsqrt(var + 1e-5) * gamma + beta


def _stage_kernel(x_ref, wqkv_ref, wout_ref, w1_ref, w2_ref, vec_ref, bias_ref, out_ref,
                  *, n_blocks, heads, dim):
    bf16 = jnp.bfloat16
    x = x_ref[...]                                    # (M, dim) f32 tokens of this grid step

    for blk in range(n_blocks):                       # static unroll over the stage's blocks
        vec = vec_ref[blk]                            # (7, 4*dim) packed 1-D params
        ln1_g, ln1_b = vec[0:1, :dim], vec[1:2, :dim]
        b_out = vec[2:3, :dim]
        ln2_g, ln2_b = vec[3:4, :dim], vec[4:5, :dim]
        b2 = vec[5:6, :dim]
        b1 = vec[6:7, :]                              # (1, 4*dim)
        bias = bias_ref[blk]                          # (M, M) f32: rel-pos + shift masks + window/batch -1e9

        # ---- Residual(PreNorm(WindowAttention)) ----
        xn = _layer_norm(x, ln1_g, ln1_b).astype(bf16)
        attn_out = None
        for h in range(heads):                        # static unroll; no lane slicing / stack / concat
            wq = wqkv_ref[(blk * 3 + 0) * heads + h]  # (dim, head_dim) bf16, scale pre-folded into Q
            wk = wqkv_ref[(blk * 3 + 1) * heads + h]
            wv = wqkv_ref[(blk * 3 + 2) * heads + h]
            q = jnp.dot(xn, wq, preferred_element_type=jnp.float32)     # (M, hd)
            k = jnp.dot(xn, wk, preferred_element_type=jnp.float32)
            v = jnp.dot(xn, wv, preferred_element_type=jnp.float32)
            dots = lax.dot_general(q.astype(bf16), k.astype(bf16),
                                   (((1,), (1,)), ((), ())),
                                   preferred_element_type=jnp.float32)  # (M, M) f32, no transpose
            dots = dots + bias
            dots = dots - jnp.max(dots, axis=-1, keepdims=True)
            e = jnp.exp(dots)
            attn = e * pl.reciprocal(jnp.sum(e, axis=-1, keepdims=True), approx=True)
            o = jnp.dot(attn.astype(bf16), v.astype(bf16),
                        preferred_element_type=jnp.float32)             # (M, hd)
            contrib = jnp.dot(o.astype(bf16), wout_ref[blk * heads + h],
                              preferred_element_type=jnp.float32)       # (M, dim)
            attn_out = contrib if attn_out is None else attn_out + contrib
        x = x + attn_out + b_out

        # ---- Residual(PreNorm(FeedForward)) ----
        xn2 = _layer_norm(x, ln2_g, ln2_b).astype(bf16)
        hdn = jnp.dot(xn2, w1_ref[blk], preferred_element_type=jnp.float32) + b1
        hdn = 0.5 * hdn * (1.0 + lax.erf(hdn * 0.7071067811865475))     # exact GELU (nn.GELU default)
        y = jnp.dot(hdn.astype(bf16), w2_ref[blk], preferred_element_type=jnp.float32) + b2
        x = x + y

    # TODO(synk): dim=32 < 128 lanes -> masked vst on this store; a lane-dense (M*dim/128, 128)
    # output layout is a possible micro-opt but the slab is only ~16 KiB, so it is left as-is.
    out_ref[...] = x


def _const_spec(arr):
    zeros = (0,) * arr.ndim
    return pl.BlockSpec(arr.shape, lambda i, _z=zeros: _z)


def stage_pallas_call(x_groups, operands, *, n_blocks, heads, dim):
    g, M, _ = x_groups.shape
    kernel = functools.partial(_stage_kernel, n_blocks=n_blocks, heads=heads, dim=dim)
    in_specs = ([pl.BlockSpec((None, M, dim), lambda i: (i, 0, 0))]
                + [_const_spec(a) for a in operands])
    return pl.pallas_call(
        kernel,
        out_shape=jax.ShapeDtypeStruct((g, M, dim), jnp.float32),
        grid=(g,),
        in_specs=in_specs,
        out_specs=pl.BlockSpec((None, M, dim), lambda i: (i, 0, 0)),
        compiler_params=pltpu.CompilerParams(dimension_semantics=("parallel",)),
    )(x_groups, *operands)


# ----------------------------------------------------------------------------
# Trace-time operand preparation (weight re-layout, bias/mask construction)
# ----------------------------------------------------------------------------
def _prepare_stage_operands(block_params, H, W, window_size, heads, head_dim, dim, bg):
    HW = H * W
    inner = heads * head_dim
    scale = head_dim ** (-0.5)
    vec_width = 4 * dim
    bf16 = jnp.bfloat16

    def to_heads(w_cols):                              # (dim, inner) -> (heads, dim, head_dim)
        return jnp.transpose(w_cols.reshape(dim, heads, head_dim), (1, 0, 2))

    def pad_vec(v):
        v = v.reshape(-1)
        return jnp.pad(v, (0, vec_width - v.shape[0]))

    wqkv_l, wout_l, w1_l, w2_l, vec_l, bias_l = [], [], [], [], [], []
    for i, p in enumerate(block_params):
        shifted = bool(i % 2)                          # regular, shifted, regular, shifted, ...
        w_qkv = p["w_qkv"]
        wq = to_heads(w_qkv[:, :inner]) * scale        # softmax scale folded into Q weights
        wk = to_heads(w_qkv[:, inner:2 * inner])
        wv = to_heads(w_qkv[:, 2 * inner:])
        wqkv_l.append(jnp.stack([wq, wk, wv]))         # (3, heads, dim, head_dim)
        wout_l.append(p["w_out"].reshape(heads, head_dim, dim))
        w1_l.append(p["w1"])
        w2_l.append(p["w2"])
        vec_l.append(jnp.stack([pad_vec(p["ln1_g"]), pad_vec(p["ln1_b"]), pad_vec(p["b_out"]),
                                pad_vec(p["ln2_g"]), pad_vec(p["ln2_b"]), pad_vec(p["b2"]),
                                pad_vec(p["b1"])]))    # (7, 4*dim)

        same, rel_r, rel_c, add = _bias_constants(H, W, window_size, shifted)
        pos = p["pos_emb"][rel_r, rel_c]               # learned param -> tiny XLA gather
        base = jnp.where(jnp.asarray(same), pos, NEG_INF) + jnp.asarray(add)   # (HW, HW)
        if bg > 1:
            # block-diagonal mask: tokens of different batch elements never attend to each other
            big = jnp.full((bg * HW, bg * HW), NEG_INF, jnp.float32)
            for gi in range(bg):
                big = big.at[gi * HW:(gi + 1) * HW, gi * HW:(gi + 1) * HW].set(base)
            bias_l.append(big)
        else:
            bias_l.append(base)

    nb = len(block_params)
    wqkv = jnp.stack(wqkv_l).reshape(nb * 3 * heads, dim, head_dim).astype(bf16)
    wout = jnp.stack(wout_l).reshape(nb * heads, head_dim, dim).astype(bf16)
    w1 = jnp.stack(w1_l).astype(bf16)                  # (nb, dim, 4*dim)
    w2 = jnp.stack(w2_l).astype(bf16)                  # (nb, 4*dim, dim)
    vecs = jnp.stack(vec_l).astype(jnp.float32)        # (nb, 7, 4*dim)
    bias = jnp.stack(bias_l).astype(jnp.float32)       # (nb, M, M)  (score path stays f32)
    return (wqkv, wout, w1, w2, vecs, bias)


def _default_num_groups(batch):
    # v7x has 2 TensorCores -> keep 2 "parallel" grid steps so both TCs work;
    # v5e/v6e have 1 TC -> a single grid step with the batch folded into M is fastest.
    try:
        kind = jax.devices()[0].device_kind.lower()
    except Exception:
        kind = ""
    groups = 2 if ("v7" in kind or "7x" in kind) else 1
    groups = max(1, min(groups, batch))
    while batch % groups:
        groups -= 1
    return groups


# ----------------------------------------------------------------------------
# StageModule forward (thin JAX glue: operand prep + final permute only)
# ----------------------------------------------------------------------------
def stage_module_forward(x, block_params, heads, head_dim, window_size, num_groups=None):
    # x: NHWC (b, H, W, dim); block_params: [regular_0, shifted_0, regular_1, shifted_1, ...]
    b, H, W, dim = x.shape
    HW = H * W
    assert H % window_size == 0 and W % window_size == 0
    assert len(block_params) % 2 == 0, "layers must alternate regular / shifted"
    g = _default_num_groups(b) if num_groups is None else num_groups
    bg = b // g
    operands = _prepare_stage_operands(block_params, H, W, window_size, heads, head_dim, dim, bg)
    xt = x.reshape(g, bg * HW, dim)                    # fold batch into the matmul M dimension
    out = stage_pallas_call(xt, operands, n_blocks=len(block_params), heads=heads, dim=dim)
    out = out.reshape(b, H, W, dim)
    # NHWC -> NCHW permute stays in XLA (lane-hostile at C=32; not worth folding into the kernel)
    return jnp.transpose(out, (0, 3, 1, 2))


# ----------------------------------------------------------------------------
# Deterministic parameter init
# ----------------------------------------------------------------------------
def init_block_params(key, dim, heads, head_dim, window_size):
    inner = heads * head_dim
    ks = jax.random.split(key, 8)
    return {
        "ln1_g": jnp.ones((dim,), jnp.float32),
        "ln1_b": jnp.zeros((dim,), jnp.float32),
        "w_qkv": 0.05 * jax.random.normal(ks[0], (dim, 3 * inner), jnp.float32),
        "w_out": 0.05 * jax.random.normal(ks[1], (inner, dim), jnp.float32),
        "b_out": 0.01 * jax.random.normal(ks[2], (dim,), jnp.float32),
        "pos_emb": jax.random.normal(ks[3], (2 * window_size - 1, 2 * window_size - 1),
                                     jnp.float32),
        "ln2_g": jnp.ones((dim,), jnp.float32),
        "ln2_b": jnp.zeros((dim,), jnp.float32),
        "w1": 0.05 * jax.random.normal(ks[4], (dim, 4 * dim), jnp.float32),
        "b1": 0.01 * jax.random.normal(ks[5], (4 * dim,), jnp.float32),
        "w2": 0.05 * jax.random.normal(ks[6], (4 * dim, dim), jnp.float32),
        "b2": 0.01 * jax.random.normal(ks[7], (dim,), jnp.float32),
    }


if __name__ == "__main__":
    # StageModule config: hidden_dimension=32, layers=2 (regular + shifted),
    # num_heads=2, head_dim=16, window_size=4, relative_pos_embedding=True.
    hidden_dimension = 32
    layers = 2
    num_heads = 2
    head_dim = 16
    window_size = 4
    b, H, W = 2, 8, 8

    key = jax.random.PRNGKey(0)
    kx, kp = jax.random.split(key)
    x = jax.random.normal(kx, (b, H, W, hidden_dimension), jnp.float32)

    block_keys = jax.random.split(kp, layers)
    params = [init_block_params(k, hidden_dimension, num_heads, head_dim, window_size)
              for k in block_keys]

    fwd = jax.jit(functools.partial(stage_module_forward,
                                    heads=num_heads, head_dim=head_dim,
                                    window_size=window_size))
    out = fwd(x, params)
    out = jax.block_until_ready(out)
    assert out.shape == (b, hidden_dimension, H, W), out.shape
    assert bool(jnp.all(jnp.isfinite(out)))
    print("KERNEL_OK")
</pallas_src>

<mosaic_0001>
module attributes {stable_mosaic.version = 11 : i64} {
  func.func @_stage_kernel(%arg0: i32, %arg1: memref<1x128x32xf32, #tpu.memory_space<vmem>>, %arg2: memref<12x32x16xbf16, #tpu.memory_space<vmem>>, %arg3: memref<4x16x32xbf16, #tpu.memory_space<vmem>>, %arg4: memref<2x32x128xbf16, #tpu.memory_space<vmem>>, %arg5: memref<2x128x32xbf16, #tpu.memory_space<vmem>>, %arg6: memref<2x7x128xf32, #tpu.memory_space<vmem>>, %arg7: memref<2x128x128xf32, #tpu.memory_space<vmem>>, %arg8: memref<1x128x32xf32, #tpu.memory_space<vmem>>) attributes {dimension_semantics = [#tpu.dimension_semantics<parallel>], iteration_bounds = array<i64: 1>, scalar_prefetch = 0 : i64, scratch_operands = 0 : i64, tpu.core_type = #tpu.core_type<tc>, window_params = [{transform_indices = @transform_0, window_bounds = array<i64: 1, 128, 32>}, {pipeline_mode = #tpu.pipeline_mode<synchronous>, transform_indices = @transform_1, window_bounds = array<i64: 12, 32, 16>}, {pipeline_mode = #tpu.pipeline_mode<synchronous>, transform_indices = @transform_2, window_bounds = array<i64: 4, 16, 32>}, {pipeline_mode = #tpu.pipeline_mode<synchronous>, transform_indices = @transform_3, window_bounds = array<i64: 2, 32, 128>}, {pipeline_mode = #tpu.pipeline_mode<synchronous>, transform_indices = @transform_4, window_bounds = array<i64: 2, 128, 32>}, {pipeline_mode = #tpu.pipeline_mode<synchronous>, transform_indices = @transform_5, window_bounds = array<i64: 2, 7, 128>}, {pipeline_mode = #tpu.pipeline_mode<synchronous>, transform_indices = @transform_6, window_bounds = array<i64: 2, 128, 128>}, {transform_indices = @transform_7, window_bounds = array<i64: 1, 128, 32>}]} {
    %c0 = arith.constant 0 : index
    %c0_0 = arith.constant 0 : index
    %c0_1 = arith.constant 0 : index
    %0 = vector.load %arg1[%c0, %c0_0, %c0_1] : memref<1x128x32xf32, #tpu.memory_space<vmem>>, vector<1x128x32xf32>
    %1 = vector.shape_cast %0 : vector<1x128x32xf32> to vector<128x32xf32>
    %c0_2 = arith.constant 0 : index
    %c0_3 = arith.constant 0 : index
    %c0_4 = arith.constant 0 : index
    %2 = vector.load %arg6[%c0_2, %c0_3, %c0_4] : memref<2x7x128xf32, #tpu.memory_space<vmem>>, vector<1x7x128xf32>
    %3 = vector.shape_cast %2 : vector<1x7x128xf32> to vector<7x128xf32>
    %4 = vector.extract_strided_slice %3 {offsets = [0, 0], sizes = [1, 32], strides = [1, 1]} : vector<7x128xf32> to vector<1x32xf32>
    %5 = vector.extract_strided_slice %3 {offsets = [1, 0], sizes = [1, 32], strides = [1, 1]} : vector<7x128xf32> to vector<1x32xf32>
    %6 = vector.extract_strided_slice %3 {offsets = [2, 0], sizes = [1, 32], strides = [1, 1]} : vector<7x128xf32> to vector<1x32xf32>
    %7 = vector.extract_strided_slice %3 {offsets = [3, 0], sizes = [1, 32], strides = [1, 1]} : vector<7x128xf32> to vector<1x32xf32>
    %8 = vector.extract_strided_slice %3 {offsets = [4, 0], sizes = [1, 32], strides = [1, 1]} : vector<7x128xf32> to vector<1x32xf32>
    %9 = vector.extract_strided_slice %3 {offsets = [5, 0], sizes = [1, 32], strides = [1, 1]} : vector<7x128xf32> to vector<1x32xf32>
    %10 = vector.extract_strided_slice %3 {offsets = [6, 0], sizes = [1, 128], strides = [1, 1]} : vector<7x128xf32> to vector<1x128xf32>
    %c0_5 = arith.constant 0 : index
    %c0_6 = arith.constant 0 : index
    %c0_7 = arith.constant 0 : index
    %11 = vector.load %arg7[%c0_5, %c0_6, %c0_7] : memref<2x128x128xf32, #tpu.memory_space<vmem>>, vector<1x128x128xf32>
    %12 = vector.shape_cast %11 : vector<1x128x128xf32> to vector<128x128xf32>
    %cst = arith.constant dense<0.000000e+00> : vector<128xf32>
    %13 = vector.multi_reduction <add>, %1, %cst [1] : vector<128x32xf32> to vector<128xf32>
    %14 = vector.shape_cast %13 : vector<128xf32> to vector<128x1xf32>
    %cst_8 = arith.constant 3.200000e+01 : f32
    %15 = vector.broadcast %cst_8 : f32 to vector<128x1xf32>
    %16 = arith.divf %14, %15 : vector<128x1xf32>
    %17 = vector.broadcast %16 : vector<128x1xf32> to vector<128x32xf32>
    %18 = arith.subf %1, %17 : vector<128x32xf32>
    %19 = arith.mulf %18, %18 : vector<128x32xf32>
    %cst_9 = arith.constant dense<0.000000e+00> : vector<128xf32>
    %20 = vector.multi_reduction <add>, %19, %cst_9 [1] : vector<128x32xf32> to vector<128xf32>
    %21 = vector.shape_cast %20 : vector<128xf32> to vector<128x1xf32>
    %cst_10 = arith.constant 3.200000e+01 : f32
    %22 = vector.broadcast %cst_10 : f32 to vector<128x1xf32>
    %23 = arith.divf %21, %22 : vector<128x1xf32>
    %24 = vector.broadcast %16 : vector<128x1xf32> to vector<128x32xf32>
    %25 = arith.subf %1, %24 : vector<128x32xf32>
    %cst_11 = arith.constant 9.99999974E-6 : f32
    %26 = vector.broadcast %cst_11 : f32 to vector<128x1xf32>
    %27 = arith.addf %23, %26 : vector<128x1xf32>
    %28 = math.rsqrt %27 : vector<128x1xf32>
    %29 = vector.broadcast %28 : vector<128x1xf32> to vector<128x32xf32>
    %30 = arith.mulf %25, %29 : vector<128x32xf32>
    %31 = vector.broadcast %4 : vector<1x32xf32> to vector<128x32xf32>
    %32 = arith.mulf %30, %31 : vector<128x32xf32>
    %33 = vector.broadcast %5 : vector<1x32xf32> to vector<128x32xf32>
    %34 = arith.addf %32, %33 : vector<128x32xf32>
    %35 = arith.truncf %34 : vector<128x32xf32> to vector<128x32xbf16>
    %c0_12 = arith.constant 0 : index
    %c0_13 = arith.constant 0 : index
    %c0_14 = arith.constant 0 : index
    %36 = vector.load %arg2[%c0_12, %c0_13, %c0_14] : memref<12x32x16xbf16, #tpu.memory_space<vmem>>, vector<1x32x16xbf16>
    %37 = vector.shape_cast %36 : vector<1x32x16xbf16> to vector<32x16xbf16>
    %c2 = arith.constant 2 : index
    %c0_15 = arith.constant 0 : index
    %c0_16 = arith.constant 0 : index
    %38 = vector.load %arg2[%c2, %c0_15, %c0_16] : memref<12x32x16xbf16, #tpu.memory_space<vmem>>, vector<1x32x16xbf16>
    %39 = vector.shape_cast %38 : vector<1x32x16xbf16> to vector<32x16xbf16>
    %c4 = arith.constant 4 : index
    %c0_17 = arith.constant 0 : index
    %c0_18 = arith.constant 0 : index
    %40 = vector.load %arg2[%c4, %c0_17, %c0_18] : memref<12x32x16xbf16, #tpu.memory_space<vmem>>, vector<1x32x16xbf16>
    %41 = vector.shape_cast %40 : vector<1x32x16xbf16> to vector<32x16xbf16>
    %cst_19 = arith.constant dense<0.000000e+00> : vector<128x16xf32>
    %42 = tpu.matmul %35, %37, %cst_19 {dimension_numbers = #tpu.dot_dimension_numbers<[1], [0], [0], [1], [0, 0, 1, 1], [], []>} : vector<128x32xbf16>, vector<32x16xbf16>, vector<128x16xf32> -> vector<128x16xf32>
    %cst_20 = arith.constant dense<0.000000e+00> : vector<128x16xf32>
    %43 = tpu.matmul %35, %39, %cst_20 {dimension_numbers = #tpu.dot_dimension_numbers<[1], [0], [0], [1], [0, 0, 1, 1], [], []>} : vector<128x32xbf16>, vector<32x16xbf16>, vector<128x16xf32> -> vector<128x16xf32>
    %cst_21 = arith.constant dense<0.000000e+00> : vector<128x16xf32>
    %44 = tpu.matmul %35, %41, %cst_21 {dimension_numbers = #tpu.dot_dimension_numbers<[1], [0], [0], [1], [0, 0, 1, 1], [], []>} : vector<128x32xbf16>, vector<32x16xbf16>, vector<128x16xf32> -> vector<128x16xf32>
    %45 = arith.truncf %42 : vector<128x16xf32> to vector<128x16xbf16>
    %46 = arith.truncf %43 : vector<128x16xf32> to vector<128x16xbf16>
    %cst_22 = arith.constant dense<0.000000e+00> : vector<128x128xf32>
    %47 = tpu.matmul %45, %46, %cst_22 {dimension_numbers = #tpu.dot_dimension_numbers<[1], [1], [0], [0], [0, 0, 1, 0], [], []>} : vector<128x16xbf16>, vector<128x16xbf16>, vector<128x128xf32> -> vector<128x128xf32>
    %48 = arith.addf %47, %12 : vector<128x128xf32>
    %cst_23 = arith.constant dense<0xFF800000> : vector<128xf32>
    %49 = vector.multi_reduction <maximumf>, %48, %cst_23 [1] : vector<128x128xf32> to vector<128xf32>
    %50 = vector.shape_cast %49 : vector<128xf32> to vector<128x1xf32>
    %51 = vector.broadcast %50 : vector<128x1xf32> to vector<128x128xf32>
    %52 = arith.subf %48, %51 : vector<128x128xf32>
    %53 = math.exp %52 : vector<128x128xf32>
    %cst_24 = arith.constant dense<0.000000e+00> : vector<128xf32>
    %54 = vector.multi_reduction <add>, %53, %cst_24 [1] : vector<128x128xf32> to vector<128xf32>
    %55 = vector.shape_cast %54 : vector<128xf32> to vector<128x1xf32>
    %56 = tpu.reciprocal %55 {approx = true} : vector<128x1xf32> -> vector<128x1xf32>
    %57 = vector.broadcast %56 : vector<128x1xf32> to vector<128x128xf32>
    %58 = arith.mulf %53, %57 : vector<128x128xf32>
    %59 = arith.truncf %58 : vector<128x128xf32> to vector<128x128xbf16>
    %60 = arith.truncf %44 : vector<128x16xf32> to vector<128x16xbf16>
    %cst_25 = arith.constant dense<0.000000e+00> : vector<128x16xf32>
    %61 = tpu.matmul %59, %60, %cst_25 {dimension_numbers = #tpu.dot_dimension_numbers<[1], [0], [0], [1], [0, 0, 1, 1], [], []>} : vector<128x128xbf16>, vector<128x16xbf16>, vector<128x16xf32> -> vector<128x16xf32>
    %62 = arith.truncf %61 : vector<128x16xf32> to vector<128x16xbf16>
    %c0_26 = arith.constant 0 : index
    %c0_27 = arith.constant 0 : index
    %c0_28 = arith.constant 0 : index
    %63 = vector.load %arg3[%c0_26, %c0_27, %c0_28] : memref<4x16x32xbf16, #tpu.memory_space<vmem>>, vector<1x16x32xbf16>
    %64 = vector.shape_cast %63 : vector<1x16x32xbf16> to vector<16x32xbf16>
    %cst_29 = arith.constant dense<0.000000e+00> : vector<128x32xf32>
    %65 = tpu.matmul %62, %64, %cst_29 {dimension_numbers = #tpu.dot_dimension_numbers<[1], [0], [0], [1], [0, 0, 1, 1], [], []>} : vector<128x16xbf16>, vector<16x32xbf16>, vector<128x32xf32> -> vector<128x32xf32>
    %c1 = arith.constant 1 : index
    %c0_30 = arith.constant 0 : index
    %c0_31 = arith.constant 0 : index
    %66 = vector.load %arg2[%c1, %c0_30, %c0_31] : memref<12x32x16xbf16, #tpu.memory_space<vmem>>, vector<1x32x16xbf16>
    %67 = vector.shape_cast %66 : vector<1x32x16xbf16> to vector<32x16xbf16>
    %c3 = arith.constant 3 : index
    %c0_32 = arith.constant 0 : index
    %c0_33 = arith.constant 0 : index
    %68 = vector.load %arg2[%c3, %c0_32, %c0_33] : memref<12x32x16xbf16, #tpu.memory_space<vmem>>, vector<1x32x16xbf16>
    %69 = vector.shape_cast %68 : vector<1x32x16xbf16> to vector<32x16xbf16>
    %c5 = arith.constant 5 : index
    %c0_34 = arith.constant 0 : index
    %c0_35 = arith.constant 0 : index
    %70 = vector.load %arg2[%c5, %c0_34, %c0_35] : memref<12x32x16xbf16, #tpu.memory_space<vmem>>, vector<1x32x16xbf16>
    %71 = vector.shape_cast %70 : vector<1x32x16xbf16> to vector<32x16xbf16>
    %cst_36 = arith.constant dense<0.000000e+00> : vector<128x16xf32>
    %72 = tpu.matmul %35, %67, %cst_36 {dimension_numbers = #tpu.dot_dimension_numbers<[1], [0], [0], [1], [0, 0, 1, 1], [], []>} : vector<128x32xbf16>, vector<32x16xbf16>, vector<128x16xf32> -> vector<128x16xf32>
    %cst_37 = arith.constant dense<0.000000e+00> : vector<128x16xf32>
    %73 = tpu.matmul %35, %69, %cst_37 {dimension_numbers = #tpu.dot_dimension_numbers<[1], [0], [0], [1], [0, 0, 1, 1], [], []>} : vector<128x32xbf16>, vector<32x16xbf16>, vector<128x16xf32> -> vector<128x16xf32>
    %cst_38 = arith.constant dense<0.000000e+00> : vector<128x16xf32>
    %74 = tpu.matmul %35, %71, %cst_38 {dimension_numbers = #tpu.dot_dimension_numbers<[1], [0], [0], [1], [0, 0, 1, 1], [], []>} : vector<128x32xbf16>, vector<32x16xbf16>, vector<128x16xf32> -> vector<128x16xf32>
    %75 = arith.truncf %72 : vector<128x16xf32> to vector<128x16xbf16>
    %76 = arith.truncf %73 : vector<128x16xf32> to vector<128x16xbf16>
    %cst_39 = arith.constant dense<0.000000e+00> : vector<128x128xf32>
    %77 = tpu.matmul %75, %76, %cst_39 {dimension_numbers = #tpu.dot_dimension_numbers<[1], [1], [0], [0], [0, 0, 1, 0], [], []>} : vector<128x16xbf16>, vector<128x16xbf16>, vector<128x128xf32> -> vector<128x128xf32>
    %78 = arith.addf %77, %12 : vector<128x128xf32>
    %cst_40 = arith.constant dense<0xFF800000> : vector<128xf32>
    %79 = vector.multi_reduction <maximumf>, %78, %cst_40 [1] : vector<128x128xf32> to vector<128xf32>
    %80 = vector.shape_cast %79 : vector<128xf32> to vector<128x1xf32>
    %81 = vector.broadcast %80 : vector<128x1xf32> to vector<128x128xf32>
    %82 = arith.subf %78, %81 : vector<128x128xf32>
    %83 = math.exp %82 : vector<128x128xf32>
    %cst_41 = arith.constant dense<0.000000e+00> : vector<128xf32>
    %84 = vector.multi_reduction <add>, %83, %cst_41 [1] : vector<128x128xf32> to vector<128xf32>
    %85 = vector.shape_cast %84 : vector<128xf32> to vector<128x1xf32>
    %86 = tpu.reciprocal %85 {approx = true} : vector<128x1xf32> -> vector<128x1xf32>
    %87 = vector.broadcast %86 : vector<128x1xf32> to vector<128x128xf32>
    %88 = arith.mulf %83, %87 : vector<128x128xf32>
    %89 = arith.truncf %88 : vector<128x128xf32> to vector<128x128xbf16>
    %90 = arith.truncf %74 : vector<128x16xf32> to vector<128x16xbf16>
    %cst_42 = arith.constant dense<0.000000e+00> : vector<128x16xf32>
    %91 = tpu.matmul %89, %90, %cst_42 {dimension_numbers = #tpu.dot_dimension_numbers<[1], [0], [0], [1], [0, 0, 1, 1], [], []>} : vector<128x128xbf16>, vector<128x16xbf16>, vector<128x16xf32> -> vector<128x16xf32>
    %92 = arith.truncf %91 : vector<128x16xf32> to vector<128x16xbf16>
    %c1_43 = arith.constant 1 : index
    %c0_44 = arith.constant 0 : index
    %c0_45 = arith.constant 0 : index
    %93 = vector.load %arg3[%c1_43, %c0_44, %c0_45] : memref<4x16x32xbf16, #tpu.memory_space<vmem>>, vector<1x16x32xbf16>
    %94 = vector.shape_cast %93 : vector<1x16x32xbf16> to vector<16x32xbf16>
    %cst_46 = arith.constant dense<0.000000e+00> : vector<128x32xf32>
    %95 = tpu.matmul %92, %94, %cst_46 {dimension_numbers = #tpu.dot_dimension_numbers<[1], [0], [0], [1], [0, 0, 1, 1], [], []>} : vector<128x16xbf16>, vector<16x32xbf16>, vector<128x32xf32> -> vector<128x32xf32>
    %96 = arith.addf %65, %95 : vector<128x32xf32>
    %97 = arith.addf %1, %96 : vector<128x32xf32>
    %98 = vector.broadcast %6 : vector<1x32xf32> to vector<128x32xf32>
    %99 = arith.addf %97, %98 : vector<128x32xf32>
    %cst_47 = arith.constant dense<0.000000e+00> : vector<128xf32>
    %100 = vector.multi_reduction <add>, %99, %cst_47 [1] : vector<128x32xf32> to vector<128xf32>
    %101 = vector.shape_cast %100 : vector<128xf32> to vector<128x1xf32>
    %cst_48 = arith.constant 3.200000e+01 : f32
    %102 = vector.broadcast %cst_48 : f32 to vector<128x1xf32>
    %103 = arith.divf %101, %102 : vector<128x1xf32>
    %104 = vector.broadcast %103 : vector<128x1xf32> to vector<128x32xf32>
    %105 = arith.subf %99, %104 : vector<128x32xf32>
    %106 = arith.mulf %105, %105 : vector<128x32xf32>
    %cst_49 = arith.constant dense<0.000000e+00> : vector<128xf32>
    %107 = vector.multi_reduction <add>, %106, %cst_49 [1] : vector<128x32xf32> to vector<128xf32>
    %108 = vector.shape_cast %107 : vector<128xf32> to vector<128x1xf32>
    %cst_50 = arith.constant 3.200000e+01 : f32
    %109 = vector.broadcast %cst_50 : f32 to vector<128x1xf32>
    %110 = arith.divf %108, %109 : vector<128x1xf32>
    %111 = vector.broadcast %103 : vector<128x1xf32> to vector<128x32xf32>
    %112 = arith.subf %99, %111 : vector<128x32xf32>
    %cst_51 = arith.constant 9.99999974E-6 : f32
    %113 = vector.broadcast %cst_51 : f32 to vector<128x1xf32>
    %114 = arith.addf %110, %113 : vector<128x1xf32>
    %115 = math.rsqrt %114 : vector<128x1xf32>
    %116 = vector.broadcast %115 : vector<128x1xf32> to vector<128x32xf32>
    %117 = arith.mulf %112, %116 : vector<128x32xf32>
    %118 = vector.broadcast %7 : vector<1x32xf32> to vector<128x32xf32>
    %119 = arith.mulf %117, %118 : vector<128x32xf32>
    %120 = vector.broadcast %8 : vector<1x32xf32> to vector<128x32xf32>
    %121 = arith.addf %119, %120 : vector<128x32xf32>
    %122 = arith.truncf %121 : vector<128x32xf32> to vector<128x32xbf16>
    %c0_52 = arith.constant 0 : index
    %c0_53 = arith.constant 0 : index
    %c0_54 = arith.constant 0 : index
    %123 = vector.load %arg4[%c0_52, %c0_53, %c0_54] : memref<2x32x128xbf16, #tpu.memory_space<vmem>>, vector<1x32x128xbf16>
    %124 = vector.shape_cast %123 : vector<1x32x128xbf16> to vector<32x128xbf16>
    %cst_55 = arith.constant dense<0.000000e+00> : vector<128x128xf32>
    %125 = tpu.matmul %122, %124, %cst_55 {dimension_numbers = #tpu.dot_dimension_numbers<[1], [0], [0], [1], [0, 0, 1, 1], [], []>} : vector<128x32xbf16>, vector<32x128xbf16>, vector<128x128xf32> -> vector<128x128xf32>
    %126 = vector.broadcast %10 : vector<1x128xf32> to vector<128x128xf32>
    %127 = arith.addf %125, %126 : vector<128x128xf32>
    %cst_56 = arith.constant 5.000000e-01 : f32
    %128 = vector.broadcast %cst_56 : f32 to vector<128x128xf32>
    %129 = arith.mulf %128, %127 : vector<128x128xf32>
    %cst_57 = arith.constant 0.707106769 : f32
    %130 = vector.broadcast %cst_57 : f32 to vector<128x128xf32>
    %131 = arith.mulf %127, %130 : vector<128x128xf32>
    %132 = math.erf %131 : vector<128x128xf32>
    %cst_58 = arith.constant 1.000000e+00 : f32
    %133 = vector.broadcast %cst_58 : f32 to vector<128x128xf32>
    %134 = arith.addf %133, %132 : vector<128x128xf32>
    %135 = arith.mulf %129, %134 : vector<128x128xf32>
    %136 = arith.truncf %135 : vector<128x128xf32> to vector<128x128xbf16>
    %c0_59 = arith.constant 0 : index
    %c0_60 = arith.constant 0 : index
    %c0_61 = arith.constant 0 : index
    %137 = vector.load %arg5[%c0_59, %c0_60, %c0_61] : memref<2x128x32xbf16, #tpu.memory_space<vmem>>, vector<1x128x32xbf16>
    %138 = vector.shape_cast %137 : vector<1x128x32xbf16> to vector<128x32xbf16>
    %cst_62 = arith.constant dense<0.000000e+00> : vector<128x32xf32>
    %139 = tpu.matmul %136, %138, %cst_62 {dimension_numbers = #tpu.dot_dimension_numbers<[1], [0], [0], [1], [0, 0, 1, 1], [], []>} : vector<128x128xbf16>, vector<128x32xbf16>, vector<128x32xf32> -> vector<128x32xf32>
    %140 = vector.broadcast %9 : vector<1x32xf32> to vector<128x32xf32>
    %141 = arith.addf %139, %140 : vector<128x32xf32>
    %142 = arith.addf %99, %141 : vector<128x32xf32>
    %c1_63 = arith.constant 1 : index
    %c0_64 = arith.constant 0 : index
    %c0_65 = arith.constant 0 : index
    %143 = vector.load %arg6[%c1_63, %c0_64, %c0_65] : memref<2x7x128xf32, #tpu.memory_space<vmem>>, vector<1x7x128xf32>
    %144 = vector.shape_cast %143 : vector<1x7x128xf32> to vector<7x128xf32>
    %145 = vector.extract_strided_slice %144 {offsets = [0, 0], sizes = [1, 32], strides = [1, 1]} : vector<7x128xf32> to vector<1x32xf32>
    %146 = vector.extract_strided_slice %144 {offsets = [1, 0], sizes = [1, 32], strides = [1, 1]} : vector<7x128xf32> to vector<1x32xf32>
    %147 = vector.extract_strided_slice %144 {offsets = [2, 0], sizes = [1, 32], strides = [1, 1]} : vector<7x128xf32> to vector<1x32xf32>
    %148 = vector.extract_strided_slice %144 {offsets = [3, 0], sizes = [1, 32], strides = [1, 1]} : vector<7x128xf32> to vector<1x32xf32>
    %149 = vector.extract_strided_slice %144 {offsets = [4, 0], sizes = [1, 32], strides = [1, 1]} : vector<7x128xf32> to vector<1x32xf32>
    %150 = vector.extract_strided_slice %144 {offsets = [5, 0], sizes = [1, 32], strides = [1, 1]} : vector<7x128xf32> to vector<1x32xf32>
    %151 = vector.extract_strided_slice %144 {offsets = [6, 0], sizes = [1, 128], strides = [1, 1]} : vector<7x128xf32> to vector<1x128xf32>
    %c1_66 = arith.constant 1 : index
    %c0_67 = arith.constant 0 : index
    %c0_68 = arith.constant 0 : index
    %152 = vector.load %arg7[%c1_66, %c0_67, %c0_68] : memref<2x128x128xf32, #tpu.memory_space<vmem>>, vector<1x128x128xf32>
    %153 = vector.shape_cast %152 : vector<1x128x128xf32> to vector<128x128xf32>
    %cst_69 = arith.constant dense<0.000000e+00> : vector<128xf32>
    %154 = vector.multi_reduction <add>, %142, %cst_69 [1] : vector<128x32xf32> to vector<128xf32>
    %155 = vector.shape_cast %154 : vector<128xf32> to vector<128x1xf32>
    %cst_70 = arith.constant 3.200000e+01 : f32
    %156 = vector.broadcast %cst_70 : f32 to vector<128x1xf32>
    %157 = arith.divf %155, %156 : vector<128x1xf32>
    %158 = vector.broadcast %157 : vector<128x1xf32> to vector<128x32xf32>
    %159 = arith.subf %142, %158 : vector<128x32xf32>
    %160 = arith.mulf %159, %159 : vector<128x32xf32>
    %cst_71 = arith.constant dense<0.000000e+00> : vector<128xf32>
    %161 = vector.multi_reduction <add>, %160, %cst_71 [1] : vector<128x32xf32> to vector<128xf32>
    %162 = vector.shape_cast %161 : vector<128xf32> to vector<128x1xf32>
    %cst_72 = arith.constant 3.200000e+01 : f32
    %163 = vector.broadcast %cst_72 : f32 to vector<128x1xf32>
    %164 = arith.divf %162, %163 : vector<128x1xf32>
    %165 = vector.broadcast %157 : vector<128x1xf32> to vector<128x32xf32>
    %166 = arith.subf %142, %165 : vector<128x32xf32>
    %cst_73 = arith.constant 9.99999974E-6 : f32
    %167 = vector.broadcast %cst_73 : f32 to vector<128x1xf32>
    %168 = arith.addf %164, %167 : vector<128x1xf32>
    %169 = math.rsqrt %168 : vector<128x1xf32>
    %170 = vector.broadcast %169 : vector<128x1xf32> to vector<128x32xf32>
    %171 = arith.mulf %166, %170 : vector<128x32xf32>
    %172 = vector.broadcast %145 : vector<1x32xf32> to vector<128x32xf32>
    %173 = arith.mulf %171, %172 : vector<128x32xf32>
    %174 = vector.broadcast %146 : vector<1x32xf32> to vector<128x32xf32>
    %175 = arith.addf %173, %174 : vector<128x32xf32>
    %176 = arith.truncf %175 : vector<128x32xf32> to vector<128x32xbf16>
    %c6 = arith.constant 6 : index
    %c0_74 = arith.constant 0 : index
    %c0_75 = arith.constant 0 : index
    %177 = vector.load %arg2[%c6, %c0_74, %c0_75] : memref<12x32x16xbf16, #tpu.memory_space<vmem>>, vector<1x32x16xbf16>
    %178 = vector.shape_cast %177 : vector<1x32x16xbf16> to vector<32x16xbf16>
    %c8 = arith.constant 8 : index
    %c0_76 = arith.constant 0 : index
    %c0_77 = arith.constant 0 : index
    %179 = vector.load %arg2[%c8, %c0_76, %c0_77] : memref<12x32x16xbf16, #tpu.memory_space<vmem>>, vector<1x32x16xbf16>
    %180 = vector.shape_cast %179 : vector<1x32x16xbf16> to vector<32x16xbf16>
    %c10 = arith.constant 10 : index
    %c0_78 = arith.constant 0 : index
    %c0_79 = arith.constant 0 : index
    %181 = vector.load %arg2[%c10, %c0_78, %c0_79] : memref<12x32x16xbf16, #tpu.memory_space<vmem>>, vector<1x32x16xbf16>
    %182 = vector.shape_cast %181 : vector<1x32x16xbf16> to vector<32x16xbf16>
    %cst_80 = arith.constant dense<0.000000e+00> : vector<128x16xf32>
    %183 = tpu.matmul %176, %178, %cst_80 {dimension_numbers = #tpu.dot_dimension_numbers<[1], [0], [0], [1], [0, 0, 1, 1], [], []>} : vector<128x32xbf16>, vector<32x16xbf16>, vector<128x16xf32> -> vector<128x16xf32>
    %cst_81 = arith.constant dense<0.000000e+00> : vector<128x16xf32>
    %184 = tpu.matmul %176, %180, %cst_81 {dimension_numbers = #tpu.dot_dimension_numbers<[1], [0], [0], [1], [0, 0, 1, 1], [], []>} : vector<128x32xbf16>, vector<32x16xbf16>, vector<128x16xf32> -> vector<128x16xf32>
    %cst_82 = arith.constant dense<0.000000e+00> : vector<128x16xf32>
    %185 = tpu.matmul %176, %182, %cst_82 {dimension_numbers = #tpu.dot_dimension_numbers<[1], [0], [0], [1], [0, 0, 1, 1], [], []>} : vector<128x32xbf16>, vector<32x16xbf16>, vector<128x16xf32> -> vector<128x16xf32>
    %186 = arith.truncf %183 : vector<128x16xf32> to vector<128x16xbf16>
    %187 = arith.truncf %184 : vector<128x16xf32> to vector<128x16xbf16>
    %cst_83 = arith.constant dense<0.000000e+00> : vector<128x128xf32>
    %188 = tpu.matmul %186, %187, %cst_83 {dimension_numbers = #tpu.dot_dimension_numbers<[1], [1], [0], [0], [0, 0, 1, 0], [], []>} : vector<128x16xbf16>, vector<128x16xbf16>, vector<128x128xf32> -> vector<128x128xf32>
    %189 = arith.addf %188, %153 : vector<128x128xf32>
    %cst_84 = arith.constant dense<0xFF800000> : vector<128xf32>
    %190 = vector.multi_reduction <maximumf>, %189, %cst_84 [1] : vector<128x128xf32> to vector<128xf32>
    %191 = vector.shape_cast %190 : vector<128xf32> to vector<128x1xf32>
    %192 = vector.broadcast %191 : vector<128x1xf32> to vector<128x128xf32>
    %193 = arith.subf %189, %192 : vector<128x128xf32>
    %194 = math.exp %193 : vector<128x128xf32>
    %cst_85 = arith.constant dense<0.000000e+00> : vector<128xf32>
    %195 = vector.multi_reduction <add>, %194, %cst_85 [1] : vector<128x128xf32> to vector<128xf32>
    %196 = vector.shape_cast %195 : vector<128xf32> to vector<128x1xf32>
    %197 = tpu.reciprocal %196 {approx = true} : vector<128x1xf32> -> vector<128x1xf32>
    %198 = vector.broadcast %197 : vector<128x1xf32> to vector<128x128xf32>
    %199 = arith.mulf %194, %198 : vector<128x128xf32>
    %200 = arith.truncf %199 : vector<128x128xf32> to vector<128x128xbf16>
    %201 = arith.truncf %185 : vector<128x16xf32> to vector<128x16xbf16>
    %cst_86 = arith.constant dense<0.000000e+00> : vector<128x16xf32>
    %202 = tpu.matmul %200, %201, %cst_86 {dimension_numbers = #tpu.dot_dimension_numbers<[1], [0], [0], [1], [0, 0, 1, 1], [], []>} : vector<128x128xbf16>, vector<128x16xbf16>, vector<128x16xf32> -> vector<128x16xf32>
    %203 = arith.truncf %202 : vector<128x16xf32> to vector<128x16xbf16>
    %c2_87 = arith.constant 2 : index
    %c0_88 = arith.constant 0 : index
    %c0_89 = arith.constant 0 : index
    %204 = vector.load %arg3[%c2_87, %c0_88, %c0_89] : memref<4x16x32xbf16, #tpu.memory_space<vmem>>, vector<1x16x32xbf16>
    %205 = vector.shape_cast %204 : vector<1x16x32xbf16> to vector<16x32xbf16>
    %cst_90 = arith.constant dense<0.000000e+00> : vector<128x32xf32>
    %206 = tpu.matmul %203, %205, %cst_90 {dimension_numbers = #tpu.dot_dimension_numbers<[1], [0], [0], [1], [0, 0, 1, 1], [], []>} : vector<128x16xbf16>, vector<16x32xbf16>, vector<128x32xf32> -> vector<128x32xf32>
    %c7 = arith.constant 7 : index
    %c0_91 = arith.constant 0 : index
    %c0_92 = arith.constant 0 : index
    %207 = vector.load %arg2[%c7, %c0_91, %c0_92] : memref<12x32x16xbf16, #tpu.memory_space<vmem>>, vector<1x32x16xbf16>
    %208 = vector.shape_cast %207 : vector<1x32x16xbf16> to vector<32x16xbf16>
    %c9 = arith.constant 9 : index
    %c0_93 = arith.constant 0 : index
    %c0_94 = arith.constant 0 : index
    %209 = vector.load %arg2[%c9, %c0_93, %c0_94] : memref<12x32x16xbf16, #tpu.memory_space<vmem>>, vector<1x32x16xbf16>
    %210 = vector.shape_cast %209 : vector<1x32x16xbf16> to vector<32x16xbf16>
    %c11 = arith.constant 11 : index
    %c0_95 = arith.constant 0 : index
    %c0_96 = arith.constant 0 : index
    %211 = vector.load %arg2[%c11, %c0_95, %c0_96] : memref<12x32x16xbf16, #tpu.memory_space<vmem>>, vector<1x32x16xbf16>
    %212 = vector.shape_cast %211 : vector<1x32x16xbf16> to vector<32x16xbf16>
    %cst_97 = arith.constant dense<0.000000e+00> : vector<128x16xf32>
    %213 = tpu.matmul %176, %208, %cst_97 {dimension_numbers = #tpu.dot_dimension_numbers<[1], [0], [0], [1], [0, 0, 1, 1], [], []>} : vector<128x32xbf16>, vector<32x16xbf16>, vector<128x16xf32> -> vector<128x16xf32>
    %cst_98 = arith.constant dense<0.000000e+00> : vector<128x16xf32>
    %214 = tpu.matmul %176, %210, %cst_98 {dimension_numbers = #tpu.dot_dimension_numbers<[1], [0], [0], [1], [0, 0, 1, 1], [], []>} : vector<128x32xbf16>, vector<32x16xbf16>, vector<128x16xf32> -> vector<128x16xf32>
    %cst_99 = arith.constant dense<0.000000e+00> : vector<128x16xf32>
    %215 = tpu.matmul %176, %212, %cst_99 {dimension_numbers = #tpu.dot_dimension_numbers<[1], [0], [0], [1], [0, 0, 1, 1], [], []>} : vector<128x32xbf16>, vector<32x16xbf16>, vector<128x16xf32> -> vector<128x16xf32>
    %216 = arith.truncf %213 : vector<128x16xf32> to vector<128x16xbf16>
    %217 = arith.truncf %214 : vector<128x16xf32> to vector<128x16xbf16>
    %cst_100 = arith.constant dense<0.000000e+00> : vector<128x128xf32>
    %218 = tpu.matmul %216, %217, %cst_100 {dimension_numbers = #tpu.dot_dimension_numbers<[1], [1], [0], [0], [0, 0, 1, 0], [], []>} : vector<128x16xbf16>, vector<128x16xbf16>, vector<128x128xf32> -> vector<128x128xf32>
    %219 = arith.addf %218, %153 : vector<128x128xf32>
    %cst_101 = arith.constant dense<0xFF800000> : vector<128xf32>
    %220 = vector.multi_reduction <maximumf>, %219, %cst_101 [1] : vector<128x128xf32> to vector<128xf32>
    %221 = vector.shape_cast %220 : vector<128xf32> to vector<128x1xf32>
    %222 = vector.broadcast %221 : vector<128x1xf32> to vector<128x128xf32>
    %223 = arith.subf %219, %222 : vector<128x128xf32>
    %224 = math.exp %223 : vector<128x128xf32>
    %cst_102 = arith.constant dense<0.000000e+00> : vector<128xf32>
    %225 = vector.multi_reduction <add>, %224, %cst_102 [1] : vector<128x128xf32> to vector<128xf32>
    %226 = vector.shape_cast %225 : vector<128xf32> to vector<128x1xf32>
    %227 = tpu.reciprocal %226 {approx = true} : vector<128x1xf32> -> vector<128x1xf32>
    %228 = vector.broadcast %227 : vector<128x1xf32> to vector<128x128xf32>
    %229 = arith.mulf %224, %228 : vector<128x128xf32>
    %230 = arith.truncf %229 : vector<128x128xf32> to vector<128x128xbf16>
    %231 = arith.truncf %215 : vector<128x16xf32> to vector<128x16xbf16>
    %cst_103 = arith.constant dense<0.000000e+00> : vector<128x16xf32>
    %232 = tpu.matmul %230, %231, %cst_103 {dimension_numbers = #tpu.dot_dimension_numbers<[1], [0], [0], [1], [0, 0, 1, 1], [], []>} : vector<128x128xbf16>, vector<128x16xbf16>, vector<128x16xf32> -> vector<128x16xf32>
    %233 = arith.truncf %232 : vector<128x16xf32> to vector<128x16xbf16>
    %c3_104 = arith.constant 3 : index
    %c0_105 = arith.constant 0 : index
    %c0_106 = arith.constant 0 : index
    %234 = vector.load %arg3[%c3_104, %c0_105, %c0_106] : memref<4x16x32xbf16, #tpu.memory_space<vmem>>, vector<1x16x32xbf16>
    %235 = vector.shape_cast %234 : vector<1x16x32xbf16> to vector<16x32xbf16>
    %cst_107 = arith.constant dense<0.000000e+00> : vector<128x32xf32>
    %236 = tpu.matmul %233, %235, %cst_107 {dimension_numbers = #tpu.dot_dimension_numbers<[1], [0], [0], [1], [0, 0, 1, 1], [], []>} : vector<128x16xbf16>, vector<16x32xbf16>, vector<128x32xf32> -> vector<128x32xf32>
    %237 = arith.addf %206, %236 : vector<128x32xf32>
    %238 = arith.addf %142, %237 : vector<128x32xf32>
    %239 = vector.broadcast %147 : vector<1x32xf32> to vector<128x32xf32>
    %240 = arith.addf %238, %239 : vector<128x32xf32>
    %cst_108 = arith.constant dense<0.000000e+00> : vector<128xf32>
    %241 = vector.multi_reduction <add>, %240, %cst_108 [1] : vector<128x32xf32> to vector<128xf32>
    %242 = vector.shape_cast %241 : vector<128xf32> to vector<128x1xf32>
    %cst_109 = arith.constant 3.200000e+01 : f32
    %243 = vector.broadcast %cst_109 : f32 to vector<128x1xf32>
    %244 = arith.divf %242, %243 : vector<128x1xf32>
    %245 = vector.broadcast %244 : vector<128x1xf32> to vector<128x32xf32>
    %246 = arith.subf %240, %245 : vector<128x32xf32>
    %247 = arith.mulf %246, %246 : vector<128x32xf32>
    %cst_110 = arith.constant dense<0.000000e+00> : vector<128xf32>
    %248 = vector.multi_reduction <add>, %247, %cst_110 [1] : vector<128x32xf32> to vector<128xf32>
    %249 = vector.shape_cast %248 : vector<128xf32> to vector<128x1xf32>
    %cst_111 = arith.constant 3.200000e+01 : f32
    %250 = vector.broadcast %cst_111 : f32 to vector<128x1xf32>
    %251 = arith.divf %249, %250 : vector<128x1xf32>
    %252 = vector.broadcast %244 : vector<128x1xf32> to vector<128x32xf32>
    %253 = arith.subf %240, %252 : vector<128x32xf32>
    %cst_112 = arith.constant 9.99999974E-6 : f32
    %254 = vector.broadcast %cst_112 : f32 to vector<128x1xf32>
    %255 = arith.addf %251, %254 : vector<128x1xf32>
    %256 = math.rsqrt %255 : vector<128x1xf32>
    %257 = vector.broadcast %256 : vector<128x1xf32> to vector<128x32xf32>
    %258 = arith.mulf %253, %257 : vector<128x32xf32>
    %259 = vector.broadcast %148 : vector<1x32xf32> to vector<128x32xf32>
    %260 = arith.mulf %258, %259 : vector<128x32xf32>
    %261 = vector.broadcast %149 : vector<1x32xf32> to vector<128x32xf32>
    %262 = arith.addf %260, %261 : vector<128x32xf32>
    %263 = arith.truncf %262 : vector<128x32xf32> to vector<128x32xbf16>
    %c1_113 = arith.constant 1 : index
    %c0_114 = arith.constant 0 : index
    %c0_115 = arith.constant 0 : index
    %264 = vector.load %arg4[%c1_113, %c0_114, %c0_115] : memref<2x32x128xbf16, #tpu.memory_space<vmem>>, vector<1x32x128xbf16>
    %265 = vector.shape_cast %264 : vector<1x32x128xbf16> to vector<32x128xbf16>
    %cst_116 = arith.constant dense<0.000000e+00> : vector<128x128xf32>
    %266 = tpu.matmul %263, %265, %cst_116 {dimension_numbers = #tpu.dot_dimension_numbers<[1], [0], [0], [1], [0, 0, 1, 1], [], []>} : vector<128x32xbf16>, vector<32x128xbf16>, vector<128x128xf32> -> vector<128x128xf32>
    %267 = vector.broadcast %151 : vector<1x128xf32> to vector<128x128xf32>
    %268 = arith.addf %266, %267 : vector<128x128xf32>
    %cst_117 = arith.constant 5.000000e-01 : f32
    %269 = vector.broadcast %cst_117 : f32 to vector<128x128xf32>
    %270 = arith.mulf %269, %268 : vector<128x128xf32>
    %cst_118 = arith.constant 0.707106769 : f32
    %271 = vector.broadcast %cst_118 : f32 to vector<128x128xf32>
    %272 = arith.mulf %268, %271 : vector<128x128xf32>
    %273 = math.erf %272 : vector<128x128xf32>
    %cst_119 = arith.constant 1.000000e+00 : f32
    %274 = vector.broadcast %cst_119 : f32 to vector<128x128xf32>
    %275 = arith.addf %274, %273 : vector<128x128xf32>
    %276 = arith.mulf %270, %275 : vector<128x128xf32>
    %277 = arith.truncf %276 : vector<128x128xf32> to vector<128x128xbf16>
    %c1_120 = arith.constant 1 : index
    %c0_121 = arith.constant 0 : index
    %c0_122 = arith.constant 0 : index
    %278 = vector.load %arg5[%c1_120, %c0_121, %c0_122] : memref<2x128x32xbf16, #tpu.memory_space<vmem>>, vector<1x128x32xbf16>
    %279 = vector.shape_cast %278 : vector<1x128x32xbf16> to vector<128x32xbf16>
    %cst_123 = arith.constant dense<0.000000e+00> : vector<128x32xf32>
    %280 = tpu.matmul %277, %279, %cst_123 {dimension_numbers = #tpu.dot_dimension_numbers<[1], [0], [0], [1], [0, 0, 1, 1], [], []>} : vector<128x128xbf16>, vector<128x32xbf16>, vector<128x32xf32> -> vector<128x32xf32>
    %281 = vector.broadcast %150 : vector<1x32xf32> to vector<128x32xf32>
    %282 = arith.addf %280, %281 : vector<128x32xf32>
    %283 = arith.addf %240, %282 : vector<128x32xf32>
    %c0_124 = arith.constant 0 : index
    %c0_125 = arith.constant 0 : index
    %c0_126 = arith.constant 0 : index
    %284 = vector.load %arg8[%c0_124, %c0_125, %c0_126] : memref<1x128x32xf32, #tpu.memory_space<vmem>>, vector<1x128x32xf32>
    %285 = vector.shape_cast %284 : vector<1x128x32xf32> to vector<128x32xf32>
    %286 = vector.shape_cast %283 : vector<128x32xf32> to vector<1x128x32xf32>
    tpu.vector_store %arg8[%c0_124, %c0_125, %c0_126], %286 {strides = array<i32>} : memref<1x128x32xf32, #tpu.memory_space<vmem>>, vector<1x128x32xf32>,
    return
  }
  func.func @transform_0(%arg0: i32) -> (i32, i32, i32) {
    %c0_i32 = arith.constant 0 : i32
    %c0_i32_0 = arith.constant 0 : i32
    %c0_i32_1 = arith.constant 0 : i32
    return %arg0, %c0_i32, %c0_i32_0 : i32, i32, i32
  }
  func.func @transform_1(%arg0: i32) -> (i32, i32, i32) {
    %c0_i32 = arith.constant 0 : i32
    %c0_i32_0 = arith.constant 0 : i32
    %c0_i32_1 = arith.constant 0 : i32
    %c0_i32_2 = arith.constant 0 : i32
    return %c0_i32, %c0_i32_0, %c0_i32_1 : i32, i32, i32
  }
  func.func @transform_2(%arg0: i32) -> (i32, i32, i32) {
    %c0_i32 = arith.constant 0 : i32
    %c0_i32_0 = arith.constant 0 : i32
    %c0_i32_1 = arith.constant 0 : i32
    %c0_i32_2 = arith.constant 0 : i32
    return %c0_i32, %c0_i32_0, %c0_i32_1 : i32, i32, i32
  }
  func.func @transform_3(%arg0: i32) -> (i32, i32, i32) {
    %c0_i32 = arith.constant 0 : i32
    %c0_i32_0 = arith.constant 0 : i32
    %c0_i32_1 = arith.constant 0 : i32
    %c0_i32_2 = arith.constant 0 : i32
    return %c0_i32, %c0_i32_0, %c0_i32_1 : i32, i32, i32
  }
  func.func @transform_4(%arg0: i32) -> (i32, i32, i32) {
    %c0_i32 = arith.constant 0 : i32
    %c0_i32_0 = arith.constant 0 : i32
    %c0_i32_1 = arith.constant 0 : i32
    %c0_i32_2 = arith.constant 0 : i32
    return %c0_i32, %c0_i32_0, %c0_i32_1 : i32, i32, i32
  }
  func.func @transform_5(%arg0: i32) -> (i32, i32, i32) {
    %c0_i32 = arith.constant 0 : i32
    %c0_i32_0 = arith.constant 0 : i32
    %c0_i32_1 = arith.constant 0 : i32
    %c0_i32_2 = arith.constant 0 : i32
    return %c0_i32, %c0_i32_0, %c0_i32_1 : i32, i32, i32
  }
  func.func @transform_6(%arg0: i32) -> (i32, i32, i32) {
    %c0_i32 = arith.constant 0 : i32
    %c0_i32_0 = arith.constant 0 : i32
    %c0_i32_1 = arith.constant 0 : i32
    %c0_i32_2 = arith.constant 0 : i32
    return %c0_i32, %c0_i32_0, %c0_i32_1 : i32, i32, i32
  }
  func.func @transform_7(%arg0: i32) -> (i32, i32, i32) {
    %c0_i32 = arith.constant 0 : i32
    %c0_i32_0 = arith.constant 0 : i32
    %c0_i32_1 = arith.constant 0 : i32
    return %arg0, %c0_i32, %c0_i32_0 : i32, i32, i32
  }
}

</mosaic_0001>

<bundles_post_ra>
// kernel: stage_module_forward.1
= control target key start
LH: loop header
LB: loop body
LE: loop exit
PB: predicated region body
PF: predicated region fallthrough
CT: control target
= control target key end

     0   :  { %vm61_vm0 = vcmask 261120   ;;  %s10180_s0 = inlined_call_operand.vmem [shape: f32[1,128,32], index: 0, kind: input, shape index: {}]   ;;  %s10181_s1 = inlined_call_operand.vmem [shape: bf16[12,32,16], index: 1, kind: input, shape index: {}]   ;;  %s10182_s2 = inlined_call_operand.vmem [shape: bf16[4,16,32], index: 2, kind: input, shape index: {}]   ;;  %s10183_s3 = inlined_call_operand.vmem [shape: bf16[2,32,128], index: 3, kind: input, shape index: {}]   ;;  %s10184_s4 = inlined_call_operand.vmem [shape: bf16[2,128,32], index: 4, kind: input, shape index: {}]   ;;  %s10185_s5 = inlined_call_operand.vmem [shape: f32[2,7,128], index: 5, kind: input, shape index: {}]   ;;  %s10186_s6 = inlined_call_operand.vmem [shape: f32[2,128,128], index: 6, kind: input, shape index: {}]   ;;  %s10187_s7 = inlined_call_operand.hbm [shape: f32[1,128,32], index: 7, kind: output, shape index: {}]  }
   0x1   :  { %v28_v0 = vld [vmem:[%s10180_s0] sm:$0xff]  ;;  %v30_v1 = vld [vmem:[%s10180_s0 + $0x10] sm:$0xff]  ;;  %v29_v2 = vld [vmem:[%s10180_s0 + $0x8] sm:$0xff] }
   0x2   :  { %v62_v3 = vsel %vm61_vm0, %v28_v0, 0.0  ;;  %v68_v4 = vsel %vm61_vm0, %v30_v1, 0.0  ;;  %v31_v5 = vld [vmem:[%s10180_s0 + $0x18] sm:$0xff]  ;;  %v7623_v6 = vld [vmem:[%s10180_s0 + $0x20] sm:$0xff]  ;;  %v7628_v7 = vld [vmem:[%s10180_s0 + $0x28] sm:$0xff]  ;;  %v65_v8 = vsel %vm61_vm0, %v29_v2, 0.0 }
   0x3   :  { %63 = vadd.xlane.f32.xlu0 %v62_v3  ;;  %69 = vadd.xlane.f32.xlu1 %v68_v4  ;;  %v71_v9 = vsel %vm61_vm0, %v31_v5, 0.0  ;;  %v74_v10 = vsel %vm61_vm0, %v7623_v6, 0.0  ;;  %v7637_v11 = vld [vmem:[%s10180_s0 + $0x30] sm:$0xff]  ;;  %v7642_v12 = vld [vmem:[%s10180_s0 + $0x38] sm:$0xff]  ;;  %v7647_v13 = vld [vmem:[%s10180_s0 + $0x40] sm:$0xff]  ;;  %v77_v14 = vsel %vm61_vm0, %v7628_v7, 0.0 }
   0x4   :  { %v80_v15 = vsel %vm61_vm0, %v7637_v11, 0.0  ;;  %v83_v16 = vsel %vm61_vm0, %v7642_v12, 0.0  ;;  %v7658_v17 = vld [vmem:[%s10180_s0 + $0x48] sm:$0xff]  ;;  %v7663_v18 = vld [vmem:[%s10180_s0 + $0x50] sm:$0xff]  ;;  %v7668_v19 = vld [vmem:[%s10180_s0 + $0x58] sm:$0xff]  ;;  %v86_v20 = vsel %vm61_vm0, %v7647_v13, 0.0 }
   0x5   :  { %v89_v21 = vsel %vm61_vm0, %v7658_v17, 0.0  ;;  %v92_v22 = vsel %vm61_vm0, %v7663_v18, 0.0  ;;  %v7679_v23 = vld [vmem:[%s10180_s0 + $0x60] sm:$0xff]  ;;  %v7684_v24 = vld [vmem:[%s10180_s0 + $0x68] sm:$0xff]  ;;  %v7689_v25 = vld [vmem:[%s10180_s0 + $0x70] sm:$0xff]  ;;  %v95_v26 = vsel %vm61_vm0, %v7668_v19, 0.0 }
   0x6   :  { %v98_v27 = vsel %vm61_vm0, %v7679_v23, 0.0  ;;  %v101_v28 = vsel %vm61_vm0, %v7684_v24, 0.0  ;;  %v7700_v29 = vld [vmem:[%s10180_s0 + $0x78] sm:$0xff]  ;;  %v104_v30 = vsel %vm61_vm0, %v7689_v25, 0.0 }
   0x7   :  { %66 = vadd.xlane.f32.xlu0 %v65_v8  ;;  %72 = vadd.xlane.f32.xlu1 %v71_v9  ;;  %v107_v31 = vsel %vm61_vm0, %v7700_v29, 0.0 }
   0xb   :  { %75 = vadd.xlane.f32.xlu0 %v74_v10  ;;  %78 = vadd.xlane.f32.xlu1 %v77_v14 }
   0xf   :  { %81 = vadd.xlane.f32.xlu0 %v80_v15  ;;  %84 = vadd.xlane.f32.xlu1 %v83_v16 }
  0x13   :  { %87 = vadd.xlane.f32.xlu0 %v86_v20  ;;  %90 = vadd.xlane.f32.xlu1 %v89_v21 }
  0x17   :  { %93 = vadd.xlane.f32.xlu0 %v92_v22  ;;  %96 = vadd.xlane.f32.xlu1 %v95_v26 }
  0x1b   :  { %99 = vadd.xlane.f32.xlu0 %v98_v27  ;;  %102 = vadd.xlane.f32.xlu1 %v101_v28 }
  0x1f   :  { %105 = vadd.xlane.f32.xlu0 %v104_v30  ;;  %108 = vadd.xlane.f32.xlu1 %v107_v31 }
  0x20   :  { %12 = vsyncpa [#allocation3], 0  ;;  %vm700_vm1 = vcmask 130048  }
  0x8c   :  { %v64_v32 = vpop.xlane.xlu0 %63  ;;  %v70_v33 = vpop.xlane.xlu1 %69 }
  0x8d   :  { %v111_v34 = vmul.f32 0.03125, %v64_v32  ;;  %v113_v35 = vmul.f32 0.03125, %v70_v33 }
  0x8f   :  { %v7706_v36 = vsub.f32 %v28_v0, %v111_v34  ;;  %v7708_v37 = vsub.f32 %v30_v1, %v113_v35 }
  0x90   :  { %v67_v38 = vpop.xlane.xlu0 %66  ;;  %v73_v39 = vpop.xlane.xlu1 %72 }
  0x91   :  { %v112_v40 = vmul.f32 0.03125, %v67_v38  ;;  %v114_v41 = vmul.f32 0.03125, %v73_v39  ;;  %v143_v42 = vmul.f32 %v7706_v36, %v7706_v36  ;;  %v145_v43 = vmul.f32 %v7708_v37, %v7708_v37 }
  0x93   :  { %v7714_v44 = vsub.f32 %v29_v2, %v112_v40  ;;  %v7716_v45 = vsub.f32 %v31_v5, %v114_v41  ;;  %v159_v46 = vsel %vm61_vm0, %v143_v42, 0.0  ;;  %v165_v49 = vsel %vm61_vm0, %v145_v43, 0.0 }
  0x94   :  { %160 = vadd.xlane.f32.xlu0 %v159_v46  ;;  %v76_v47 = vpop.xlane.xlu0 %75  ;;  %v79_v48 = vpop.xlane.xlu1 %78 }
  0x95   :  { %v115_v50 = vmul.f32 0.03125, %v76_v47  ;;  %v116_v51 = vmul.f32 0.03125, %v79_v48  ;;  %v144_v52 = vmul.f32 %v7714_v44, %v7714_v44  ;;  %v146_v53 = vmul.f32 %v7716_v45, %v7716_v45 }
  0x97   :  { %v7725_v54 = vsub.f32 %v7623_v6, %v115_v50  ;;  %v7728_v55 = vsub.f32 %v7628_v7, %v116_v51  ;;  %v162_v56 = vsel %vm61_vm0, %v144_v52, 0.0  ;;  %v168_v59 = vsel %vm61_vm0, %v146_v53, 0.0  ;;  %v7026_v53 = vld [vmem:[%s10181_s1 + $0x28] sm:$0xff]  }
  0x98   :  { %166 = vadd.xlane.f32.xlu0 %v165_v49  ;;  %163 = vadd.xlane.f32.xlu1 %v162_v56  ;;  %v82_v57 = vpop.xlane.xlu0 %81  ;;  %v85_v58 = vpop.xlane.xlu1 %84  ;;  %v7027_v56 = vld [vmem:[%s10181_s1] sm:$0xff]  }
  0x99   :  { %v117_v60 = vmul.f32 0.03125, %v82_v57  ;;  %v118_v61 = vmul.f32 0.03125, %v85_v58  ;;  %v147_v62 = vmul.f32 %v7725_v54, %v7725_v54  ;;  %v148_v63 = vmul.f32 %v7728_v55, %v7728_v55  ;;  %6338 = vmatprep.subr.bf16.mxu1 %v7026_v53  ;;  %v7028_v57 = vld [vmem:[%s10181_s1 + $0x20] sm:$0xff]   ;;  %v7813_v58 = vld [vmem:[%s10181_s1 + $0x48] sm:$0xff]  }
  0x9a   :  { %6339 = vmatpush3.bf16.msra.mxu1 %v7026_v53 }
  0x9b   :  { %v7737_v0 = vsub.f32 %v7637_v11, %v117_v60  ;;  %v7740_v1 = vsub.f32 %v7642_v12, %v118_v61  ;;  %v171_v2 = vsel %vm61_vm0, %v147_v62, 0.0  ;;  %v174_v5 = vsel %vm61_vm0, %v148_v63, 0.0  ;;  %6340 = vmatprep.subr.bf16.mxu1 %v7028_v57 }
  0x9c   :  { %169 = vadd.xlane.f32.xlu1 %v168_v59  ;;  %172 = vadd.xlane.f32.xlu0 %v171_v2  ;;  %v88_v3 = vpop.xlane.xlu0 %87  ;;  %v91_v4 = vpop.xlane.xlu1 %90 }
  0x9d   :  { %v119_v6 = vmul.f32 0.03125, %v88_v3  ;;  %v120_v7 = vmul.f32 0.03125, %v91_v4  ;;  %v149_v8 = vmul.f32 %v7737_v0, %v7737_v0  ;;  %v150_v9 = vmul.f32 %v7740_v1, %v7740_v1 }
  0x9e   :  { %6341 = vmatpush3.bf16.msra.mxu1 %v7028_v57 }
  0x9f   :  { %v7749_v10 = vsub.f32 %v7647_v13, %v119_v6  ;;  %v7752_v11 = vsub.f32 %v7658_v17, %v120_v7  ;;  %v177_v12 = vsel %vm61_vm0, %v149_v8, 0.0  ;;  %v180_v16 = vsel %vm61_vm0, %v150_v9, 0.0 }
  0xa0   :  { %175 = vadd.xlane.f32.xlu1 %v174_v5  ;;  %178 = vadd.xlane.f32.xlu0 %v177_v12  ;;  %v94_v14 = vpop.xlane.xlu0 %93  ;;  %v97_v15 = vpop.xlane.xlu1 %96  ;;  %v271_v6 = vlaneseq }
  0xa1   :  { %v121_v20 = vmul.f32 0.03125, %v94_v14  ;;  %v122_v21 = vmul.f32 0.03125, %v97_v15  ;;  %v151_v22 = vmul.f32 %v7749_v10, %v7749_v10  ;;  %v152_v13 = vmul.f32 %v7752_v11, %v7752_v11 }
  0xa3   :  { %v7761_v26 = vsub.f32 %v7663_v18, %v121_v20  ;;  %v7764_v17 = vsub.f32 %v7668_v19, %v122_v21  ;;  %v183_v27 = vsel %vm61_vm0, %v151_v22, 0.0  ;;  %v186_v31 = vsel %vm61_vm0, %v152_v13, 0.0 }
  0xa4   :  { %181 = vadd.xlane.f32.xlu1 %v180_v16  ;;  %184 = vadd.xlane.f32.xlu0 %v183_v27  ;;  %v100_v28 = vpop.xlane.xlu0 %99  ;;  %v103_v30 = vpop.xlane.xlu1 %102  ;;  %v7816_v16 = vshrl.u32 %v271_v6, 7 }
  0xa5   :  { %v123_v32 = vmul.f32 0.03125, %v100_v28  ;;  %v124_v33 = vmul.f32 0.03125, %v103_v30  ;;  %v153_v34 = vmul.f32 %v7761_v26, %v7761_v26  ;;  %v154_v18 = vmul.f32 %v7764_v17, %v7764_v17 }
  0xa6   :  { %v273_v30 = vsub.s32 0, %v7816_v16 }
  0xa7   :  { %v7773_v35 = vsub.f32 %v7679_v23, %v123_v32  ;;  %v7776_v19 = vsub.f32 %v7684_v24, %v124_v33  ;;  %v189_v38 = vsel %vm61_vm0, %v153_v34, 0.0  ;;  %v192_v41 = vsel %vm61_vm0, %v154_v18, 0.0  ;;  %v44_v33 = vld [vmem:[%s10185_s5] sm:$0x7f] }
  0xa8   :  { %187 = vadd.xlane.f32.xlu1 %v186_v31  ;;  %190 = vadd.xlane.f32.xlu0 %v189_v38  ;;  %v106_v39 = vpop.xlane.xlu0 %105  ;;  %v109_v40 = vpop.xlane.xlu1 %108 }
  0xa9   :  { %v125_v42 = vmul.f32 0.03125, %v106_v39  ;;  %v126_v43 = vmul.f32 0.03125, %v109_v40  ;;  %v155_v46 = vmul.f32 %v7773_v35, %v7773_v35  ;;  %v156_v23 = vmul.f32 %v7776_v19, %v7776_v19 }
  0xab   :  { %v7785_v47 = vsub.f32 %v7689_v25, %v125_v42  ;;  %v7788_v24 = vsub.f32 %v7700_v29, %v126_v43  ;;  %v195_v48 = vsel %vm61_vm0, %v155_v46, 0.0  ;;  %v198_v49 = vsel %vm61_vm0, %v156_v23, 0.0  ;;  %v7025_v29 = vld [vmem:[%s10181_s1 + $0x8] sm:$0xff]  }
  0xac   :  { %193 = vadd.xlane.f32.xlu1 %v192_v41  ;;  %196 = vadd.xlane.f32.xlu0 %v195_v48  ;;  %v7824_v41 = vrot.slane %v44_v33, %v273_v30  ;;  %v10188_v23 = vsub.s32 1, %v7816_v16 }
  0xad   :  { %v157_v50 = vmul.f32 %v7785_v47, %v7785_v47  ;;  %v158_v51 = vmul.f32 %v7788_v24, %v7788_v24  ;;  %6318 = vmatprep.subr.bf16.mxu0 %v7025_v29 }
  0xae   :  { %6319 = vmatpush3.bf16.msra.mxu0 %v7025_v29 }
  0xaf   :  { %v201_v52 = vsel %vm61_vm0, %v157_v50, 0.0  ;;  %v204_v25 = vsel %vm61_vm0, %v158_v51, 0.0  ;;  %6320 = vmatprep.subr.bf16.mxu0 %v7027_v56 }
  0xb0   :  { %199 = vadd.xlane.f32.xlu1 %v198_v49  ;;  %202 = vadd.xlane.f32.xlu0 %v201_v52 }
  0xb2   :  { %6321 = vmatpush3.bf16.msra.mxu0 %v7027_v56 }
  0xb3   :  { %6358 = vmatprep.subr.bf16.mxu0 %v7813_v58 }
  0xb4   :  { %205 = vadd.xlane.f32.xlu1 %v204_v25 }
 0x11d   :  { %v161_v59 = vpop.xlane.xlu0 %160 }
 0x11e   :  { %v207_v60 = vmul.f32 0.03125, %v161_v59  ;;  %v7833_v59 = vrot.slane %v44_v33, %v10188_v23 }
 0x120   :  { %v223_v61 = vadd.f32 1e-05, %v207_v60 }
 0x121   :  { %v164_v62 = vpop.xlane.xlu1 %163  ;;  %v167_v63 = vpop.xlane.xlu0 %166 }
 0x122   :  { %7073 = vrsqrt.f32 %v223_v61  ;;  %v208_v2 = vmul.f32 0.03125, %v164_v62  ;;  %v209_v3 = vmul.f32 0.03125, %v167_v63 }
 0x124   :  { %v224_v4 = vadd.f32 1e-05, %v208_v2  ;;  %v225_v5 = vadd.f32 1e-05, %v209_v3 }
 0x125   :  { %v170_v7 = vpop.xlane.xlu1 %169  ;;  %v173_v8 = vpop.xlane.xlu0 %172 }
 0x126   :  { %7075 = vrsqrt.f32 %v224_v4  ;;  %v210_v9 = vmul.f32 0.03125, %v170_v7  ;;  %v211_v12 = vmul.f32 0.03125, %v173_v8 }
 0x127   :  { %7077 = vrsqrt.f32 %v225_v5 }
 0x128   :  { %v226_v14 = vadd.f32 1e-05, %v210_v9  ;;  %v227_v15 = vadd.f32 1e-05, %v211_v12 }
 0x129   :  { %v176_v20 = vpop.xlane.xlu1 %175  ;;  %v179_v21 = vpop.xlane.xlu0 %178 }
 0x12a   :  { %7079 = vrsqrt.f32 %v226_v14  ;;  %v212_v22 = vmul.f32 0.03125, %v176_v20  ;;  %v213_v13 = vmul.f32 0.03125, %v179_v21 }
 0x12b   :  { %7081 = vrsqrt.f32 %v227_v15 }
 0x12c   :  { %v228_v27 = vadd.f32 1e-05, %v212_v22  ;;  %v229_v28 = vadd.f32 1e-05, %v213_v13 }
 0x12d   :  { %v182_v31 = vpop.xlane.xlu1 %181  ;;  %v185_v32 = vpop.xlane.xlu0 %184 }
 0x12e   :  { %7083 = vrsqrt.f32 %v228_v27  ;;  %v214_v34 = vmul.f32 0.03125, %v182_v31  ;;  %v215_v18 = vmul.f32 0.03125, %v185_v32 }
 0x12f   :  { %v7074_v38 = vpop.eup %7073  ;;  %7085 = vrsqrt.f32 %v229_v28 }
 0x130   :  { %v230_v39 = vadd.f32 1e-05, %v214_v34  ;;  %v231_v40 = vadd.f32 1e-05, %v215_v18  ;;  %v255_v42 = vmul.f32 %v7074_v38, %v7706_v36 }
 0x131   :  { %v188_v43 = vpop.xlane.xlu1 %187  ;;  %v191_v46 = vpop.xlane.xlu0 %190 }
 0x132   :  { %7087 = vrsqrt.f32 %v230_v39  ;;  %v216_v48 = vmul.f32 0.03125, %v188_v43  ;;  %v217_v49 = vmul.f32 0.03125, %v191_v46  ;;  %v275_v53 = vmul.f32 %v7824_v41, %v255_v42 }
 0x133   :  { %v7076_v50 = vpop.eup %7075  ;;  %7089 = vrsqrt.f32 %v231_v40 }
 0x134   :  { %v7078_v51 = vpop.eup %7077  ;;  %v256_v52 = vmul.f32 %v7076_v50, %v7714_v44  ;;  %v232_v25 = vadd.f32 1e-05, %v216_v48  ;;  %v233_v29 = vadd.f32 1e-05, %v217_v49  ;;  %v295_v9 = vadd.f32 %v7833_v59, %v275_v53 }
 0x135   :  { %v257_v56 = vmul.f32 %v7078_v51, %v7708_v37  ;;  %v194_v57 = vpop.xlane.xlu1 %193  ;;  %v197_v36 = vpop.xlane.xlu0 %196 }
 0x136   :  { %v276_v60 = vmul.f32 %v7824_v41, %v256_v52  ;;  %7091 = vrsqrt.f32 %v232_v25  ;;  %v218_v61 = vmul.f32 0.03125, %v194_v57  ;;  %v219_v62 = vmul.f32 0.03125, %v197_v36 }
 0x137   :  { %v7080_v63 = vpop.eup %7079  ;;  %v277_v44 = vmul.f32 %v7824_v41, %v257_v56  ;;  %7093 = vrsqrt.f32 %v233_v29 }
 0x138   :  { %v7082_v2 = vpop.eup %7081  ;;  %v258_v3 = vmul.f32 %v7080_v63, %v7716_v45  ;;  %v234_v4 = vadd.f32 1e-05, %v218_v61  ;;  %v235_v37 = vadd.f32 1e-05, %v219_v62  ;;  %v296_v5 = vadd.f32 %v7833_v59, %v276_v60 }
 0x139   :  { %v259_v6 = vmul.f32 %v7082_v2, %v7725_v54  ;;  %v200_v7 = vpop.xlane.xlu1 %199  ;;  %v203_v8 = vpop.xlane.xlu0 %202  ;;  %v297_v22 = vadd.f32 %v7833_v59, %v277_v44 }
 0x13a   :  { %v278_v12 = vmul.f32 %v7824_v41, %v258_v3  ;;  %7095 = vrsqrt.f32 %v234_v4  ;;  %v220_v14 = vmul.f32 0.03125, %v200_v7  ;;  %v221_v15 = vmul.f32 0.03125, %v203_v8 }
 0x13b   :  { %v7084_v20 = vpop.eup %7083  ;;  %v279_v21 = vmul.f32 %v7824_v41, %v259_v6  ;;  %7097 = vrsqrt.f32 %v235_v37  ;;  %v7843_v45 = vpack.c.bf16 %v296_v5, %v295_v9 }
 0x13c   :  { %v7086_v13 = vpop.eup %7085  ;;  %v260_v54 = vmul.f32 %v7084_v20, %v7728_v55  ;;  %v236_v27 = vadd.f32 1e-05, %v220_v14  ;;  %v237_v28 = vadd.f32 1e-05, %v221_v15  ;;  %v298_v31 = vadd.f32 %v7833_v59, %v278_v12  ;;  %v7030_v55 = vld [vmem:[%s10181_s1 + $0x40] sm:$0xff]  }
 0x13d   :  { %v261_v32 = vmul.f32 %v7086_v13, %v7737_v0  ;;  %6322 = vmatprep.mubr.msk.bf16.mxu0 %vm61_vm0, %v7843_v45  ;;  %6342 = vmatprep.mubr.msk.bf16.mxu1 %vm61_vm0, %v7843_v45  ;;  %v206_v33 = vpop.xlane.xlu1 %205  ;;  %v299_v0 = vadd.f32 %v7833_v59, %v279_v21 }
 0x13e   :  { %v280_v34 = vmul.f32 %v7824_v41, %v260_v54  ;;  %7099 = vrsqrt.f32 %v236_v27  ;;  %v222_v18 = vmul.f32 0.03125, %v206_v33  ;;  %v7854_v38 = vpack.c.bf16 %v298_v31, %v297_v22 }
 0x13f   :  { %v7088_v39 = vpop.eup %7087  ;;  %7101 = vrsqrt.f32 %v237_v28  ;;  %v281_v42 = vmul.f32 %v7824_v41, %v261_v32 }
 0x140   :  { %v7090_v40 = vpop.eup %7089  ;;  %v262_v43 = vmul.f32 %v7088_v39, %v7740_v1  ;;  %v238_v46 = vadd.f32 1e-05, %v222_v18  ;;  %6323 = vmatmul.mubr.msk.bf16.vlgmr.msra.gmra.mxu0 %vm61_vm0, %v7854_v38  ;;  %6343 = vmatmul.mubr.msk.bf16.vlgmr.msra.gmra.mxu1 %vm61_vm0, %v7854_v38  ;;  %v300_v48 = vadd.f32 %v7833_v59, %v280_v34 }
 0x141   :  { %v263_v49 = vmul.f32 %v7090_v40, %v7749_v10  ;;  %6359 = vmatpush3.bf16.msra.mxu0 %v7813_v58  ;;  %v301_v10 = vadd.f32 %v7833_v59, %v281_v42 }
 0x142   :  { %v282_v50 = vmul.f32 %v7824_v41, %v262_v43  ;;  %7103 = vrsqrt.f32 %v238_v46  ;;  %v7870_v51 = vpack.c.bf16 %v300_v48, %v299_v0  ;;  %6360 = vmatprep.subr.bf16.mxu0 %v7030_v55 }
 0x143   :  { %v7092_v1 = vpop.eup %7091  ;;  %v283_v52 = vmul.f32 %v7824_v41, %v263_v49 }
 0x144   :  { %v7094_v25 = vpop.eup %7093  ;;  %v264_v29 = vmul.f32 %v7092_v1, %v7752_v11  ;;  %6326 = vmatprep.mubr.msk.bf16.mxu0 %vm61_vm0, %v7870_v51  ;;  %6346 = vmatprep.mubr.msk.bf16.mxu1 %vm61_vm0, %v7870_v51  ;;  %v302_v58 = vadd.f32 %v7833_v59, %v282_v50 }
 0x145   :  { %v265_v53 = vmul.f32 %v7094_v25, %v7761_v26  ;;  %6361 = vmatpush3.bf16.msra.mxu0 %v7030_v55  ;;  %v303_v11 = vadd.f32 %v7833_v59, %v283_v52 }
 0x146   :  { %v284_v56 = vmul.f32 %v7824_v41, %v264_v29  ;;  %v7882_v57 = vpack.c.bf16 %v302_v58, %v301_v10 }
 0x147   :  { %v7096_v36 = vpop.eup %7095  ;;  %v285_v61 = vmul.f32 %v7824_v41, %v265_v53 }
 0x148   :  { %v7098_v60 = vpop.eup %7097  ;;  %v266_v62 = vmul.f32 %v7096_v36, %v7764_v17  ;;  %6327 = vmatmul.mubr.msk.bf16.gmra.mxu0 %vm61_vm0, %v7882_v57  ;;  %6347 = vmatmul.mubr.msk.bf16.gmra.mxu1 %vm61_vm0, %v7882_v57  ;;  %v304_v26 = vadd.f32 %v7833_v59, %v284_v56 }
 0x149   :  { %v267_v63 = vmul.f32 %v7098_v60, %v7773_v35  ;;  %v305_v5 = vadd.f32 %v7833_v59, %v285_v61 }
 0x14a   :  { %v286_v44 = vmul.f32 %v7824_v41, %v266_v62  ;;  %v7894_v2 = vpack.c.bf16 %v304_v26, %v303_v11 }
 0x14b   :  { %v7100_v3 = vpop.eup %7099  ;;  %v287_v4 = vmul.f32 %v7824_v41, %v267_v63 }
 0x14c   :  { %v7102_v37 = vpop.eup %7101  ;;  %v268_v17 = vmul.f32 %v7100_v3, %v7776_v19  ;;  %6330 = vmatprep.mubr.msk.bf16.mxu0 %vm61_vm0, %v7894_v2  ;;  %6350 = vmatprep.mubr.msk.bf16.mxu1 %vm61_vm0, %v7894_v2  ;;  %v306_v35 = vadd.f32 %v7833_v59, %v286_v44 }
 0x14d   :  { %v269_v6 = vmul.f32 %v7102_v37, %v7785_v47  ;;  %v307_v12 = vadd.f32 %v7833_v59, %v287_v4 }
 0x14e   :  { %v288_v7 = vmul.f32 %v7824_v41, %v268_v17  ;;  %v7906_v8 = vpack.c.bf16 %v306_v35, %v305_v5 }
 0x14f   :  { %v7104_v9 = vpop.eup %7103  ;;  %v289_v19 = vmul.f32 %v7824_v41, %v269_v6 }
 0x150   :  { %v270_v14 = vmul.f32 %v7104_v9, %v7788_v24  ;;  %6331 = vmatmul.mubr.msk.bf16.gmra.mxu0 %vm61_vm0, %v7906_v8  ;;  %6351 = vmatmul.mubr.msk.bf16.gmra.mxu1 %vm61_vm0, %v7906_v8  ;;  %v308_v15 = vadd.f32 %v7833_v59, %v288_v7 }
 0x151   :  { %v309_v24 = vadd.f32 %v7833_v59, %v289_v19 }
 0x152   :  { %v290_v47 = vmul.f32 %v7824_v41, %v270_v14  ;;  %v7917_v20 = vpack.c.bf16 %v308_v15, %v307_v12 }
 0x154   :  { %6334 = vmatprep.mubr.msk.bf16.mxu0 %vm61_vm0, %v7917_v20  ;;  %6354 = vmatprep.mubr.msk.bf16.mxu1 %vm61_vm0, %v7917_v20  ;;  %v310_v21 = vadd.f32 %v7833_v59, %v290_v47 }
 0x156   :  { %v7925_v22 = vpack.c.bf16 %v310_v21, %v309_v24 }
 0x158   :  { %6335 = vmatmul.mubr.msk.bf16.gmra.mxu0 %vm61_vm0, %v7925_v22  ;;  %6355 = vmatmul.mubr.msk.bf16.gmra.mxu1 %vm61_vm0, %v7925_v22 }
 0x159   :  { %6362 = vmatprep.mubr.msk.bf16.mxu0 %vm61_vm0, %v7843_v45 }
 0x160   :  { %6363 = vmatmul.mubr.msk.bf16.vlgmr.msra.gmra.mxu0 %vm61_vm0, %v7854_v38 }
 0x161   :  { %6366 = vmatprep.mubr.msk.bf16.mxu0 %vm61_vm0, %v7870_v51 }
 0x168   :  { %6367 = vmatmul.mubr.msk.bf16.gmra.mxu0 %vm61_vm0, %v7882_v57 }
 0x169   :  { %6370 = vmatprep.mubr.msk.bf16.mxu0 %vm61_vm0, %v7894_v2 }
 0x170   :  { %6371 = vmatmul.mubr.msk.bf16.gmra.mxu0 %vm61_vm0, %v7906_v8 }
 0x171   :  { %6374 = vmatprep.mubr.msk.bf16.mxu0 %vm61_vm0, %v7917_v20 }
 0x178   :  { %6375 = vmatmul.mubr.msk.bf16.gmra.mxu0 %vm61_vm0, %v7925_v22 }
 0x200   :  { %v7947_v41 = vpop.f32.mrf.mxu0  ;;  %v6344_v59 = vpop.f32.mrf.mxu1 }
 0x202   :  { %v403_v13 = vpop.f32.mrf.mxu0  ;;  %v7949_v54 = vpop.f32.mrf.mxu1 }
 0x204   :  { %v7951_v27 = vpop.f32.mrf.mxu0  ;;  %v6345_v28 = vpop.f32.mrf.mxu1 }
 0x205   :  { %v685_v31 = vpack.c.bf16 %v7951_v27, %v7947_v41  ;;  %v7955_v32 = vpack.c.bf16 %v6345_v28, %v6344_v59 }
 0x206   :  { %v406_v33 = vpop.f32.mrf.mxu0  ;;  %v7957_v34 = vpop.f32.mrf.mxu1 }
 0x207   :  { %v684_v18 = vpack.c.bf16 %v406_v33, %v403_v13 }
 0x208   :  { %v7959_v55 = vpop.f32.mrf.mxu0  ;;  %v6348_v39 = vpop.f32.mrf.mxu1 }
 0x209   :  { %6394 = vmatprep.mubr.msk.bf16.mxu1 %vm700_vm1, %v684_v18 }
 0x20a   :  { %v7962_v0 = vpop.f32.mrf.mxu0  ;;  %v528_v40 = vpop.f32.mrf.mxu1 }
 0x20c   :  { %v7964_v42 = vpop.f32.mrf.mxu0  ;;  %v6349_v43 = vpop.f32.mrf.mxu1 }
 0x20d   :  { %v687_v46 = vpack.c.bf16 %v7964_v42, %v7959_v55  ;;  %v695_v18 = vpack.c.bf16 %v6349_v43, %v6348_v39  ;;  %v8068_v42 = vld [vmem:[%s10186_s6 + $0x10] sm:$0xff] }
 0x20e   :  { %v7968_v48 = vpop.f32.mrf.mxu0  ;;  %v531_v49 = vpop.f32.mrf.mxu1 }
 0x210   :  { %v7970_v50 = vpop.f32.mrf.mxu0  ;;  %v6352_v1 = vpop.f32.mrf.mxu1 }
 0x212   :  { %v7972_v52 = vpop.f32.mrf.mxu0  ;;  %v544_v25 = vpop.f32.mrf.mxu1 }
 0x214   :  { %v7974_v29 = vpop.f32.mrf.mxu0  ;;  %v6353_v10 = vpop.f32.mrf.mxu1 }
 0x215   :  { %v689_v58 = vpack.c.bf16 %v7974_v29, %v7970_v50  ;;  %v697_v9 = vpack.c.bf16 %v6353_v10, %v6352_v1 }
 0x216   :  { %v7978_v53 = vpop.f32.mrf.mxu0  ;;  %v547_v56 = vpop.f32.mrf.mxu1 }
 0x217   :  { %v741_v24 = vsel %vm700_vm1, %v697_v9, 0  ;;  %v696_v21 = vpack.c.bf16 %v547_v56, %v544_v25  ;;  %v735_v25 = vsel %vm700_vm1, %v695_v18, 0  ;;  %v694_v56 = vpack.c.bf16 %v531_v49, %v528_v40 }
 0x218   :  { %v7980_v36 = vpop.f32.mrf.mxu0  ;;  %v6356_v11 = vpop.f32.mrf.mxu1  ;;  %v729_v49 = vsel %vm700_vm1, %v7955_v32, 0 }
 0x219   :  { %v738_v1 = vsel %vm700_vm1, %v696_v21, 0 }
 0x21a   :  { %v7982_v60 = vpop.f32.mrf.mxu0  ;;  %v560_v61 = vpop.f32.mrf.mxu1 }
 0x21c   :  { %v7984_v62 = vpop.f32.mrf.mxu0  ;;  %v6357_v26 = vpop.f32.mrf.mxu1 }
 0x21d   :  { %v691_v63 = vpack.c.bf16 %v7984_v62, %v7980_v36  ;;  %v699_v44 = vpack.c.bf16 %v6357_v26, %v6356_v11  ;;  %v8090_v36 = vld [vmem:[%s10186_s6 + $0x20] sm:$0xff] }
 0x21e   :  { %v7988_v3 = vpop.f32.mrf.mxu0  ;;  %v563_v4 = vpop.f32.mrf.mxu1 }
 0x21f   :  { %v747_v37 = vsel %vm700_vm1, %v699_v44, 0  ;;  %v698_v17 = vpack.c.bf16 %v563_v4, %v560_v61  ;;  %6990 = vmatprep.subr.msk.bf16.mxu1 %vm700_vm1, %v699_v44  ;;  %v690_v41 = vpack.c.bf16 %v7988_v3, %v7982_v60  ;;  %v8103_v3 = vld [vmem:[%s10186_s6 + $0x30] sm:$0xff] }
 0x220   :  { %v6364_v5 = vpop.f32.mrf.mxu0  ;;  %6379 = vmatpush3.bf16.xpose.msra.mxu1 %v747_v37  ;;  %v732_v37 = vsel %vm700_vm1, %v694_v56, 0 }
 0x221   :  { %6991 = vmatprep.subr.msk.bf16.mxu1 %vm700_vm1, %v698_v17  ;;  %v744_v12 = vsel %vm700_vm1, %v698_v17, 0  ;;  %v692_v17 = vpack.c.bf16 %v7957_v34, %v7949_v54  ;;  %v7032_v54 = vld [vmem:[%s10181_s1 + $0x30] sm:$0xff]   ;;  %v688_v34 = vpack.c.bf16 %v7978_v53, %v7972_v52 }
 0x222   :  { %v621_v35 = vpop.f32.mrf.mxu0 }
 0x224   :  { %v6365_v6 = vpop.f32.mrf.mxu0 }
 0x226   :  { %v624_v7 = vpop.f32.mrf.mxu0 }
 0x228   :  { %v6368_v19 = vpop.f32.mrf.mxu0  ;;  %6381 = vmatpush3.bf16.xpose.msra.mxu1 %v744_v12  ;;  %v999_v12 = vpack.c.bf16 %v6365_v6, %v6364_v5 }
 0x229   :  { %6992 = vmatprep.subr.msk.bf16.mxu1 %vm700_vm1, %v697_v9 }
 0x22a   :  { %v637_v14 = vpop.f32.mrf.mxu0 }
 0x22c   :  { %v6369_v15 = vpop.f32.mrf.mxu0 }
 0x22d   :  { %v1001_v40 = vpack.c.bf16 %v6369_v15, %v6368_v19  ;;  %v7031_v19 = vld [vmem:[%s10181_s1 + $0x38] sm:$0xff]   ;;  %v998_v15 = vpack.c.bf16 %v624_v7, %v621_v35  ;;  %v8108_v35 = vld [vmem:[%s10186_s6 + $0x28] sm:$0xff] }
 0x22e   :  { %v640_v47 = vpop.f32.mrf.mxu0 }
 0x22f   :  { %v1000_v9 = vpack.c.bf16 %v640_v47, %v637_v14  ;;  %v8121_v47 = vld [vmem:[%s10186_s6 + $0x38] sm:$0xff] }
 0x230   :  { %v6372_v59 = vpop.f32.mrf.mxu0  ;;  %6383 = vmatpush3.bf16.xpose.msra.mxu1 %v741_v24  ;;  %v726_v24 = vsel %vm700_vm1, %v692_v17, 0 }
 0x231   :  { %6993 = vmatprep.subr.msk.bf16.mxu1 %vm700_vm1, %v696_v21 }
 0x232   :  { %v653_v13 = vpop.f32.mrf.mxu0 }
 0x234   :  { %v6373_v28 = vpop.f32.mrf.mxu0 }
 0x235   :  { %v1003_v39 = vpack.c.bf16 %v6373_v28, %v6372_v59  ;;  %v8126_v59 = vld [vmem:[%s10186_s6 + $0x40] sm:$0xff] }
 0x236   :  { %v656_v33 = vpop.f32.mrf.mxu0 }
 0x237   :  { %v1002_v43 = vpack.c.bf16 %v656_v33, %v653_v13 }
 0x238   :  { %v6376_v10 = vpop.f32.mrf.mxu0  ;;  %6385 = vmatpush3.bf16.xpose.msra.mxu1 %v738_v1 }
 0x239   :  { %6994 = vmatprep.subr.msk.bf16.mxu1 %vm700_vm1, %v695_v18  ;;  %v8139_v18 = vld [vmem:[%s10186_s6 + $0x50] sm:$0xff] }
 0x23a   :  { %v669_v11 = vpop.f32.mrf.mxu0 }
 0x23c   :  { %v6377_v61 = vpop.f32.mrf.mxu0 }
 0x23d   :  { %v1005_v26 = vpack.c.bf16 %v6377_v61, %v6376_v10  ;;  %v8144_v10 = vld [vmem:[%s10186_s6 + $0x48] sm:$0xff] }
 0x23e   :  { %v672_v44 = vpop.f32.mrf.mxu0 }
 0x23f   :  { %v1004_v4 = vpack.c.bf16 %v672_v44, %v669_v11  ;;  %6410 = vmatprep.subr.bf16.mxu0 %v1005_v26  ;;  %v8157_v44 = vld [vmem:[%s10186_s6 + $0x58] sm:$0xff] }
 0x240   :  { %6387 = vmatpush3.bf16.xpose.msra.mxu1 %v735_v25  ;;  %6411 = vmatpush3.bf16.msra.mxu0 %v1005_v26 }
 0x241   :  { %6995 = vmatprep.subr.msk.bf16.mxu1 %vm700_vm1, %v694_v56  ;;  %6412 = vmatprep.subr.bf16.mxu0 %v1004_v4  ;;  %v8162_v56 = vld [vmem:[%s10186_s6 + $0x60] sm:$0xff] }
 0x244   :  { %6413 = vmatpush3.bf16.msra.mxu0 %v1004_v4 }
 0x245   :  { %6414 = vmatprep.subr.bf16.mxu0 %v1003_v39 }
 0x248   :  { %6389 = vmatpush3.bf16.xpose.msra.mxu1 %v732_v37  ;;  %6415 = vmatpush3.bf16.msra.mxu0 %v1003_v39  ;;  %v8175_v37 = vld [vmem:[%s10186_s6 + $0x70] sm:$0xff] }
 0x249   :  { %6996 = vmatprep.subr.msk.bf16.mxu1 %vm700_vm1, %v7955_v32  ;;  %6416 = vmatprep.subr.bf16.mxu0 %v1002_v43  ;;  %v686_v32 = vpack.c.bf16 %v7968_v48, %v7962_v0  ;;  %v8073_v48 = vld [vmem:[%s10186_s6 + $0x8] sm:$0xff] }
 0x24c   :  { %6417 = vmatpush3.bf16.msra.mxu0 %v1002_v43 }
 0x24d   :  { %6418 = vmatprep.subr.bf16.mxu0 %v1001_v40 }
 0x250   :  { %6391 = vmatpush3.bf16.xpose.msra.mxu1 %v729_v49  ;;  %6419 = vmatpush3.bf16.msra.mxu0 %v1001_v40  ;;  %v8180_v49 = vld [vmem:[%s10186_s6 + $0x68] sm:$0xff] }
 0x251   :  { %6997 = vmatprep.subr.msk.bf16.mxu1 %vm700_vm1, %v692_v17  ;;  %6420 = vmatprep.subr.bf16.mxu0 %v1000_v9 }
 0x254   :  { %6421 = vmatpush3.bf16.msra.mxu0 %v1000_v9 }
 0x255   :  { %6422 = vmatprep.subr.bf16.mxu0 %v999_v12 }
 0x258   :  { %6393 = vmatpush3.bf16.xpose.msra.mxu1 %v726_v24  ;;  %6423 = vmatpush3.bf16.msra.mxu0 %v999_v12 }
 0x259   :  { %6424 = vmatprep.subr.bf16.mxu0 %v998_v15  ;;  %6462 = vmatprep.subr.bf16.mxu1 %v7031_v19 }
 0x25c   :  { %6425 = vmatpush3.bf16.msra.mxu0 %v998_v15 }
 0x25f   :  { %6395 = vmatmul.mubr.msk.bf16.vlgmr.msra.gmra.mxu1 %vm700_vm1, %v685_v31  ;;  %v8060_v31 = vld [vmem:[%s10186_s6] sm:$0xff] }
 0x260   :  { %6398 = vmatprep.mubr.msk.bf16.mxu1 %vm700_vm1, %v686_v32  ;;  %6463 = vmatpush3.bf16.msra.mxu1 %v7031_v19  ;;  %v8193_v19 = vld [vmem:[%s10186_s6 + $0x78] sm:$0xff] }
 0x261   :  { %6464 = vmatprep.subr.bf16.mxu1 %v7032_v54 }
 0x264   :  { %6465 = vmatpush3.bf16.msra.mxu1 %v7032_v54 }
 0x267   :  { %6399 = vmatmul.mubr.msk.bf16.gmra.mxu1 %vm700_vm1, %v687_v46 }
 0x268   :  { %6402 = vmatprep.mubr.msk.bf16.mxu1 %vm700_vm1, %v688_v34 }
 0x26f   :  { %6403 = vmatmul.mubr.msk.bf16.gmra.mxu1 %vm700_vm1, %v689_v58  ;;  %v8085_v58 = vld [vmem:[%s10186_s6 + $0x18] sm:$0xff] }
 0x270   :  { %6406 = vmatprep.mubr.msk.bf16.mxu1 %vm700_vm1, %v690_v41 }
 0x277   :  { %6407 = vmatmul.mubr.msk.bf16.gmra.mxu1 %vm700_vm1, %v691_v63 }
 0x278   :  { %6466 = vmatprep.mubr.msk.bf16.mxu1 %vm61_vm0, %v7843_v45 }
 0x27f   :  { %6467 = vmatmul.mubr.msk.bf16.vlgmr.msra.gmra.mxu1 %vm61_vm0, %v7854_v38 }
 0x280   :  { %6470 = vmatprep.mubr.msk.bf16.mxu1 %vm61_vm0, %v7870_v51 }
 0x287   :  { %6471 = vmatmul.mubr.msk.bf16.gmra.mxu1 %vm61_vm0, %v7882_v57 }
 0x288   :  { %6474 = vmatprep.mubr.msk.bf16.mxu1 %vm61_vm0, %v7894_v2 }
 0x28f   :  { %6475 = vmatmul.mubr.msk.bf16.gmra.mxu1 %vm61_vm0, %v7906_v8 }
 0x290   :  { %6478 = vmatprep.mubr.msk.bf16.mxu1 %vm61_vm0, %v7917_v20 }
 0x297   :  { %6479 = vmatmul.mubr.msk.bf16.gmra.mxu1 %vm61_vm0, %v7925_v22 }
 0x31f   :  { %v6396_v27 = vpop.f32.mrf.mxu1 }
 0x320   :  { %v8077_v52 = vadd.f32 %v6396_v27, %v8068_v42 }
 0x321   :  { %v783_v55 = vpop.f32.mrf.mxu1 }
 0x322   :  { %v8063_v0 = vadd.f32 %v783_v55, %v8060_v31 }
 0x323   :  { %v6397_v46 = vpop.f32.mrf.mxu1 }
 0x324   :  { %846 = vmax.xlane.f32.xlu0 %v8063_v0  ;;  %v8095_v62 = vadd.f32 %v6397_v46, %v8085_v58 }
 0x325   :  { %v786_v50 = vpop.f32.mrf.mxu1 }
 0x326   :  { %v8080_v29 = vadd.f32 %v786_v50, %v8073_v48 }
 0x327   :  { %v6400_v53 = vpop.f32.mrf.mxu1 }
 0x328   :  { %848 = vmax.xlane.f32.xlu1 %v8080_v29  ;;  %850 = vmax.xlane.f32.xlu0 %v8077_v52  ;;  %v8113_v7 = vadd.f32 %v6400_v53, %v8103_v3 }
 0x329   :  { %v799_v60 = vpop.f32.mrf.mxu1 }
 0x32a   :  { %v8098_v63 = vadd.f32 %v799_v60, %v8090_v36 }
 0x32b   :  { %v6401_v5 = vpop.f32.mrf.mxu1 }
 0x32c   :  { %852 = vmax.xlane.f32.xlu1 %v8095_v62  ;;  %854 = vmax.xlane.f32.xlu0 %v8098_v63  ;;  %v8131_v28 = vadd.f32 %v6401_v5, %v8121_v47 }
 0x32d   :  { %v802_v6 = vpop.f32.mrf.mxu1 }
 0x32e   :  { %v8116_v14 = vadd.f32 %v802_v6, %v8108_v35 }
 0x32f   :  { %v6404_v21 = vpop.f32.mrf.mxu1 }
 0x330   :  { %856 = vmax.xlane.f32.xlu1 %v8116_v14  ;;  %858 = vmax.xlane.f32.xlu0 %v8113_v7  ;;  %v8149_v61 = vadd.f32 %v6404_v21, %v8139_v18 }
 0x331   :  { %v815_v13 = vpop.f32.mrf.mxu1 }
 0x332   :  { %v8134_v33 = vadd.f32 %v815_v13, %v8126_v59 }
 0x333   :  { %v6405_v1 = vpop.f32.mrf.mxu1 }
 0x334   :  { %860 = vmax.xlane.f32.xlu1 %v8131_v28  ;;  %862 = vmax.xlane.f32.xlu0 %v8134_v33  ;;  %v8167_v39 = vadd.f32 %v6405_v1, %v8157_v44 }
 0x335   :  { %v818_v11 = vpop.f32.mrf.mxu1 }
 0x336   :  { %v8152_v26 = vadd.f32 %v818_v11, %v8144_v10 }
 0x337   :  { %v6408_v25 = vpop.f32.mrf.mxu1 }
 0x338   :  { %864 = vmax.xlane.f32.xlu1 %v8152_v26  ;;  %866 = vmax.xlane.f32.xlu0 %v8149_v61  ;;  %v8185_v9 = vadd.f32 %v6408_v25, %v8175_v37 }
 0x339   :  { %v831_v4 = vpop.f32.mrf.mxu1 }
 0x33a   :  { %v8170_v43 = vadd.f32 %v831_v4, %v8162_v56 }
 0x33b   :  { %v6409_v40 = vpop.f32.mrf.mxu1 }
 0x33c   :  { %868 = vmax.xlane.f32.xlu1 %v8167_v39  ;;  %870 = vmax.xlane.f32.xlu0 %v8170_v43  ;;  %v8198_v54 = vadd.f32 %v6409_v40, %v8193_v19 }
 0x33d   :  { %v834_v17 = vpop.f32.mrf.mxu1 }
 0x33e   :  { %v8188_v12 = vadd.f32 %v834_v17, %v8180_v49 }
 0x33f   :  { %v6468_v15 = vpop.f32.mrf.mxu1 }
 0x340   :  { %872 = vmax.xlane.f32.xlu1 %v8188_v12  ;;  %874 = vmax.xlane.f32.xlu0 %v8185_v9 }
 0x341   :  { %v1283_v24 = vpop.f32.mrf.mxu1 }
 0x343   :  { %v6469_v32 = vpop.f32.mrf.mxu1 }
 0x344   :  { %v1464_v34 = vpack.c.bf16 %v6469_v32, %v6468_v15  ;;  %876 = vmax.xlane.f32.xlu1 %v8198_v54 }
 0x345   :  { %v1286_v41 = vpop.f32.mrf.mxu1 }
 0x347   :  { %v6472_v27 = vpop.f32.mrf.mxu1 }
 0x349   :  { %v1299_v55 = vpop.f32.mrf.mxu1 }
 0x34b   :  { %v6473_v46 = vpop.f32.mrf.mxu1 }
 0x34d   :  { %v1302_v50 = vpop.f32.mrf.mxu1 }
 0x34f   :  { %v6476_v53 = vpop.f32.mrf.mxu1 }
 0x351   :  { %v1315_v60 = vpop.f32.mrf.mxu1 }
 0x353   :  { %v6477_v5 = vpop.f32.mrf.mxu1 }
 0x354   :  { %v1468_v17 = vpack.c.bf16 %v6477_v5, %v6476_v53  ;;  %v1465_v53 = vpack.c.bf16 %v1302_v50, %v1299_v55 }
 0x355   :  { %v1318_v6 = vpop.f32.mrf.mxu1 }
 0x356   :  { %v1511_v32 = vsel %vm700_vm1, %v1468_v17, 0  ;;  %v1467_v23 = vpack.c.bf16 %v1318_v6, %v1315_v60  ;;  %v1502_v5 = vsel %vm700_vm1, %v1465_v53, 0  ;;  %v1499_v60 = vsel %vm700_vm1, %v1464_v34, 0 }
 0x357   :  { %v6480_v21 = vpop.f32.mrf.mxu1  ;;  %v1463_v6 = vpack.c.bf16 %v1286_v41, %v1283_v24 }
 0x359   :  { %v1331_v13 = vpop.f32.mrf.mxu1 }
 0x35b   :  { %v6481_v1 = vpop.f32.mrf.mxu1 }
 0x35c   :  { %v1470_v11 = vpack.c.bf16 %v6481_v1, %v6480_v21  ;;  %v1466_v21 = vpack.c.bf16 %v6473_v46, %v6472_v27 }
 0x35d   :  { %v1334_v25 = vpop.f32.mrf.mxu1 }
 0x35e   :  { %v1517_v4 = vsel %vm700_vm1, %v1470_v11, 0  ;;  %v1469_v40 = vpack.c.bf16 %v1334_v25, %v1331_v13  ;;  %6998 = vmatprep.subr.msk.bf16.mxu1 %vm700_vm1, %v1470_v11  ;;  %v1508_v13 = vsel %vm700_vm1, %v1467_v23, 0  ;;  %v1505_v1 = vsel %vm700_vm1, %v1466_v21, 0 }
 0x35f   :  { %6503 = vmatpush3.bf16.xpose.msra.mxu1 %v1517_v4 }
 0x360   :  { %6999 = vmatprep.subr.msk.bf16.mxu1 %vm700_vm1, %v1469_v40  ;;  %v1514_v15 = vsel %vm700_vm1, %v1469_v40, 0 }
 0x367   :  { %6505 = vmatpush3.bf16.xpose.msra.mxu1 %v1514_v15 }
 0x368   :  { %7000 = vmatprep.subr.msk.bf16.mxu1 %vm700_vm1, %v1468_v17 }
 0x36f   :  { %6507 = vmatpush3.bf16.xpose.msra.mxu1 %v1511_v32 }
 0x370   :  { %7001 = vmatprep.subr.msk.bf16.mxu1 %vm700_vm1, %v1467_v23  ;;  %v1496_v23 = vsel %vm700_vm1, %v1463_v6, 0 }
 0x377   :  { %6509 = vmatpush3.bf16.xpose.msra.mxu1 %v1508_v13 }
 0x378   :  { %7002 = vmatprep.subr.msk.bf16.mxu1 %vm700_vm1, %v1466_v21 }
 0x37f   :  { %6511 = vmatpush3.bf16.xpose.msra.mxu1 %v1505_v1 }
 0x380   :  { %7003 = vmatprep.subr.msk.bf16.mxu1 %vm700_vm1, %v1465_v53 }
 0x387   :  { %6513 = vmatpush3.bf16.xpose.msra.mxu1 %v1502_v5 }
 0x388   :  { %7004 = vmatprep.subr.msk.bf16.mxu1 %vm700_vm1, %v1464_v34 }
 0x38f   :  { %6515 = vmatpush3.bf16.xpose.msra.mxu1 %v1499_v60 }
 0x390   :  { %7005 = vmatprep.subr.msk.bf16.mxu1 %vm700_vm1, %v1463_v6 }
 0x397   :  { %6517 = vmatpush3.bf16.xpose.msra.mxu1 %v1496_v23 }
 0x3ad   :  { %v847_v27 = vpop.xlane.xlu0 %846 }
 0x3ae   :  { %v878_v55 = vsub.f32 %v8063_v0, %v847_v27 }
 0x3b0   :  { %v894_v46 = vmul.f32 1.442695, %v878_v55 }
 0x3b1   :  { %v849_v50 = vpop.xlane.xlu1 %848  ;;  %v851_v11 = vpop.xlane.xlu0 %850 }
 0x3b2   :  { %7105 = vpow2.f32 %v894_v46  ;;  %v879_v25 = vsub.f32 %v8080_v29, %v849_v50  ;;  %v880_v4 = vsub.f32 %v8077_v52, %v851_v11 }
 0x3b4   :  { %v896_v40 = vmul.f32 1.442695, %v879_v25  ;;  %v898_v34 = vmul.f32 1.442695, %v880_v4 }
 0x3b5   :  { %v853_v24 = vpop.xlane.xlu1 %852  ;;  %v855_v41 = vpop.xlane.xlu0 %854 }
 0x3b6   :  { %7107 = vpow2.f32 %v896_v40  ;;  %v881_v17 = vsub.f32 %v8095_v62, %v853_v24  ;;  %v882_v15 = vsub.f32 %v8098_v63, %v855_v41 }
 0x3b7   :  { %7109 = vpow2.f32 %v898_v34 }
 0x3b8   :  { %v900_v32 = vmul.f32 1.442695, %v881_v17  ;;  %v902_v0 = vmul.f32 1.442695, %v882_v15 }
 0x3b9   :  { %v857_v21 = vpop.xlane.xlu1 %856  ;;  %v859_v13 = vpop.xlane.xlu0 %858 }
 0x3ba   :  { %7111 = vpow2.f32 %v900_v32  ;;  %v883_v1 = vsub.f32 %v8116_v14, %v857_v21  ;;  %v884_v29 = vsub.f32 %v8113_v7, %v859_v13 }
 0x3bb   :  { %7113 = vpow2.f32 %v902_v0 }
 0x3bc   :  { %v904_v52 = vmul.f32 1.442695, %v883_v1  ;;  %v906_v53 = vmul.f32 1.442695, %v884_v29 }
 0x3bd   :  { %v861_v5 = vpop.xlane.xlu1 %860  ;;  %v863_v60 = vpop.xlane.xlu0 %862 }
 0x3be   :  { %7115 = vpow2.f32 %v904_v52  ;;  %v885_v62 = vsub.f32 %v8131_v28, %v861_v5  ;;  %v886_v63 = vsub.f32 %v8134_v33, %v863_v60 }
 0x3bf   :  { %v8226_v6 = vpop.eup %7105  ;;  %7117 = vpow2.f32 %v906_v53 }
 0x3c0   :  { %v908_v23 = vmul.f32 1.442695, %v885_v62  ;;  %v910_v27 = vmul.f32 1.442695, %v886_v63  ;;  %926 = vadd.xlane.f32.xlu0 %v8226_v6 }
 0x3c1   :  { %v865_v14 = vpop.xlane.xlu1 %864  ;;  %v867_v55 = vpop.xlane.xlu0 %866 }
 0x3c2   :  { %7119 = vpow2.f32 %v908_v23  ;;  %v887_v7 = vsub.f32 %v8152_v26, %v865_v14  ;;  %v888_v46 = vsub.f32 %v8149_v61, %v867_v55 }
 0x3c3   :  { %v8231_v50 = vpop.eup %7107  ;;  %7121 = vpow2.f32 %v910_v27  ;;  %v7033_v27 = vld [vmem:[%s10181_s1 + $0x18] sm:$0xff]  }
 0x3c4   :  { %v8233_v28 = vpop.eup %7109  ;;  %v912_v33 = vmul.f32 1.442695, %v887_v7  ;;  %v914_v11 = vmul.f32 1.442695, %v888_v46  ;;  %928 = vadd.xlane.f32.xlu1 %v8231_v50  ;;  %6442 = vmatprep.subr.bf16.mxu0 %v7033_v27 }
 0x3c5   :  { %930 = vadd.xlane.f32.xlu0 %v8233_v28  ;;  %v869_v25 = vpop.xlane.xlu1 %868  ;;  %v871_v4 = vpop.xlane.xlu0 %870 }
 0x3c6   :  { %7123 = vpow2.f32 %v912_v33  ;;  %v889_v40 = vsub.f32 %v8167_v39, %v869_v25  ;;  %v890_v26 = vsub.f32 %v8170_v43, %v871_v4 }
 0x3c7   :  { %v8239_v34 = vpop.eup %7111  ;;  %7125 = vpow2.f32 %v914_v11 }
 0x3c8   :  { %v8241_v61 = vpop.eup %7113  ;;  %v916_v24 = vmul.f32 1.442695, %v889_v40  ;;  %v918_v41 = vmul.f32 1.442695, %v890_v26  ;;  %932 = vadd.xlane.f32.xlu1 %v8239_v34 }
 0x3c9   :  { %934 = vadd.xlane.f32.xlu0 %v8241_v61  ;;  %v873_v17 = vpop.xlane.xlu1 %872  ;;  %v875_v15 = vpop.xlane.xlu0 %874 }
 0x3ca   :  { %7127 = vpow2.f32 %v916_v24  ;;  %v891_v32 = vsub.f32 %v8188_v12, %v873_v17  ;;  %v892_v39 = vsub.f32 %v8185_v9, %v875_v15 }
 0x3cb   :  { %v8247_v0 = vpop.eup %7115  ;;  %7129 = vpow2.f32 %v918_v41 }
 0x3cc   :  { %v8249_v43 = vpop.eup %7117  ;;  %v920_v21 = vmul.f32 1.442695, %v891_v32  ;;  %v922_v13 = vmul.f32 1.442695, %v892_v39  ;;  %936 = vadd.xlane.f32.xlu1 %v8247_v0 }
 0x3cd   :  { %938 = vadd.xlane.f32.xlu0 %v8249_v43  ;;  %v877_v1 = vpop.xlane.xlu1 %876 }
 0x3ce   :  { %7131 = vpow2.f32 %v920_v21  ;;  %v893_v29 = vsub.f32 %v8198_v54, %v877_v1 }
 0x3cf   :  { %v8254_v52 = vpop.eup %7119  ;;  %7133 = vpow2.f32 %v922_v13 }
 0x3d0   :  { %v8256_v12 = vpop.eup %7121  ;;  %v924_v9 = vmul.f32 1.442695, %v893_v29  ;;  %940 = vadd.xlane.f32.xlu1 %v8254_v52 }
 0x3d1   :  { %942 = vadd.xlane.f32.xlu0 %v8256_v12 }
 0x3d2   :  { %7135 = vpow2.f32 %v924_v9 }
 0x3d3   :  { %v8260_v53 = vpop.eup %7123 }
 0x3d4   :  { %v8262_v5 = vpop.eup %7125  ;;  %944 = vadd.xlane.f32.xlu1 %v8260_v53 }
 0x3d5   :  { %946 = vadd.xlane.f32.xlu0 %v8262_v5 }
 0x3d7   :  { %v8266_v54 = vpop.eup %7127 }
 0x3d8   :  { %v8268_v60 = vpop.eup %7129  ;;  %948 = vadd.xlane.f32.xlu1 %v8266_v54 }
 0x3d9   :  { %950 = vadd.xlane.f32.xlu0 %v8268_v60 }
 0x3db   :  { %v8272_v62 = vpop.eup %7131 }
 0x3dc   :  { %v8274_v63 = vpop.eup %7133  ;;  %952 = vadd.xlane.f32.xlu1 %v8272_v62 }
 0x3dd   :  { %954 = vadd.xlane.f32.xlu0 %v8274_v63 }
 0x3df   :  { %v8278_v23 = vpop.eup %7135 }
 0x3e0   :  { %956 = vadd.xlane.f32.xlu1 %v8278_v23 }
 0x449   :  { %v927_v14 = vpop.xlane.xlu0 %926 }
 0x44a   :  { %7137 = vrcp.f32 %v927_v14 }
 0x44d   :  { %v929_v55 = vpop.xlane.xlu1 %928 }
 0x44e   :  { %7139 = vrcp.f32 %v929_v55  ;;  %v931_v7 = vpop.xlane.xlu0 %930 }
 0x44f   :  { %7141 = vrcp.f32 %v931_v7 }
 0x451   :  { %v933_v46 = vpop.xlane.xlu1 %932 }
 0x452   :  { %7143 = vrcp.f32 %v933_v46  ;;  %v935_v33 = vpop.xlane.xlu0 %934 }
 0x453   :  { %7145 = vrcp.f32 %v935_v33 }
 0x455   :  { %v937_v11 = vpop.xlane.xlu1 %936 }
 0x456   :  { %7147 = vrcp.f32 %v937_v11  ;;  %v939_v25 = vpop.xlane.xlu0 %938 }
 0x457   :  { %7149 = vrcp.f32 %v939_v25  ;;  %v7138_v4 = vpop.eup %7137 }
 0x458   :  { %v974_v41 = vmul.f32 %v7138_v4, %v8226_v6  ;;  %v7034_v6 = vld [vmem:[%s10181_s1 + $0x10] sm:$0xff]   ;;  %v7035_v4 = vld [vmem:[%s10181_s1 + $0x58] sm:$0xff]  }
 0x459   :  { %v941_v40 = vpop.xlane.xlu1 %940 }
 0x45a   :  { %7151 = vrcp.f32 %v941_v40  ;;  %v943_v26 = vpop.xlane.xlu0 %942 }
 0x45b   :  { %v7140_v24 = vpop.eup %7139  ;;  %7153 = vrcp.f32 %v943_v26 }
 0x45c   :  { %v975_v17 = vmul.f32 %v7140_v24, %v8231_v50  ;;  %v7142_v15 = vpop.eup %7141 }
 0x45d   :  { %v945_v32 = vpop.xlane.xlu1 %944  ;;  %v976_v1 = vmul.f32 %v7142_v15, %v8233_v28 }
 0x45e   :  { %7155 = vrcp.f32 %v945_v32  ;;  %v947_v39 = vpop.xlane.xlu0 %946  ;;  %v990_v21 = vpack.c.bf16 %v975_v17, %v974_v41 }
 0x45f   :  { %v7144_v13 = vpop.eup %7143  ;;  %7157 = vrcp.f32 %v947_v39 }
 0x460   :  { %6426 = vmatprep.mubr.bf16.mxu0 %v990_v21  ;;  %v977_v29 = vmul.f32 %v7144_v13, %v8239_v34  ;;  %v7146_v9 = vpop.eup %7145 }
 0x461   :  { %v949_v14 = vpop.xlane.xlu1 %948  ;;  %v978_v46 = vmul.f32 %v7146_v9, %v8241_v61 }
 0x462   :  { %7159 = vrcp.f32 %v949_v14  ;;  %v951_v55 = vpop.xlane.xlu0 %950  ;;  %v991_v7 = vpack.c.bf16 %v977_v29, %v976_v1 }
 0x463   :  { %v7148_v50 = vpop.eup %7147  ;;  %7161 = vrcp.f32 %v951_v55 }
 0x464   :  { %6427 = vmatmul.mubr.bf16.vlgmr.msra.gmra.mxu0 %v991_v7  ;;  %v979_v33 = vmul.f32 %v7148_v50, %v8247_v0  ;;  %v7150_v11 = vpop.eup %7149 }
 0x465   :  { %6443 = vmatpush3.bf16.msra.mxu0 %v7033_v27  ;;  %v953_v28 = vpop.xlane.xlu1 %952  ;;  %v980_v26 = vmul.f32 %v7150_v11, %v8249_v43 }
 0x466   :  { %7163 = vrcp.f32 %v953_v28  ;;  %v955_v34 = vpop.xlane.xlu0 %954  ;;  %v992_v25 = vpack.c.bf16 %v979_v33, %v978_v46  ;;  %6444 = vmatprep.subr.bf16.mxu0 %v7034_v6 }
 0x467   :  { %v7152_v40 = vpop.eup %7151  ;;  %7165 = vrcp.f32 %v955_v34 }
 0x468   :  { %6430 = vmatprep.mubr.bf16.mxu0 %v992_v25  ;;  %v981_v61 = vmul.f32 %v7152_v40, %v8254_v52  ;;  %v7154_v24 = vpop.eup %7153 }
 0x469   :  { %v957_v0 = vpop.xlane.xlu1 %956  ;;  %6445 = vmatpush3.bf16.msra.mxu0 %v7034_v6  ;;  %v982_v17 = vmul.f32 %v7154_v24, %v8256_v12 }
 0x46a   :  { %7167 = vrcp.f32 %v957_v0  ;;  %v993_v27 = vpack.c.bf16 %v981_v61, %v980_v26  ;;  %6482 = vmatprep.subr.bf16.mxu0 %v7035_v4 }
 0x46b   :  { %v7156_v41 = vpop.eup %7155 }
 0x46c   :  { %6431 = vmatmul.mubr.bf16.gmra.mxu0 %v993_v27  ;;  %v983_v15 = vmul.f32 %v7156_v41, %v8260_v53  ;;  %v7158_v32 = vpop.eup %7157 }
 0x46d   :  { %v984_v43 = vmul.f32 %v7158_v32, %v8262_v5  ;;  %v7036_v5 = vld [vmem:[%s10181_s1 + $0x50] sm:$0xff]  }
 0x46e   :  { %v994_v39 = vpack.c.bf16 %v983_v15, %v982_v17 }
 0x46f   :  { %v7160_v21 = vpop.eup %7159 }
 0x470   :  { %6434 = vmatprep.mubr.bf16.mxu0 %v994_v39  ;;  %v985_v52 = vmul.f32 %v7160_v21, %v8266_v54  ;;  %v7162_v13 = vpop.eup %7161 }
 0x471   :  { %v986_v9 = vmul.f32 %v7162_v13, %v8268_v60 }
 0x472   :  { %v995_v1 = vpack.c.bf16 %v985_v52, %v984_v43 }
 0x473   :  { %v7164_v29 = vpop.eup %7163 }
 0x474   :  { %6435 = vmatmul.mubr.bf16.gmra.mxu0 %v995_v1  ;;  %v987_v14 = vmul.f32 %v7164_v29, %v8272_v62  ;;  %v7166_v55 = vpop.eup %7165 }
 0x475   :  { %v988_v53 = vmul.f32 %v7166_v55, %v8274_v63 }
 0x476   :  { %v996_v12 = vpack.c.bf16 %v987_v14, %v986_v9 }
 0x477   :  { %v7168_v7 = vpop.eup %7167 }
 0x478   :  { %6438 = vmatprep.mubr.bf16.mxu0 %v996_v12  ;;  %v989_v6 = vmul.f32 %v7168_v7, %v8278_v23 }
 0x47a   :  { %v997_v50 = vpack.c.bf16 %v989_v6, %v988_v53 }
 0x47c   :  { %6439 = vmatmul.mubr.bf16.gmra.mxu0 %v997_v50 }
 0x47d   :  { %6446 = vmatprep.mubr.msk.bf16.mxu0 %vm61_vm0, %v7843_v45 }
 0x484   :  { %6447 = vmatmul.mubr.msk.bf16.vlgmr.msra.gmra.mxu0 %vm61_vm0, %v7854_v38 }
 0x485   :  { %6450 = vmatprep.mubr.msk.bf16.mxu0 %vm61_vm0, %v7870_v51  ;;  %6483 = vmatpush3.bf16.msra.mxu0 %v7035_v4 }
 0x486   :  { %6484 = vmatprep.subr.bf16.mxu0 %v7036_v5 }
 0x489   :  { %6485 = vmatpush3.bf16.msra.mxu0 %v7036_v5 }
 0x48c   :  { %6451 = vmatmul.mubr.msk.bf16.gmra.mxu0 %vm61_vm0, %v7882_v57 }
 0x48d   :  { %6454 = vmatprep.mubr.msk.bf16.mxu0 %vm61_vm0, %v7894_v2 }
 0x494   :  { %6455 = vmatmul.mubr.msk.bf16.gmra.mxu0 %vm61_vm0, %v7906_v8 }
 0x495   :  { %6458 = vmatprep.mubr.msk.bf16.mxu0 %vm61_vm0, %v7917_v20 }
 0x49c   :  { %6459 = vmatmul.mubr.msk.bf16.gmra.mxu0 %vm61_vm0, %v7925_v22 }
 0x49d   :  { %6486 = vmatprep.mubr.msk.bf16.mxu0 %vm61_vm0, %v7843_v45  ;;  %v7037_v45 = vld [vmem:[%s10182_s2] sm:$0xff]  }
 0x49e   :  { %6584 = vmatprep.subr.bf16.mxu1 %v7037_v45 }
 0x4a4   :  { %6487 = vmatmul.mubr.msk.bf16.vlgmr.msra.gmra.mxu0 %vm61_vm0, %v7854_v38 }
 0x4a5   :  { %6490 = vmatprep.mubr.msk.bf16.mxu0 %vm61_vm0, %v7870_v51 }
 0x4ac   :  { %6491 = vmatmul.mubr.msk.bf16.gmra.mxu0 %vm61_vm0, %v7882_v57 }
 0x4ad   :  { %6494 = vmatprep.mubr.msk.bf16.mxu0 %vm61_vm0, %v7894_v2 }
 0x4b4   :  { %6495 = vmatmul.mubr.msk.bf16.gmra.mxu0 %vm61_vm0, %v7906_v8 }
 0x4b5   :  { %6498 = vmatprep.mubr.msk.bf16.mxu0 %vm61_vm0, %v7917_v20 }
 0x4bc   :  { %6499 = vmatmul.mubr.msk.bf16.gmra.mxu0 %vm61_vm0, %v7925_v22 }
 0x524   :  { %v8344_v38 = vpop.f32.mrf.mxu0 }
 0x526   :  { %v1040_v51 = vpop.f32.mrf.mxu0 }
 0x528   :  { %v6429_v57 = vpop.f32.mrf.mxu0 }
 0x529   :  { %v1104_v2 = vpack.c.bf16 %v6429_v57, %v8344_v38 }
 0x52a   :  { %v1043_v54 = vpop.f32.mrf.mxu0 }
 0x52c   :  { %v8347_v60 = vpop.f32.mrf.mxu0 }
 0x52e   :  { %v1056_v8 = vpop.f32.mrf.mxu0 }
 0x530   :  { %v8349_v62 = vpop.f32.mrf.mxu0 }
 0x531   :  { %v1106_v20 = vpack.c.bf16 %v8349_v62, %v8347_v60 }
 0x532   :  { %v1059_v22 = vpop.f32.mrf.mxu0 }
 0x534   :  { %v8353_v63 = vpop.f32.mrf.mxu0 }
 0x536   :  { %v1072_v23 = vpop.f32.mrf.mxu0 }
 0x538   :  { %v8355_v46 = vpop.f32.mrf.mxu0 }
 0x539   :  { %v1108_v33 = vpack.c.bf16 %v8355_v46, %v8353_v63 }
 0x53a   :  { %v1075_v11 = vpop.f32.mrf.mxu0 }
 0x53c   :  { %v8359_v28 = vpop.f32.mrf.mxu0 }
 0x53e   :  { %v1088_v34 = vpop.f32.mrf.mxu0 }
 0x540   :  { %v8361_v25 = vpop.f32.mrf.mxu0 }
 0x541   :  { %v1110_v4 = vpack.c.bf16 %v8361_v25, %v8359_v28 }
 0x542   :  { %v1091_v40 = vpop.f32.mrf.mxu0 }
 0x544   :  { %v6448_v26 = vpop.f32.mrf.mxu0 }
 0x546   :  { %v1174_v61 = vpop.f32.mrf.mxu0 }
 0x548   :  { %v6449_v24 = vpop.f32.mrf.mxu0 }
 0x549   :  { %v1456_v41 = vpack.c.bf16 %v6449_v24, %v6448_v26  ;;  %v1105_v26 = vpack.c.bf16 %v1059_v22, %v1056_v8 }
 0x54a   :  { %v1177_v0 = vpop.f32.mrf.mxu0 }
 0x54b   :  { %v1455_v27 = vpack.c.bf16 %v1177_v0, %v1174_v61 }
 0x54c   :  { %v6452_v17 = vpop.f32.mrf.mxu0 }
 0x54d   :  { %6518 = vmatprep.mubr.msk.bf16.mxu1 %vm700_vm1, %v1455_v27 }
 0x54e   :  { %v1190_v15 = vpop.f32.mrf.mxu0  ;;  %6519 = vmatmul.mubr.msk.bf16.vlgmr.msra.gmra.mxu1 %vm700_vm1, %v1456_v41 }
 0x54f   :  { %6585 = vmatpush3.bf16.msra.mxu1 %v7037_v45  ;;  %v1103_v45 = vpack.c.bf16 %v1043_v54, %v1040_v51  ;;  %v1107_v51 = vpack.c.bf16 %v1075_v11, %v1072_v23 }
 0x550   :  { %v6453_v32 = vpop.f32.mrf.mxu0 }
 0x551   :  { %v1458_v43 = vpack.c.bf16 %v6453_v32, %v6452_v17  ;;  %v1109_v32 = vpack.c.bf16 %v1091_v40, %v1088_v34 }
 0x552   :  { %v1193_v39 = vpop.f32.mrf.mxu0 }
 0x553   :  { %v1457_v21 = vpack.c.bf16 %v1193_v39, %v1190_v15 }
 0x554   :  { %v6456_v52 = vpop.f32.mrf.mxu0 }
 0x555   :  { %6522 = vmatprep.mubr.msk.bf16.mxu1 %vm700_vm1, %v1457_v21 }
 0x556   :  { %v1206_v13 = vpop.f32.mrf.mxu0  ;;  %6523 = vmatmul.mubr.msk.bf16.gmra.mxu1 %vm700_vm1, %v1458_v43 }
 0x558   :  { %v6457_v1 = vpop.f32.mrf.mxu0 }
 0x559   :  { %v1460_v14 = vpack.c.bf16 %v6457_v1, %v6456_v52 }
 0x55a   :  { %v1209_v29 = vpop.f32.mrf.mxu0 }
 0x55b   :  { %v1459_v9 = vpack.c.bf16 %v1209_v29, %v1206_v13 }
 0x55c   :  { %v6460_v55 = vpop.f32.mrf.mxu0 }
 0x55d   :  { %6526 = vmatprep.mubr.msk.bf16.mxu1 %vm700_vm1, %v1459_v9 }
 0x55e   :  { %v1222_v12 = vpop.f32.mrf.mxu0  ;;  %6527 = vmatmul.mubr.msk.bf16.gmra.mxu1 %vm700_vm1, %v1460_v14 }
 0x560   :  { %v6461_v7 = vpop.f32.mrf.mxu0 }
 0x561   :  { %v1462_v50 = vpack.c.bf16 %v6461_v7, %v6460_v55 }
 0x562   :  { %v1225_v53 = vpop.f32.mrf.mxu0 }
 0x563   :  { %v1461_v6 = vpack.c.bf16 %v1225_v53, %v1222_v12 }
 0x564   :  { %v6488_v5 = vpop.f32.mrf.mxu0 }
 0x565   :  { %6530 = vmatprep.mubr.msk.bf16.mxu1 %vm700_vm1, %v1461_v6 }
 0x566   :  { %v1392_v38 = vpop.f32.mrf.mxu0  ;;  %6531 = vmatmul.mubr.msk.bf16.gmra.mxu1 %vm700_vm1, %v1462_v50 }
 0x567   :  { %6586 = vmatprep.mubr.msk.bf16.mxu1 %vm700_vm1, %v1103_v45 }
 0x568   :  { %v6489_v57 = vpop.f32.mrf.mxu0 }
 0x569   :  { %v1769_v11 = vpack.c.bf16 %v6489_v57, %v6488_v5 }
 0x56a   :  { %v1395_v60 = vpop.f32.mrf.mxu0 }
 0x56b   :  { %v1768_v34 = vpack.c.bf16 %v1395_v60, %v1392_v38 }
 0x56c   :  { %v6492_v62 = vpop.f32.mrf.mxu0 }
 0x56e   :  { %v1408_v61 = vpop.f32.mrf.mxu0  ;;  %6587 = vmatmul.mubr.msk.bf16.vlgmr.msra.gmra.mxu1 %vm700_vm1, %v1104_v2 }
 0x56f   :  { %6590 = vmatprep.mubr.msk.bf16.mxu1 %vm700_vm1, %v1105_v26 }
 0x570   :  { %v6493_v24 = vpop.f32.mrf.mxu0 }
 0x571   :  { %v1771_v46 = vpack.c.bf16 %v6493_v24, %v6492_v62 }
 0x572   :  { %v1411_v0 = vpop.f32.mrf.mxu0 }
 0x574   :  { %v6496_v27 = vpop.f32.mrf.mxu0 }
 0x576   :  { %v1424_v54 = vpop.f32.mrf.mxu0  ;;  %6591 = vmatmul.mubr.msk.bf16.gmra.mxu1 %vm700_vm1, %v1106_v20 }
 0x577   :  { %6594 = vmatprep.mubr.msk.bf16.mxu1 %vm700_vm1, %v1107_v51 }
 0x578   :  { %v6497_v41 = vpop.f32.mrf.mxu0 }
 0x579   :  { %v1773_v20 = vpack.c.bf16 %v6497_v41, %v6496_v27 }
 0x57a   :  { %v1427_v17 = vpop.f32.mrf.mxu0 }
 0x57b   :  { %v1772_v63 = vpack.c.bf16 %v1427_v17, %v1424_v54 }
 0x57c   :  { %v6500_v15 = vpop.f32.mrf.mxu0 }
 0x57e   :  { %v1440_v39 = vpop.f32.mrf.mxu0  ;;  %6595 = vmatmul.mubr.msk.bf16.gmra.mxu1 %vm700_vm1, %v1108_v33  ;;  %v1770_v33 = vpack.c.bf16 %v1411_v0, %v1408_v61 }
 0x57f   :  { %6598 = vmatprep.mubr.msk.bf16.mxu1 %vm700_vm1, %v1109_v32 }
 0x580   :  { %v6501_v2 = vpop.f32.mrf.mxu0 }
 0x581   :  { %v1775_v8 = vpack.c.bf16 %v6501_v2, %v6500_v15 }
 0x582   :  { %v1443_v22 = vpop.f32.mrf.mxu0 }
 0x583   :  { %v1774_v23 = vpack.c.bf16 %v1443_v22, %v1440_v39  ;;  %6534 = vmatprep.subr.bf16.mxu0 %v1775_v8 }
 0x584   :  { %6535 = vmatpush3.bf16.msra.mxu0 %v1775_v8 }
 0x585   :  { %6536 = vmatprep.subr.bf16.mxu0 %v1774_v23 }
 0x586   :  { %6599 = vmatmul.mubr.msk.bf16.gmra.mxu1 %vm700_vm1, %v1110_v4 }
 0x588   :  { %6537 = vmatpush3.bf16.msra.mxu0 %v1774_v23 }
 0x589   :  { %6538 = vmatprep.subr.bf16.mxu0 %v1773_v20 }
 0x58c   :  { %6539 = vmatpush3.bf16.msra.mxu0 %v1773_v20 }
 0x58d   :  { %6540 = vmatprep.subr.bf16.mxu0 %v1772_v63 }
 0x590   :  { %6541 = vmatpush3.bf16.msra.mxu0 %v1772_v63 }
 0x591   :  { %6542 = vmatprep.subr.bf16.mxu0 %v1771_v46 }
 0x594   :  { %6543 = vmatpush3.bf16.msra.mxu0 %v1771_v46 }
 0x595   :  { %6544 = vmatprep.subr.bf16.mxu0 %v1770_v33 }
 0x598   :  { %6545 = vmatpush3.bf16.msra.mxu0 %v1770_v33 }
 0x599   :  { %6546 = vmatprep.subr.bf16.mxu0 %v1769_v11 }
 0x59c   :  { %6547 = vmatpush3.bf16.msra.mxu0 %v1769_v11 }
 0x59d   :  { %6548 = vmatprep.subr.bf16.mxu0 %v1768_v34 }
 0x5a0   :  { %6549 = vmatpush3.bf16.msra.mxu0 %v1768_v34 }
 0x60e   :  { %v6520_v28 = vpop.f32.mrf.mxu1 }
 0x60f   :  { %v1562_v43 = vadd.f32 %v6520_v28, %v8068_v42 }
 0x610   :  { %v1553_v25 = vpop.f32.mrf.mxu1 }
 0x611   :  { %v1554_v4 = vadd.f32 %v1553_v25, %v8060_v31 }
 0x612   :  { %v6521_v40 = vpop.f32.mrf.mxu1 }
 0x613   :  { %1616 = vmax.xlane.f32.xlu0 %v1554_v4  ;;  %v1565_v29 = vadd.f32 %v6521_v40, %v8085_v58 }
 0x614   :  { %v1556_v21 = vpop.f32.mrf.mxu1 }
 0x615   :  { %v1557_v52 = vadd.f32 %v1556_v21, %v8073_v48 }
 0x616   :  { %v6524_v13 = vpop.f32.mrf.mxu1 }
 0x617   :  { %1618 = vmax.xlane.f32.xlu1 %v1557_v52  ;;  %1620 = vmax.xlane.f32.xlu0 %v1562_v43  ;;  %v1578_v31 = vadd.f32 %v6524_v13, %v8103_v3 }
 0x618   :  { %v1569_v1 = vpop.f32.mrf.mxu1 }
 0x619   :  { %v1570_v9 = vadd.f32 %v1569_v1, %v8090_v36 }
 0x61a   :  { %v6525_v14 = vpop.f32.mrf.mxu1 }
 0x61b   :  { %1622 = vmax.xlane.f32.xlu1 %v1565_v29  ;;  %1624 = vmax.xlane.f32.xlu0 %v1570_v9  ;;  %v1581_v48 = vadd.f32 %v6525_v14, %v8121_v47 }
 0x61c   :  { %v1572_v55 = vpop.f32.mrf.mxu1 }
 0x61d   :  { %v1573_v12 = vadd.f32 %v1572_v55, %v8108_v35 }
 0x61e   :  { %v6528_v7 = vpop.f32.mrf.mxu1 }
 0x61f   :  { %1626 = vmax.xlane.f32.xlu1 %v1573_v12  ;;  %1628 = vmax.xlane.f32.xlu0 %v1578_v31  ;;  %v8397_v36 = vadd.f32 %v6528_v7, %v8139_v18 }
 0x620   :  { %v1585_v42 = vpop.f32.mrf.mxu1 }
 0x621   :  { %v1586_v53 = vadd.f32 %v1585_v42, %v8126_v59 }
 0x622   :  { %v6529_v6 = vpop.f32.mrf.mxu1 }
 0x623   :  { %1630 = vmax.xlane.f32.xlu1 %v1581_v48  ;;  %1632 = vmax.xlane.f32.xlu0 %v1586_v53  ;;  %v8402_v5 = vadd.f32 %v6529_v6, %v8157_v44 }
 0x624   :  { %v1588_v58 = vpop.f32.mrf.mxu1 }
 0x625   :  { %v1589_v50 = vadd.f32 %v1588_v58, %v8144_v10 }
 0x626   :  { %v6532_v3 = vpop.f32.mrf.mxu1 }
 0x627   :  { %1634 = vmax.xlane.f32.xlu1 %v1589_v50  ;;  %1636 = vmax.xlane.f32.xlu0 %v8397_v36  ;;  %v8410_v45 = vadd.f32 %v6532_v3, %v8175_v37 }
 0x628   :  { %v1601_v35 = vpop.f32.mrf.mxu1 }
 0x629   :  { %v8405_v47 = vadd.f32 %v1601_v35, %v8162_v56 }
 0x62a   :  { %v6533_v59 = vpop.f32.mrf.mxu1 }
 0x62b   :  { %1638 = vmax.xlane.f32.xlu1 %v8402_v5  ;;  %1640 = vmax.xlane.f32.xlu0 %v8405_v47  ;;  %v8418_v44 = vadd.f32 %v6533_v59, %v8193_v19 }
 0x62c   :  { %v1604_v18 = vpop.f32.mrf.mxu1 }
 0x62d   :  { %v8413_v10 = vadd.f32 %v1604_v18, %v8180_v49 }
 0x62f   :  { %1642 = vmax.xlane.f32.xlu1 %v8413_v10  ;;  %1644 = vmax.xlane.f32.xlu0 %v8410_v45 }
 0x633   :  { %1646 = vmax.xlane.f32.xlu1 %v8418_v44 }
 0x69c   :  { %v1617_v56 = vpop.xlane.xlu0 %1616 }
 0x69d   :  { %v1648_v38 = vsub.f32 %v1554_v4, %v1617_v56 }
 0x69f   :  { %v1664_v57 = vmul.f32 1.442695, %v1648_v38 }
 0x6a0   :  { %v1619_v60 = vpop.xlane.xlu1 %1618  ;;  %v1621_v62 = vpop.xlane.xlu0 %1620 }
 0x6a1   :  { %7169 = vpow2.f32 %v1664_v57  ;;  %v1649_v37 = vsub.f32 %v1557_v52, %v1619_v60  ;;  %v1650_v26 = vsub.f32 %v1562_v43, %v1621_v62  ;;  %v7038_v57 = vld [vmem:[%s10182_s2 + $0x8] sm:$0xff]  }
 0x6a2   :  { %6566 = vmatprep.subr.bf16.mxu0 %v7038_v57 }
 0x6a3   :  { %v1666_v61 = vmul.f32 1.442695, %v1649_v37  ;;  %v1668_v49 = vmul.f32 1.442695, %v1650_v26 }
 0x6a4   :  { %v1623_v24 = vpop.xlane.xlu1 %1622  ;;  %v1625_v0 = vpop.xlane.xlu0 %1624 }
 0x6a5   :  { %7171 = vpow2.f32 %v1666_v61  ;;  %v1651_v27 = vsub.f32 %v1565_v29, %v1623_v24  ;;  %v1652_v51 = vsub.f32 %v1570_v9, %v1625_v0 }
 0x6a6   :  { %7173 = vpow2.f32 %v1668_v49 }
 0x6a7   :  { %v1670_v19 = vmul.f32 1.442695, %v1651_v27  ;;  %v1672_v54 = vmul.f32 1.442695, %v1652_v51 }
 0x6a8   :  { %v1627_v41 = vpop.xlane.xlu1 %1626  ;;  %v1629_v17 = vpop.xlane.xlu0 %1628 }
 0x6a9   :  { %7175 = vpow2.f32 %v1670_v19  ;;  %v1653_v15 = vsub.f32 %v1573_v12, %v1627_v41  ;;  %v1654_v32 = vsub.f32 %v1578_v31, %v1629_v17 }
 0x6aa   :  { %7177 = vpow2.f32 %v1672_v54 }
 0x6ab   :  { %v1674_v39 = vmul.f32 1.442695, %v1653_v15  ;;  %v1676_v2 = vmul.f32 1.442695, %v1654_v32 }
 0x6ac   :  { %v1631_v8 = vpop.xlane.xlu1 %1630  ;;  %v1633_v22 = vpop.xlane.xlu0 %1632 }
 0x6ad   :  { %7179 = vpow2.f32 %v1674_v39  ;;  %v1655_v23 = vsub.f32 %v1581_v48, %v1631_v8  ;;  %v1656_v20 = vsub.f32 %v1586_v53, %v1633_v22 }
 0x6ae   :  { %v8421_v63 = vpop.eup %7169  ;;  %7181 = vpow2.f32 %v1676_v2 }
 0x6af   :  { %v1678_v46 = vmul.f32 1.442695, %v1655_v23  ;;  %v1680_v33 = vmul.f32 1.442695, %v1656_v20  ;;  %1696 = vadd.xlane.f32.xlu0 %v8421_v63 }
 0x6b0   :  { %v1635_v11 = vpop.xlane.xlu1 %1634  ;;  %v1637_v34 = vpop.xlane.xlu0 %1636 }
 0x6b1   :  { %7183 = vpow2.f32 %v1678_v46  ;;  %v1657_v28 = vsub.f32 %v1589_v50, %v1635_v11  ;;  %v1658_v25 = vsub.f32 %v8397_v36, %v1637_v34 }
 0x6b2   :  { %v8425_v4 = vpop.eup %7171  ;;  %7185 = vpow2.f32 %v1680_v33 }
 0x6b3   :  { %v8427_v40 = vpop.eup %7173  ;;  %v1682_v21 = vmul.f32 1.442695, %v1657_v28  ;;  %v1684_v43 = vmul.f32 1.442695, %v1658_v25  ;;  %1698 = vadd.xlane.f32.xlu1 %v8425_v4 }
 0x6b4   :  { %1700 = vadd.xlane.f32.xlu0 %v8427_v40  ;;  %v1639_v52 = vpop.xlane.xlu1 %1638  ;;  %v1641_v13 = vpop.xlane.xlu0 %1640 }
 0x6b5   :  { %7187 = vpow2.f32 %v1682_v21  ;;  %v1659_v1 = vsub.f32 %v8402_v5, %v1639_v52  ;;  %v1660_v29 = vsub.f32 %v8405_v47, %v1641_v13 }
 0x6b6   :  { %v8433_v9 = vpop.eup %7175  ;;  %7189 = vpow2.f32 %v1684_v43 }
 0x6b7   :  { %v8435_v14 = vpop.eup %7177  ;;  %v1686_v55 = vmul.f32 1.442695, %v1659_v1  ;;  %v1688_v31 = vmul.f32 1.442695, %v1660_v29  ;;  %1702 = vadd.xlane.f32.xlu1 %v8433_v9 }
 0x6b8   :  { %1704 = vadd.xlane.f32.xlu0 %v8435_v14  ;;  %v1643_v12 = vpop.xlane.xlu1 %1642  ;;  %v1645_v7 = vpop.xlane.xlu0 %1644 }
 0x6b9   :  { %7191 = vpow2.f32 %v1686_v55  ;;  %v1661_v42 = vsub.f32 %v8413_v10, %v1643_v12  ;;  %v1662_v48 = vsub.f32 %v8410_v45, %v1645_v7 }
 0x6ba   :  { %v8441_v53 = vpop.eup %7179  ;;  %7193 = vpow2.f32 %v1688_v31 }
 0x6bb   :  { %v8443_v6 = vpop.eup %7181  ;;  %v1690_v58 = vmul.f32 1.442695, %v1661_v42  ;;  %v1692_v36 = vmul.f32 1.442695, %v1662_v48  ;;  %1706 = vadd.xlane.f32.xlu1 %v8441_v53 }
 0x6bc   :  { %1708 = vadd.xlane.f32.xlu0 %v8443_v6  ;;  %v1647_v50 = vpop.xlane.xlu1 %1646 }
 0x6bd   :  { %7195 = vpow2.f32 %v1690_v58  ;;  %v1663_v3 = vsub.f32 %v8418_v44, %v1647_v50 }
 0x6be   :  { %v8448_v35 = vpop.eup %7183  ;;  %7197 = vpow2.f32 %v1692_v36 }
 0x6bf   :  { %v8450_v5 = vpop.eup %7185  ;;  %v1694_v47 = vmul.f32 1.442695, %v1663_v3  ;;  %1710 = vadd.xlane.f32.xlu1 %v8448_v35 }
 0x6c0   :  { %1712 = vadd.xlane.f32.xlu0 %v8450_v5 }
 0x6c1   :  { %7199 = vpow2.f32 %v1694_v47 }
 0x6c2   :  { %v8454_v59 = vpop.eup %7187 }
 0x6c3   :  { %v8456_v18 = vpop.eup %7189  ;;  %1714 = vadd.xlane.f32.xlu1 %v8454_v59 }
 0x6c4   :  { %1716 = vadd.xlane.f32.xlu0 %v8456_v18 }
 0x6c6   :  { %v8460_v45 = vpop.eup %7191 }
 0x6c7   :  { %v8462_v10 = vpop.eup %7193  ;;  %1718 = vadd.xlane.f32.xlu1 %v8460_v45 }
 0x6c8   :  { %1720 = vadd.xlane.f32.xlu0 %v8462_v10 }
 0x6ca   :  { %v8466_v44 = vpop.eup %7195 }
 0x6cb   :  { %v8468_v56 = vpop.eup %7197  ;;  %1722 = vadd.xlane.f32.xlu1 %v8466_v44 }
 0x6cc   :  { %1724 = vadd.xlane.f32.xlu0 %v8468_v56 }
 0x6ce   :  { %v8472_v38 = vpop.eup %7199 }
 0x6cf   :  { %1726 = vadd.xlane.f32.xlu1 %v8472_v38 }
 0x738   :  { %v1697_v60 = vpop.xlane.xlu0 %1696 }
 0x739   :  { %7201 = vrcp.f32 %v1697_v60 }
 0x73c   :  { %v1699_v62 = vpop.xlane.xlu1 %1698 }
 0x73d   :  { %7203 = vrcp.f32 %v1699_v62  ;;  %v1701_v37 = vpop.xlane.xlu0 %1700 }
 0x73e   :  { %7205 = vrcp.f32 %v1701_v37 }
 0x740   :  { %v1703_v26 = vpop.xlane.xlu1 %1702 }
 0x741   :  { %7207 = vrcp.f32 %v1703_v26  ;;  %v1705_v61 = vpop.xlane.xlu0 %1704 }
 0x742   :  { %7209 = vrcp.f32 %v1705_v61 }
 0x744   :  { %v1707_v49 = vpop.xlane.xlu1 %1706 }
 0x745   :  { %7211 = vrcp.f32 %v1707_v49  ;;  %v1709_v24 = vpop.xlane.xlu0 %1708 }
 0x746   :  { %7213 = vrcp.f32 %v1709_v24  ;;  %v7202_v0 = vpop.eup %7201 }
 0x747   :  { %v1744_v54 = vmul.f32 %v7202_v0, %v8421_v63 }
 0x748   :  { %v1711_v27 = vpop.xlane.xlu1 %1710 }
 0x749   :  { %7215 = vrcp.f32 %v1711_v27  ;;  %v1713_v51 = vpop.xlane.xlu0 %1712 }
 0x74a   :  { %v7204_v19 = vpop.eup %7203  ;;  %7217 = vrcp.f32 %v1713_v51 }
 0x74b   :  { %v1745_v41 = vmul.f32 %v7204_v19, %v8425_v4  ;;  %v7206_v17 = vpop.eup %7205 }
 0x74c   :  { %v1715_v15 = vpop.xlane.xlu1 %1714  ;;  %v1746_v8 = vmul.f32 %v7206_v17, %v8427_v40 }
 0x74d   :  { %7219 = vrcp.f32 %v1715_v15  ;;  %v1717_v32 = vpop.xlane.xlu0 %1716  ;;  %v1760_v39 = vpack.c.bf16 %v1745_v41, %v1744_v54 }
 0x74e   :  { %v7208_v2 = vpop.eup %7207  ;;  %7221 = vrcp.f32 %v1717_v32 }
 0x74f   :  { %6550 = vmatprep.mubr.bf16.mxu0 %v1760_v39  ;;  %v1747_v22 = vmul.f32 %v7208_v2, %v8433_v9  ;;  %v7210_v23 = vpop.eup %7209 }
 0x750   :  { %v1719_v20 = vpop.xlane.xlu1 %1718  ;;  %v1748_v11 = vmul.f32 %v7210_v23, %v8435_v14 }
 0x751   :  { %7223 = vrcp.f32 %v1719_v20  ;;  %v1721_v46 = vpop.xlane.xlu0 %1720  ;;  %v1761_v33 = vpack.c.bf16 %v1747_v22, %v1746_v8  ;;  %v6588_v8 = vpop.f32.mrf.mxu1 }
 0x752   :  { %v7212_v63 = vpop.eup %7211  ;;  %7225 = vrcp.f32 %v1721_v46 }
 0x753   :  { %6551 = vmatmul.mubr.bf16.vlgmr.msra.gmra.mxu0 %v1761_v33  ;;  %v1749_v34 = vmul.f32 %v7212_v63, %v8441_v53  ;;  %v7214_v28 = vpop.eup %7213  ;;  %v2075_v22 = vpop.f32.mrf.mxu1 }
 0x754   :  { %v1723_v25 = vpop.xlane.xlu1 %1722  ;;  %6567 = vmatpush3.bf16.msra.mxu0 %v7038_v57  ;;  %v1750_v43 = vmul.f32 %v7214_v28, %v8443_v6 }
 0x755   :  { %7227 = vrcp.f32 %v1723_v25  ;;  %v1725_v4 = vpop.xlane.xlu0 %1724  ;;  %v1762_v40 = vpack.c.bf16 %v1749_v34, %v1748_v11  ;;  %v6589_v23 = vpop.f32.mrf.mxu1  ;;  %v10193_v25 = vsub.s32 2, %v7816_v16 }
 0x756   :  { %v7216_v21 = vpop.eup %7215  ;;  %7229 = vrcp.f32 %v1725_v4 }
 0x757   :  { %6554 = vmatprep.mubr.bf16.mxu0 %v1762_v40  ;;  %v1751_v52 = vmul.f32 %v7216_v21, %v8448_v35  ;;  %v7218_v13 = vpop.eup %7217  ;;  %v2078_v20 = vpop.f32.mrf.mxu1 }
 0x758   :  { %v1727_v1 = vpop.xlane.xlu1 %1726  ;;  %v1752_v14 = vmul.f32 %v7218_v13, %v8450_v5 }
 0x759   :  { %7231 = vrcp.f32 %v1727_v1  ;;  %v1763_v29 = vpack.c.bf16 %v1751_v52, %v1750_v43  ;;  %v6592_v46 = vpop.f32.mrf.mxu1  ;;  %v7521_v52 = vld [vmem:[%s10180_s0 + $0x10] sm:$0xff]  ;;  %v8509_v1 = vld [vmem:[%s10185_s5] sm:$0x7f] }
 0x75a   :  { %v7220_v9 = vpop.eup %7219 }
 0x75b   :  { %6555 = vmatmul.mubr.bf16.gmra.mxu0 %v1763_v29  ;;  %v1753_v55 = vmul.f32 %v7220_v9, %v8454_v59  ;;  %v7222_v31 = vpop.eup %7221  ;;  %v2091_v33 = vpop.f32.mrf.mxu1  ;;  %v8514_v29 = vrot.slane %v8509_v1, %v10193_v25  ;;  %v7523_v9 = vld [vmem:[%s10180_s0] sm:$0xff] }
 0x75c   :  { %v1754_v42 = vmul.f32 %v7222_v31, %v8456_v18 }
 0x75d   :  { %v1764_v12 = vpack.c.bf16 %v1753_v55, %v1752_v14  ;;  %v6593_v63 = vpop.f32.mrf.mxu1 }
 0x75e   :  { %v7224_v7 = vpop.eup %7223 }
 0x75f   :  { %6558 = vmatprep.mubr.bf16.mxu0 %v1764_v12  ;;  %v1755_v48 = vmul.f32 %v7224_v7, %v8460_v45  ;;  %v7226_v53 = vpop.eup %7225  ;;  %v2094_v11 = vpop.f32.mrf.mxu1 }
 0x760   :  { %v1756_v36 = vmul.f32 %v7226_v53, %v8462_v10 }
 0x761   :  { %v1765_v6 = vpack.c.bf16 %v1755_v48, %v1754_v42  ;;  %v6596_v4 = vpop.f32.mrf.mxu1  ;;  %v7524_v48 = vld [vmem:[%s10180_s0 + $0x18] sm:$0xff] }
 0x762   :  { %v7228_v58 = vpop.eup %7227 }
 0x763   :  { %6559 = vmatmul.mubr.bf16.gmra.mxu0 %v1765_v6  ;;  %v1757_v50 = vmul.f32 %v7228_v58, %v8466_v44  ;;  %v7230_v3 = vpop.eup %7229  ;;  %v2107_v31 = vpop.f32.mrf.mxu1 }
 0x764   :  { %v1758_v47 = vmul.f32 %v7230_v3, %v8468_v56 }
 0x765   :  { %v1766_v35 = vpack.c.bf16 %v1757_v50, %v1756_v36  ;;  %v7525_v36 = vld [vmem:[%s10180_s0 + $0x8] sm:$0xff] }
 0x766   :  { %v7232_v5 = vpop.eup %7231 }
 0x767   :  { %6562 = vmatprep.mubr.bf16.mxu0 %v1766_v35  ;;  %v1759_v59 = vmul.f32 %v7232_v5, %v8472_v38  ;;  %v6597_v5 = vpop.f32.mrf.mxu1 }
 0x769   :  { %v1767_v57 = vpack.c.bf16 %v1759_v59, %v1758_v47 }
 0x76b   :  { %6563 = vmatmul.mubr.bf16.gmra.mxu0 %v1767_v57 }
 0x813   :  { %v6552_v18 = vpop.f32.mrf.mxu0 }
 0x815   :  { %v1810_v45 = vpop.f32.mrf.mxu0 }
 0x817   :  { %v6553_v60 = vpop.f32.mrf.mxu0 }
 0x818   :  { %v1874_v26 = vpack.c.bf16 %v6553_v60, %v6552_v18 }
 0x819   :  { %v1813_v62 = vpop.f32.mrf.mxu0 }
 0x81a   :  { %v1873_v37 = vpack.c.bf16 %v1813_v62, %v1810_v45  ;;  %v7526_v45 = vld [vmem:[%s10180_s0 + $0x30] sm:$0xff] }
 0x81b   :  { %v6556_v61 = vpop.f32.mrf.mxu0 }
 0x81c   :  { %6568 = vmatprep.mubr.msk.bf16.mxu0 %vm700_vm1, %v1873_v37  ;;  %v7527_v37 = vld [vmem:[%s10180_s0 + $0x20] sm:$0xff] }
 0x81d   :  { %v1826_v10 = vpop.f32.mrf.mxu0  ;;  %6569 = vmatmul.mubr.msk.bf16.vlgmr.msra.gmra.mxu0 %vm700_vm1, %v1874_v26 }
 0x81f   :  { %v6557_v44 = vpop.f32.mrf.mxu0 }
 0x820   :  { %v1876_v56 = vpack.c.bf16 %v6557_v44, %v6556_v61 }
 0x821   :  { %v1829_v49 = vpop.f32.mrf.mxu0 }
 0x822   :  { %v1875_v24 = vpack.c.bf16 %v1829_v49, %v1826_v10  ;;  %v2110_v49 = vpop.f32.mrf.mxu1 }
 0x823   :  { %v6560_v0 = vpop.f32.mrf.mxu0 }
 0x824   :  { %6572 = vmatprep.mubr.msk.bf16.mxu0 %vm700_vm1, %v1875_v24 }
 0x825   :  { %v1842_v38 = vpop.f32.mrf.mxu0  ;;  %6573 = vmatmul.mubr.msk.bf16.gmra.mxu0 %vm700_vm1, %v1876_v56 }
 0x827   :  { %v6561_v27 = vpop.f32.mrf.mxu0 }
 0x828   :  { %v1878_v54 = vpack.c.bf16 %v6561_v27, %v6560_v0 }
 0x829   :  { %v1845_v51 = vpop.f32.mrf.mxu0 }
 0x82a   :  { %v1877_v19 = vpack.c.bf16 %v1845_v51, %v1842_v38 }
 0x82b   :  { %v6564_v41 = vpop.f32.mrf.mxu0 }
 0x82c   :  { %6576 = vmatprep.mubr.msk.bf16.mxu0 %vm700_vm1, %v1877_v19  ;;  %v7528_v19 = vld [vmem:[%s10180_s0 + $0x38] sm:$0xff] }
 0x82d   :  { %v1858_v17 = vpop.f32.mrf.mxu0  ;;  %6577 = vmatmul.mubr.msk.bf16.gmra.mxu0 %vm700_vm1, %v1878_v54 }
 0x82f   :  { %v6565_v15 = vpop.f32.mrf.mxu0 }
 0x830   :  { %v1880_v2 = vpack.c.bf16 %v6565_v15, %v6564_v41  ;;  %v7529_v41 = vld [vmem:[%s10180_s0 + $0x28] sm:$0xff] }
 0x831   :  { %v1861_v32 = vpop.f32.mrf.mxu0 }
 0x832   :  { %v1879_v39 = vpack.c.bf16 %v1861_v32, %v1858_v17 }
 0x834   :  { %6580 = vmatprep.mubr.msk.bf16.mxu0 %vm700_vm1, %v1879_v39  ;;  %v6600_v39 = vpop.f32.mrf.mxu1 }
 0x835   :  { %6581 = vmatmul.mubr.msk.bf16.gmra.mxu0 %vm700_vm1, %v1880_v2 }
 0x8dd   :  { %v6570_v34 = vpop.f32.mrf.mxu0 }
 0x8de   :  { %v2084_v28 = vadd.f32 %v6588_v8, %v6570_v34 }
 0x8df   :  { %v1948_v40 = vpop.f32.mrf.mxu0 }
 0x8e0   :  { %v2076_v21 = vadd.f32 %v2075_v22, %v1948_v40  ;;  %v2140_v13 = vadd.f32 %v7521_v52, %v2084_v28  ;;  %v2123_v40 = vpop.f32.mrf.mxu1 }
 0x8e1   :  { %v6571_v43 = vpop.f32.mrf.mxu0 }
 0x8e2   :  { %v2138_v14 = vadd.f32 %v7523_v9, %v2076_v21  ;;  %v2087_v55 = vadd.f32 %v6589_v23, %v6571_v43  ;;  %v8526_v58 = vadd.f32 %v8514_v29, %v2140_v13  ;;  %v7530_v23 = vld [vmem:[%s10180_s0 + $0x50] sm:$0xff]  ;;  %v7532_v9 = vld [vmem:[%s10180_s0 + $0x58] sm:$0xff] }
 0x8e3   :  { %v1951_v12 = vpop.f32.mrf.mxu0 }
 0x8e4   :  { %v8520_v7 = vadd.f32 %v8514_v29, %v2138_v14  ;;  %v2079_v42 = vadd.f32 %v2078_v20, %v1951_v12  ;;  %v2141_v53 = vadd.f32 %v7524_v48, %v2087_v55  ;;  %v2180_v10 = vsel %vm61_vm0, %v8526_v58, 0.0 }
 0x8e5   :  { %v6574_v6 = vpop.f32.mrf.mxu0 }
 0x8e6   :  { %v2139_v50 = vadd.f32 %v7525_v36, %v2079_v42  ;;  %v2100_v3 = vadd.f32 %v6592_v46, %v6574_v6  ;;  %v2174_v35 = vsel %vm61_vm0, %v8520_v7, 0.0  ;;  %v8537_v18 = vadd.f32 %v8514_v29, %v2141_v53  ;;  %v6601_v6 = vpop.f32.mrf.mxu1 }
 0x8e7   :  { %2175 = vadd.xlane.f32.xlu0 %v2174_v35  ;;  %v1964_v47 = vpop.f32.mrf.mxu0 }
 0x8e8   :  { %v2092_v59 = vadd.f32 %v2091_v33, %v1964_v47  ;;  %v8534_v57 = vadd.f32 %v8514_v29, %v2139_v50  ;;  %v2144_v60 = vadd.f32 %v7526_v45, %v2100_v3  ;;  %v2183_v51 = vsel %vm61_vm0, %v8537_v18, 0.0 }
 0x8e9   :  { %v6575_v62 = vpop.f32.mrf.mxu0 }
 0x8ea   :  { %v2142_v26 = vadd.f32 %v7527_v37, %v2092_v59  ;;  %v2103_v61 = vadd.f32 %v6593_v63, %v6575_v62  ;;  %v2177_v44 = vsel %vm61_vm0, %v8534_v57, 0.0  ;;  %v8553_v38 = vadd.f32 %v8514_v29, %v2144_v60  ;;  %v7534_v59 = vld [vmem:[%s10180_s0 + $0x70] sm:$0xff]  ;;  %v7535_v60 = vld [vmem:[%s10180_s0 + $0x60] sm:$0xff] }
 0x8eb   :  { %2181 = vadd.xlane.f32.xlu0 %v2180_v10  ;;  %2178 = vadd.xlane.f32.xlu1 %v2177_v44  ;;  %v1967_v24 = vpop.f32.mrf.mxu0 }
 0x8ec   :  { %v8550_v56 = vadd.f32 %v8514_v29, %v2142_v26  ;;  %v2095_v0 = vadd.f32 %v2094_v11, %v1967_v24  ;;  %v2145_v54 = vadd.f32 %v7528_v19, %v2103_v61  ;;  %v2192_v33 = vsel %vm61_vm0, %v8553_v38, 0.0  ;;  %v7531_v11 = vld [vmem:[%s10180_s0 + $0x40] sm:$0xff]  ;;  %v2126_v61 = vpop.f32.mrf.mxu1  ;;  %v7537_v19 = vld [vmem:[%s10180_s0 + $0x68] sm:$0xff] }
 0x8ed   :  { %v6578_v27 = vpop.f32.mrf.mxu0 }
 0x8ee   :  { %v2143_v17 = vadd.f32 %v7529_v41, %v2095_v0  ;;  %v2116_v15 = vadd.f32 %v6596_v4, %v6578_v27  ;;  %v2186_v32 = vsel %vm61_vm0, %v8550_v56, 0.0  ;;  %v8574_v63 = vadd.f32 %v8514_v29, %v2145_v54  ;;  %v7536_v27 = vld [vmem:[%s10180_s0 + $0x78] sm:$0xff] }
 0x8ef   :  { %2184 = vadd.xlane.f32.xlu1 %v2183_v51  ;;  %2187 = vadd.xlane.f32.xlu0 %v2186_v32  ;;  %v1980_v2 = vpop.f32.mrf.mxu0 }
 0x8f0   :  { %v8566_v8 = vadd.f32 %v8514_v29, %v2143_v17  ;;  %v2108_v22 = vadd.f32 %v2107_v31, %v1980_v2  ;;  %v2148_v20 = vadd.f32 %v7530_v23, %v2116_v15  ;;  %v7533_v31 = vld [vmem:[%s10180_s0 + $0x48] sm:$0xff]  ;;  %v2195_v48 = vsel %vm61_vm0, %v8574_v63, 0.0 }
 0x8f1   :  { %v6579_v46 = vpop.f32.mrf.mxu0 }
 0x8f2   :  { %v2146_v34 = vadd.f32 %v7531_v11, %v2108_v22  ;;  %v2119_v28 = vadd.f32 %v6597_v5, %v6579_v46  ;;  %v2189_v4 = vsel %vm61_vm0, %v8566_v8, 0.0  ;;  %v8585_v13 = vadd.f32 %v8514_v29, %v2148_v20 }
 0x8f3   :  { %2193 = vadd.xlane.f32.xlu0 %v2192_v33  ;;  %2190 = vadd.xlane.f32.xlu1 %v2189_v4  ;;  %v1983_v21 = vpop.f32.mrf.mxu0 }
 0x8f4   :  { %v8582_v43 = vadd.f32 %v8514_v29, %v2146_v34  ;;  %v2111_v52 = vadd.f32 %v2110_v49, %v1983_v21  ;;  %v2149_v14 = vadd.f32 %v7532_v9, %v2119_v28  ;;  %v2204_v47 = vsel %vm61_vm0, %v8585_v13, 0.0 }
 0x8f5   :  { %v6582_v55 = vpop.f32.mrf.mxu0 }
 0x8f6   :  { %v2147_v12 = vadd.f32 %v7533_v31, %v2111_v52  ;;  %v2132_v42 = vadd.f32 %v6600_v39, %v6582_v55  ;;  %v2198_v53 = vsel %vm61_vm0, %v8582_v43, 0.0  ;;  %v8601_v35 = vadd.f32 %v8514_v29, %v2149_v14 }
 0x8f7   :  { %2196 = vadd.xlane.f32.xlu1 %v2195_v48  ;;  %2199 = vadd.xlane.f32.xlu0 %v2198_v53  ;;  %v1996_v36 = vpop.f32.mrf.mxu0 }
 0x8f8   :  { %v8598_v50 = vadd.f32 %v8514_v29, %v2147_v12  ;;  %v2124_v3 = vadd.f32 %v2123_v40, %v1996_v36  ;;  %v2152_v45 = vadd.f32 %v7534_v59, %v2132_v42  ;;  %v2207_v24 = vsel %vm61_vm0, %v8601_v35, 0.0 }
 0x8f9   :  { %v6583_v5 = vpop.f32.mrf.mxu0 }
 0x8fa   :  { %v2150_v62 = vadd.f32 %v7535_v60, %v2124_v3  ;;  %v2135_v37 = vadd.f32 %v6601_v6, %v6583_v5  ;;  %v2201_v26 = vsel %vm61_vm0, %v8598_v50, 0.0  ;;  %v8619_v0 = vadd.f32 %v8514_v29, %v2152_v45 }
 0x8fb   :  { %2205 = vadd.xlane.f32.xlu0 %v2204_v47  ;;  %2202 = vadd.xlane.f32.xlu1 %v2201_v26  ;;  %v1999_v10 = vpop.f32.mrf.mxu0 }
 0x8fc   :  { %v8614_v44 = vadd.f32 %v8514_v29, %v2150_v62  ;;  %v2127_v49 = vadd.f32 %v2126_v61, %v1999_v10  ;;  %v2153_v51 = vadd.f32 %v7536_v27, %v2135_v37  ;;  %v2216_v39 = vsel %vm61_vm0, %v8619_v0, 0.0 }
 0x8fe   :  { %v2151_v54 = vadd.f32 %v7537_v19, %v2127_v49  ;;  %v2210_v41 = vsel %vm61_vm0, %v8614_v44, 0.0  ;;  %v8633_v15 = vadd.f32 %v8514_v29, %v2153_v51 }
 0x8ff   :  { %2208 = vadd.xlane.f32.xlu1 %v2207_v24  ;;  %2211 = vadd.xlane.f32.xlu0 %v2210_v41 }
 0x900   :  { %v8630_v17 = vadd.f32 %v8514_v29, %v2151_v54  ;;  %v2219_v2 = vsel %vm61_vm0, %v8633_v15, 0.0 }
 0x902   :  { %v2213_v32 = vsel %vm61_vm0, %v8630_v17, 0.0 }
 0x903   :  { %2214 = vadd.xlane.f32.xlu1 %v2213_v32  ;;  %2217 = vadd.xlane.f32.xlu0 %v2216_v39 }
 0x907   :  { %2220 = vadd.xlane.f32.xlu1 %v2219_v2 }
 0x970   :  { %v2176_v22 = vpop.xlane.xlu0 %2175 }
 0x971   :  { %v2222_v23 = vmul.f32 0.03125, %v2176_v22 }
 0x973   :  { %v8642_v20 = vsub.f32 %v8520_v7, %v2222_v23 }
 0x974   :  { %v2182_v46 = vpop.xlane.xlu0 %2181  ;;  %v2179_v29 = vpop.xlane.xlu1 %2178 }
 0x975   :  { %v2224_v33 = vmul.f32 0.03125, %v2182_v46  ;;  %v2223_v11 = vmul.f32 0.03125, %v2179_v29  ;;  %v2254_v34 = vmul.f32 %v8642_v20, %v8642_v20  ;;  %v7039_v29 = vld [vmem:[%s10183_s3 + $0x8] sm:$0xff]  }
 0x976   :  { %6602 = vmatprep.subr.bf16.mxu0 %v7039_v29 }
 0x977   :  { %v8647_v28 = vsub.f32 %v8526_v58, %v2224_v33  ;;  %v8650_v4 = vsub.f32 %v8534_v57, %v2223_v11  ;;  %v2270_v40 = vsel %vm61_vm0, %v2254_v34, 0.0  ;;  %6603 = vmatpush3.bf16.msra.mxu0 %v7039_v29  ;;  %v7041_v29 = vld [vmem:[%s10184_s4 + $0x38] sm:$0xff]  }
 0x978   :  { %v2185_v21 = vpop.xlane.xlu1 %2184  ;;  %v2188_v52 = vpop.xlane.xlu0 %2187  ;;  %2271 = vadd.xlane.f32.xlu0 %v2270_v40  ;;  %6622 = vmatprep.subr.bf16.mxu1 %v7041_v29 }
 0x979   :  { %v2225_v9 = vmul.f32 0.03125, %v2185_v21  ;;  %v2226_v14 = vmul.f32 0.03125, %v2188_v52  ;;  %v2255_v55 = vmul.f32 %v8650_v4, %v8650_v4  ;;  %v2256_v31 = vmul.f32 %v8647_v28, %v8647_v28  ;;  %6623 = vmatpush3.bf16.msra.mxu1 %v7041_v29 }
 0x97b   :  { %v8658_v12 = vsub.f32 %v8537_v18, %v2225_v9  ;;  %v8661_v42 = vsub.f32 %v8550_v56, %v2226_v14  ;;  %v2273_v48 = vsel %vm61_vm0, %v2255_v55, 0.0  ;;  %v2276_v53 = vsel %vm61_vm0, %v2256_v31, 0.0 }
 0x97c   :  { %v2194_v6 = vpop.xlane.xlu0 %2193  ;;  %v2191_v36 = vpop.xlane.xlu1 %2190  ;;  %2274 = vadd.xlane.f32.xlu1 %v2273_v48  ;;  %2277 = vadd.xlane.f32.xlu0 %v2276_v53 }
 0x97d   :  { %v2228_v3 = vmul.f32 0.03125, %v2194_v6  ;;  %v2227_v5 = vmul.f32 0.03125, %v2191_v36  ;;  %v2257_v47 = vmul.f32 %v8658_v12, %v8658_v12  ;;  %v2258_v59 = vmul.f32 %v8661_v42, %v8661_v42 }
 0x97f   :  { %v8670_v45 = vsub.f32 %v8553_v38, %v2228_v3  ;;  %v8673_v60 = vsub.f32 %v8566_v8, %v2227_v5  ;;  %v2279_v62 = vsel %vm61_vm0, %v2257_v47, 0.0  ;;  %v2282_v37 = vsel %vm61_vm0, %v2258_v59, 0.0 }
 0x980   :  { %v2197_v26 = vpop.xlane.xlu1 %2196  ;;  %v2200_v61 = vpop.xlane.xlu0 %2199  ;;  %2280 = vadd.xlane.f32.xlu1 %v2279_v62  ;;  %2283 = vadd.xlane.f32.xlu0 %v2282_v37 }
 0x981   :  { %v2229_v10 = vmul.f32 0.03125, %v2197_v26  ;;  %v2230_v49 = vmul.f32 0.03125, %v2200_v61  ;;  %v2259_v24 = vmul.f32 %v8673_v60, %v8673_v60  ;;  %v2260_v27 = vmul.f32 %v8670_v45, %v8670_v45 }
 0x983   :  { %v8682_v51 = vsub.f32 %v8574_v63, %v2229_v10  ;;  %v8685_v19 = vsub.f32 %v8582_v43, %v2230_v49  ;;  %v2285_v54 = vsel %vm61_vm0, %v2259_v24, 0.0  ;;  %v2288_v41 = vsel %vm61_vm0, %v2260_v27, 0.0 }
 0x984   :  { %v2206_v32 = vpop.xlane.xlu0 %2205  ;;  %v2203_v39 = vpop.xlane.xlu1 %2202  ;;  %2286 = vadd.xlane.f32.xlu1 %v2285_v54  ;;  %2289 = vadd.xlane.f32.xlu0 %v2288_v41 }
 0x985   :  { %v2232_v2 = vmul.f32 0.03125, %v2206_v32  ;;  %v2231_v22 = vmul.f32 0.03125, %v2203_v39  ;;  %v2261_v23 = vmul.f32 %v8682_v51, %v8682_v51  ;;  %v2262_v46 = vmul.f32 %v8685_v19, %v8685_v19 }
 0x987   :  { %v8697_v33 = vsub.f32 %v8585_v13, %v2232_v2  ;;  %v8700_v11 = vsub.f32 %v8598_v50, %v2231_v22  ;;  %v2291_v34 = vsel %vm61_vm0, %v2261_v23, 0.0  ;;  %v2294_v40 = vsel %vm61_vm0, %v2262_v46, 0.0  ;;  %v7040_v46 = vld [vmem:[%s10183_s3] sm:$0xff]  }
 0x988   :  { %v2209_v21 = vpop.xlane.xlu1 %2208  ;;  %2292 = vadd.xlane.f32.xlu1 %v2291_v34  ;;  %2295 = vadd.xlane.f32.xlu0 %v2294_v40  ;;  %v2212_v52 = vpop.xlane.xlu0 %2211 }
 0x989   :  { %v2233_v9 = vmul.f32 0.03125, %v2209_v21  ;;  %v2234_v14 = vmul.f32 0.03125, %v2212_v52  ;;  %v2263_v55 = vmul.f32 %v8700_v11, %v8700_v11  ;;  %v2264_v31 = vmul.f32 %v8697_v33, %v8697_v33  ;;  %6604 = vmatprep.subr.bf16.mxu0 %v7040_v46 }
 0x98a   :  { %6605 = vmatpush3.bf16.msra.mxu0 %v7040_v46 }
 0x98b   :  { %v8709_v48 = vsub.f32 %v8601_v35, %v2233_v9  ;;  %v8712_v53 = vsub.f32 %v8614_v44, %v2234_v14  ;;  %v2297_v6 = vsel %vm61_vm0, %v2263_v55, 0.0  ;;  %v2300_v36 = vsel %vm61_vm0, %v2264_v31, 0.0 }
 0x98c   :  { %2298 = vadd.xlane.f32.xlu1 %v2297_v6  ;;  %v2215_v3 = vpop.xlane.xlu1 %2214  ;;  %2301 = vadd.xlane.f32.xlu0 %v2300_v36  ;;  %v2218_v5 = vpop.xlane.xlu0 %2217 }
 0x98d   :  { %v2235_v47 = vmul.f32 0.03125, %v2215_v3  ;;  %v2236_v59 = vmul.f32 0.03125, %v2218_v5  ;;  %v2265_v62 = vmul.f32 %v8709_v48, %v8709_v48  ;;  %v2266_v37 = vmul.f32 %v8712_v53, %v8712_v53 }
 0x98f   :  { %v8721_v26 = vsub.f32 %v8630_v17, %v2235_v47  ;;  %v8724_v61 = vsub.f32 %v8619_v0, %v2236_v59  ;;  %v2303_v10 = vsel %vm61_vm0, %v2265_v62, 0.0  ;;  %v2306_v49 = vsel %vm61_vm0, %v2266_v37, 0.0 }
 0x990   :  { %2304 = vadd.xlane.f32.xlu1 %v2303_v10  ;;  %v2221_v24 = vpop.xlane.xlu1 %2220  ;;  %2307 = vadd.xlane.f32.xlu0 %v2306_v49 }
 0x991   :  { %v2237_v27 = vmul.f32 0.03125, %v2221_v24  ;;  %v2267_v54 = vmul.f32 %v8721_v26, %v8721_v26  ;;  %v2268_v41 = vmul.f32 %v8724_v61, %v8724_v61 }
 0x993   :  { %v8733_v32 = vsub.f32 %v8633_v15, %v2237_v27  ;;  %v2309_v39 = vsel %vm61_vm0, %v2267_v54, 0.0  ;;  %v2312_v2 = vsel %vm61_vm0, %v2268_v41, 0.0  ;;  %v10192_v41 = vsub.s32 3, %v7816_v16 }
 0x994   :  { %2310 = vadd.xlane.f32.xlu1 %v2309_v39  ;;  %2313 = vadd.xlane.f32.xlu0 %v2312_v2 }
 0x995   :  { %v2269_v22 = vmul.f32 %v8733_v32, %v8733_v32 }
 0x997   :  { %v2315_v23 = vsel %vm61_vm0, %v2269_v22, 0.0 }
 0x998   :  { %2316 = vadd.xlane.f32.xlu1 %v2315_v23 }
 0xa01   :  { %v2272_v34 = vpop.xlane.xlu0 %2271 }
 0xa02   :  { %v2318_v40 = vmul.f32 0.03125, %v2272_v34 }
 0xa04   :  { %v2334_v21 = vadd.f32 1e-05, %v2318_v40  ;;  %v8750_v40 = vrot.slane %v8509_v1, %v10192_v41 }
 0xa05   :  { %v2275_v52 = vpop.xlane.xlu1 %2274  ;;  %v2278_v9 = vpop.xlane.xlu0 %2277 }
 0xa06   :  { %7233 = vrsqrt.f32 %v2334_v21  ;;  %v2319_v14 = vmul.f32 0.03125, %v2275_v52  ;;  %v2320_v55 = vmul.f32 0.03125, %v2278_v9  ;;  %v10191_v21 = vsub.s32 4, %v7816_v16 }
 0xa08   :  { %v2335_v31 = vadd.f32 1e-05, %v2319_v14  ;;  %v2336_v6 = vadd.f32 1e-05, %v2320_v55 }
 0xa09   :  { %v2281_v36 = vpop.xlane.xlu1 %2280  ;;  %v2284_v3 = vpop.xlane.xlu0 %2283 }
 0xa0a   :  { %7235 = vrsqrt.f32 %v2335_v31  ;;  %v2321_v5 = vmul.f32 0.03125, %v2281_v36  ;;  %v2322_v47 = vmul.f32 0.03125, %v2284_v3 }
 0xa0b   :  { %7237 = vrsqrt.f32 %v2336_v6 }
 0xa0c   :  { %v2337_v59 = vadd.f32 1e-05, %v2321_v5  ;;  %v2338_v62 = vadd.f32 1e-05, %v2322_v47 }
 0xa0d   :  { %v2287_v37 = vpop.xlane.xlu1 %2286  ;;  %v2290_v10 = vpop.xlane.xlu0 %2289 }
 0xa0e   :  { %7239 = vrsqrt.f32 %v2337_v59  ;;  %v2323_v49 = vmul.f32 0.03125, %v2287_v37  ;;  %v2324_v24 = vmul.f32 0.03125, %v2290_v10  ;;  %v8758_v59 = vrot.slane %v8509_v1, %v10191_v21 }
 0xa0f   :  { %7241 = vrsqrt.f32 %v2338_v62 }
 0xa10   :  { %v2339_v27 = vadd.f32 1e-05, %v2323_v49  ;;  %v2340_v54 = vadd.f32 1e-05, %v2324_v24 }
 0xa11   :  { %v2293_v39 = vpop.xlane.xlu1 %2292  ;;  %v2296_v2 = vpop.xlane.xlu0 %2295 }
 0xa12   :  { %7243 = vrsqrt.f32 %v2339_v27  ;;  %v2325_v22 = vmul.f32 0.03125, %v2293_v39  ;;  %v2326_v23 = vmul.f32 0.03125, %v2296_v2 }
 0xa13   :  { %v7234_v46 = vpop.eup %7233  ;;  %7245 = vrsqrt.f32 %v2340_v54 }
 0xa14   :  { %v2341_v29 = vadd.f32 1e-05, %v2325_v22  ;;  %v2342_v34 = vadd.f32 1e-05, %v2326_v23  ;;  %v2366_v14 = vmul.f32 %v7234_v46, %v8642_v20 }
 0xa15   :  { %v2299_v52 = vpop.xlane.xlu1 %2298  ;;  %v2302_v9 = vpop.xlane.xlu0 %2301 }
 0xa16   :  { %7247 = vrsqrt.f32 %v2341_v29  ;;  %v2327_v55 = vmul.f32 0.03125, %v2299_v52  ;;  %v2328_v31 = vmul.f32 0.03125, %v2302_v9  ;;  %v2386_v20 = vmul.f32 %v8750_v40, %v2366_v14 }
 0xa17   :  { %v7236_v6 = vpop.eup %7235  ;;  %7249 = vrsqrt.f32 %v2342_v34 }
 0xa18   :  { %v7238_v36 = vpop.eup %7237  ;;  %v2343_v3 = vadd.f32 1e-05, %v2327_v55  ;;  %v2344_v5 = vadd.f32 1e-05, %v2328_v31  ;;  %v2367_v47 = vmul.f32 %v7236_v6, %v8650_v4  ;;  %v2406_v34 = vadd.f32 %v8758_v59, %v2386_v20 }
 0xa19   :  { %v2368_v62 = vmul.f32 %v7238_v36, %v8647_v28  ;;  %v2305_v37 = vpop.xlane.xlu1 %2304  ;;  %v2308_v10 = vpop.xlane.xlu0 %2307 }
 0xa1a   :  { %7251 = vrsqrt.f32 %v2343_v3  ;;  %v2329_v49 = vmul.f32 0.03125, %v2305_v37  ;;  %v2330_v24 = vmul.f32 0.03125, %v2308_v10  ;;  %v2387_v27 = vmul.f32 %v8750_v40, %v2367_v47 }
 0xa1b   :  { %v7240_v54 = vpop.eup %7239  ;;  %v2388_v39 = vmul.f32 %v8750_v40, %v2368_v62  ;;  %7253 = vrsqrt.f32 %v2344_v5 }
 0xa1c   :  { %v7242_v4 = vpop.eup %7241  ;;  %v2369_v2 = vmul.f32 %v7240_v54, %v8658_v12  ;;  %v2345_v22 = vadd.f32 1e-05, %v2329_v49  ;;  %v2346_v23 = vadd.f32 1e-05, %v2330_v24  ;;  %v2407_v28 = vadd.f32 %v8758_v59, %v2387_v27 }
 0xa1d   :  { %v2311_v46 = vpop.xlane.xlu1 %2310  ;;  %v2314_v29 = vpop.xlane.xlu0 %2313  ;;  %v2370_v52 = vmul.f32 %v7242_v4, %v8661_v42  ;;  %v2408_v6 = vadd.f32 %v8758_v59, %v2388_v39 }
 0xa1e   :  { %v2389_v9 = vmul.f32 %v8750_v40, %v2369_v2  ;;  %7255 = vrsqrt.f32 %v2345_v22  ;;  %v2331_v14 = vmul.f32 0.03125, %v2311_v46  ;;  %v2332_v55 = vmul.f32 0.03125, %v2314_v29 }
 0xa1f   :  { %v7244_v31 = vpop.eup %7243  ;;  %7257 = vrsqrt.f32 %v2346_v23  ;;  %v2422_v12 = vpack.c.bf16 %v2407_v28, %v2406_v34  ;;  %v2390_v36 = vmul.f32 %v8750_v40, %v2370_v52 }
 0xa20   :  { %v7246_v3 = vpop.eup %7245  ;;  %v2409_v5 = vadd.f32 %v8758_v59, %v2389_v9  ;;  %v2347_v47 = vadd.f32 1e-05, %v2331_v14  ;;  %v2348_v62 = vadd.f32 1e-05, %v2332_v55  ;;  %v2371_v37 = vmul.f32 %v7244_v31, %v8673_v60 }
 0xa21   :  { %v2372_v42 = vmul.f32 %v7246_v3, %v8670_v45  ;;  %6606 = vmatprep.mubr.msk.bf16.mxu0 %vm61_vm0, %v2422_v12  ;;  %v2317_v10 = vpop.xlane.xlu1 %2316  ;;  %v2410_v54 = vadd.f32 %v8758_v59, %v2390_v36 }
 0xa22   :  { %v2423_v20 = vpack.c.bf16 %v2409_v5, %v2408_v6  ;;  %7259 = vrsqrt.f32 %v2347_v47  ;;  %v2333_v49 = vmul.f32 0.03125, %v2317_v10  ;;  %v2391_v24 = vmul.f32 %v8750_v40, %v2371_v37 }
 0xa23   :  { %v7248_v27 = vpop.eup %7247  ;;  %7261 = vrsqrt.f32 %v2348_v62  ;;  %v2392_v60 = vmul.f32 %v8750_v40, %v2372_v42 }
 0xa24   :  { %v7250_v39 = vpop.eup %7249  ;;  %v2373_v4 = vmul.f32 %v7248_v27, %v8682_v51  ;;  %v2349_v2 = vadd.f32 1e-05, %v2333_v49  ;;  %6607 = vmatmul.mubr.msk.bf16.vlgmr.msra.gmra.mxu0 %vm61_vm0, %v2423_v20  ;;  %v2411_v45 = vadd.f32 %v8758_v59, %v2391_v24 }
 0xa25   :  { %v2374_v22 = vmul.f32 %v7250_v39, %v8685_v19  ;;  %v2412_v34 = vadd.f32 %v8758_v59, %v2392_v60 }
 0xa26   :  { %7263 = vrsqrt.f32 %v2349_v2  ;;  %v2424_v23 = vpack.c.bf16 %v2411_v45, %v2410_v54  ;;  %v2393_v28 = vmul.f32 %v8750_v40, %v2373_v4 }
 0xa27   :  { %v7252_v46 = vpop.eup %7251  ;;  %v2394_v9 = vmul.f32 %v8750_v40, %v2374_v22 }
 0xa28   :  { %v7254_v29 = vpop.eup %7253  ;;  %6610 = vmatprep.mubr.msk.bf16.mxu0 %vm61_vm0, %v2424_v23  ;;  %v2413_v51 = vadd.f32 %v8758_v59, %v2393_v28  ;;  %v2375_v52 = vmul.f32 %v7252_v46, %v8700_v11  ;;  %v7043_v23 = vld [vmem:[%s10184_s4 + $0x28] sm:$0xff]   ;;  %v7046_v28 = vld [vmem:[%s10184_s4 + $0x10] sm:$0xff]  }
 0xa29   :  { %v2376_v14 = vmul.f32 %v7254_v29, %v8697_v33  ;;  %v2414_v36 = vadd.f32 %v8758_v59, %v2394_v9  ;;  %v7047_v46 = vld [vmem:[%s10184_s4 + $0x8] sm:$0xff]   ;;  %v7048_v29 = vld [vmem:[%s10184_s4] sm:$0xff]  }
 0xa2a   :  { %v2425_v55 = vpack.c.bf16 %v2413_v51, %v2412_v34  ;;  %v2395_v19 = vmul.f32 %v8750_v40, %v2375_v52  ;;  %v10190_v34 = vsub.s32 6, %v7816_v16 }
 0xa2b   :  { %v7256_v31 = vpop.eup %7255  ;;  %v2396_v5 = vmul.f32 %v8750_v40, %v2376_v14 }
 0xa2c   :  { %v7258_v6 = vpop.eup %7257  ;;  %v2377_v12 = vmul.f32 %v7256_v31, %v8709_v48  ;;  %6611 = vmatmul.mubr.msk.bf16.gmra.mxu0 %vm61_vm0, %v2425_v55  ;;  %v2415_v3 = vadd.f32 %v8758_v59, %v2395_v19  ;;  %v8839_v51 = vrot.slane %v8509_v1, %v10190_v34 }
 0xa2d   :  { %v2378_v11 = vmul.f32 %v7258_v6, %v8712_v53  ;;  %v2416_v42 = vadd.f32 %v8758_v59, %v2396_v5 }
 0xa2e   :  { %v2426_v47 = vpack.c.bf16 %v2415_v3, %v2414_v36  ;;  %v2397_v33 = vmul.f32 %v8750_v40, %v2377_v12 }
 0xa2f   :  { %v7260_v62 = vpop.eup %7259  ;;  %v2398_v20 = vmul.f32 %v8750_v40, %v2378_v11 }
 0xa30   :  { %v7262_v37 = vpop.eup %7261  ;;  %6614 = vmatprep.mubr.msk.bf16.mxu0 %vm61_vm0, %v2426_v47  ;;  %v2417_v48 = vadd.f32 %v8758_v59, %v2397_v33  ;;  %v2379_v10 = vmul.f32 %v7260_v62, %v8721_v26 }
 0xa31   :  { %v2380_v49 = vmul.f32 %v7262_v37, %v8724_v61  ;;  %v2418_v39 = vadd.f32 %v8758_v59, %v2398_v20 }
 0xa32   :  { %v2427_v24 = vpack.c.bf16 %v2417_v48, %v2416_v42  ;;  %v2399_v53 = vmul.f32 %v8750_v40, %v2379_v10 }
 0xa33   :  { %v7264_v27 = vpop.eup %7263  ;;  %v2400_v2 = vmul.f32 %v8750_v40, %v2380_v49 }
 0xa34   :  { %v2381_v54 = vmul.f32 %v7264_v27, %v8733_v32  ;;  %6615 = vmatmul.mubr.msk.bf16.gmra.mxu0 %vm61_vm0, %v2427_v24  ;;  %v2419_v4 = vadd.f32 %v8758_v59, %v2399_v53  ;;  %v7042_v32 = vld [vmem:[%s10184_s4 + $0x30] sm:$0xff]  }
 0xa35   :  { %v2420_v61 = vadd.f32 %v8758_v59, %v2400_v2  ;;  %6624 = vmatprep.subr.bf16.mxu1 %v7042_v32 }
 0xa36   :  { %v2428_v45 = vpack.c.bf16 %v2419_v4, %v2418_v39  ;;  %v2401_v26 = vmul.f32 %v8750_v40, %v2381_v54  ;;  %6625 = vmatpush3.bf16.msra.mxu1 %v7042_v32  ;;  %v7044_v40 = vld [vmem:[%s10184_s4 + $0x20] sm:$0xff]  }
 0xa37   :  { %6626 = vmatprep.subr.bf16.mxu1 %v7043_v23 }
 0xa38   :  { %6618 = vmatprep.mubr.msk.bf16.mxu0 %vm61_vm0, %v2428_v45  ;;  %v2421_v60 = vadd.f32 %v8758_v59, %v2401_v26  ;;  %v7045_v59 = vld [vmem:[%s10184_s4 + $0x18] sm:$0xff]  }
 0xa3a   :  { %v2429_v22 = vpack.c.bf16 %v2421_v60, %v2420_v61  ;;  %6627 = vmatpush3.bf16.msra.mxu1 %v7043_v23 }
 0xa3b   :  { %6628 = vmatprep.subr.bf16.mxu1 %v7044_v40 }
 0xa3c   :  { %6619 = vmatmul.mubr.msk.bf16.gmra.mxu0 %vm61_vm0, %v2429_v22 }
 0xa3e   :  { %6629 = vmatpush3.bf16.msra.mxu1 %v7044_v40 }
 0xa3f   :  { %6630 = vmatprep.subr.bf16.mxu1 %v7045_v59 }
 0xa42   :  { %6631 = vmatpush3.bf16.msra.mxu1 %v7045_v59 }
 0xa43   :  { %6632 = vmatprep.subr.bf16.mxu1 %v7046_v28 }
 0xa46   :  { %6633 = vmatpush3.bf16.msra.mxu1 %v7046_v28 }
 0xa47   :  { %6634 = vmatprep.subr.bf16.mxu1 %v7047_v46 }
 0xa4a   :  { %6635 = vmatpush3.bf16.msra.mxu1 %v7047_v46 }
 0xa4b   :  { %6636 = vmatprep.subr.bf16.mxu1 %v7048_v29 }
 0xa4e   :  { %6637 = vmatpush3.bf16.msra.mxu1 %v7048_v29 }
 0xae4   :  { %v6608_v52 = vpop.f32.mrf.mxu0 }
 0xae5   :  { %v2517_v9 = vadd.f32 %v6608_v52, %v8839_v51 }
 0xae6   :  { %v2508_v14 = vpop.f32.mrf.mxu0 }
 0xae7   :  { %v2509_v55 = vadd.f32 %v2508_v14, %v8839_v51  ;;  %v2589_v19 = vmul.f32 0.70710677, %v2517_v9 }
 0xae8   :  { %v6609_v31 = vpop.f32.mrf.mxu0 }
 0xae9   :  { %v2587_v6 = vmul.f32 0.70710677, %v2509_v55  ;;  %v2520_v12 = vadd.f32 %v6609_v31, %v8839_v51  ;;  %v2571_v32 = vmul.f32 0.5, %v2509_v55 }
 0xaea   :  { %v2511_v36 = vpop.f32.mrf.mxu0 }
 0xaeb   :  { %7265 = verf.f32 %v2587_v6  ;;  %v2590_v3 = vmul.f32 0.70710677, %v2520_v12  ;;  %v2512_v5 = vadd.f32 %v2511_v36, %v8839_v51  ;;  %v2574_v14 = vmul.f32 0.5, %v2520_v12 }
 0xaec   :  { %7267 = verf.f32 %v2589_v19  ;;  %v6612_v11 = vpop.f32.mrf.mxu0 }
 0xaed   :  { %7269 = verf.f32 %v2590_v3  ;;  %v2588_v1 = vmul.f32 0.70710677, %v2512_v5  ;;  %v8846_v47 = vadd.f32 %v6612_v11, %v8839_v51  ;;  %v2572_v6 = vmul.f32 0.5, %v2512_v5 }
 0xaee   :  { %v2524_v33 = vpop.f32.mrf.mxu0  ;;  %v2573_v3 = vmul.f32 0.5, %v2517_v9 }
 0xaef   :  { %7271 = verf.f32 %v2588_v1  ;;  %v8849_v62 = vadd.f32 %v2524_v33, %v8839_v51  ;;  %v2593_v37 = vmul.f32 0.70710677, %v8846_v47 }
 0xaf0   :  { %v6613_v42 = vpop.f32.mrf.mxu0 }
 0xaf1   :  { %v2591_v48 = vmul.f32 0.70710677, %v8849_v62  ;;  %v2536_v10 = vadd.f32 %v6613_v42, %v8839_v51 }
 0xaf2   :  { %v2527_v20 = vpop.f32.mrf.mxu0 }
 0xaf3   :  { %7273 = verf.f32 %v2591_v48  ;;  %v2594_v49 = vmul.f32 0.70710677, %v2536_v10  ;;  %v2528_v24 = vadd.f32 %v2527_v20, %v8839_v51 }
 0xaf4   :  { %7275 = verf.f32 %v2593_v37  ;;  %v6616_v53 = vpop.f32.mrf.mxu0 }
 0xaf5   :  { %7277 = verf.f32 %v2594_v49  ;;  %v2592_v27 = vmul.f32 0.70710677, %v2528_v24  ;;  %v8856_v54 = vadd.f32 %v6616_v53, %v8839_v51 }
 0xaf6   :  { %v2540_v39 = vpop.f32.mrf.mxu0 }
 0xaf7   :  { %7279 = verf.f32 %v2592_v27  ;;  %v2597_v4 = vmul.f32 0.70710677, %v8856_v54  ;;  %v8860_v45 = vadd.f32 %v2540_v39, %v8839_v51 }
 0xaf8   :  { %v7266_v2 = vpop.eup %7265  ;;  %v6617_v26 = vpop.f32.mrf.mxu0 }
 0xaf9   :  { %v7268_v61 = vpop.eup %7267  ;;  %v8863_v60 = vadd.f32 %v6617_v26, %v8839_v51  ;;  %v2595_v23 = vmul.f32 0.70710677, %v8860_v45  ;;  %v2619_v59 = vadd.f32 1.0, %v7266_v2  ;;  %7281 = verf.f32 %v2597_v4 }
 0xafa   :  { %v7270_v22 = vpop.eup %7269  ;;  %v2543_v40 = vpop.f32.mrf.mxu0  ;;  %v2621_v52 = vadd.f32 1.0, %v7268_v61 }
 0xafb   :  { %v2622_v28 = vadd.f32 1.0, %v7270_v22  ;;  %v2598_v46 = vmul.f32 0.70710677, %v8863_v60  ;;  %7283 = verf.f32 %v2595_v23  ;;  %v2544_v19 = vadd.f32 %v2543_v40, %v8839_v51 }
 0xafc   :  { %v7272_v29 = vpop.eup %7271  ;;  %v6620_v31 = vpop.f32.mrf.mxu0  ;;  %v2635_v37 = vmul.f32 %v2619_v59, %v2571_v32  ;;  %v2637_v20 = vmul.f32 %v2621_v52, %v2573_v3  ;;  %v2578_v59 = vmul.f32 0.5, %v2536_v10 }
 0xafd   :  { %v2620_v36 = vadd.f32 1.0, %v7272_v29  ;;  %7285 = verf.f32 %v2598_v46  ;;  %v8869_v55 = vadd.f32 %v6620_v31, %v8839_v51  ;;  %v2638_v11 = vmul.f32 %v2622_v28, %v2574_v14 }
 0xafe   :  { %v2596_v1 = vmul.f32 0.70710677, %v2544_v19  ;;  %v2556_v33 = vpop.f32.mrf.mxu0  ;;  %v2575_v46 = vmul.f32 0.5, %v8849_v62  ;;  %v2576_v29 = vmul.f32 0.5, %v2528_v24  ;;  %v2577_v14 = vmul.f32 0.5, %v8846_v47 }
 0xaff   :  { %v2636_v42 = vmul.f32 %v2620_v36, %v2572_v6  ;;  %v2601_v12 = vmul.f32 0.70710677, %v8869_v55  ;;  %v2557_v49 = vadd.f32 %v2556_v33, %v8839_v51  ;;  %v2652_v2 = vpack.c.bf16 %v2638_v11, %v2637_v20 }
 0xb00   :  { %v7274_v48 = vpop.eup %7273  ;;  %7287 = verf.f32 %v2596_v1  ;;  %v6621_v53 = vpop.f32.mrf.mxu0  ;;  %v2582_v20 = vmul.f32 0.5, %v8863_v60  ;;  %v2579_v47 = vmul.f32 0.5, %v8860_v45 }
 0xb01   :  { %v7276_v5 = vpop.eup %7275  ;;  %v2568_v27 = vadd.f32 %v6621_v53, %v8839_v51  ;;  %v2651_v39 = vpack.c.bf16 %v2636_v42, %v2635_v37  ;;  %v2599_v9 = vmul.f32 0.70710677, %v2557_v49  ;;  %v2623_v61 = vadd.f32 1.0, %v7274_v48 }
 0xb02   :  { %v7278_v4 = vpop.eup %7277  ;;  %v2559_v26 = vpop.f32.mrf.mxu0  ;;  %7289 = verf.f32 %v2601_v12  ;;  %v2625_v40 = vadd.f32 1.0, %v7276_v5  ;;  %v2580_v12 = vmul.f32 0.5, %v2544_v19  ;;  %v2581_v5 = vmul.f32 0.5, %v8856_v54 }
 0xb03   :  { %v2626_v22 = vadd.f32 1.0, %v7278_v4  ;;  %v2602_v32 = vmul.f32 0.70710677, %v2568_v27  ;;  %6638 = vmatprep.mubr.bf16.mxu1 %v2651_v39  ;;  %7291 = verf.f32 %v2599_v9  ;;  %v2560_v28 = vadd.f32 %v2559_v26, %v8839_v51 }
 0xb04   :  { %v7280_v23 = vpop.eup %7279  ;;  %6639 = vmatmul.mubr.bf16.vlgmr.msra.gmra.mxu1 %v2652_v2  ;;  %v2639_v36 = vmul.f32 %v2623_v61, %v2575_v46  ;;  %v2641_v1 = vmul.f32 %v2625_v40, %v2577_v14  ;;  %v2583_v45 = vmul.f32 0.5, %v2557_v49  ;;  %v2585_v54 = vmul.f32 0.5, %v8869_v55 }
 0xb05   :  { %v2624_v52 = vadd.f32 1.0, %v7280_v23  ;;  %7293 = verf.f32 %v2602_v32  ;;  %v2642_v31 = vmul.f32 %v2626_v22, %v2578_v59  ;;  %v2600_v6 = vmul.f32 0.70710677, %v2560_v28 }
 0xb06   :  { %v7282_v11 = vpop.eup %7281  ;;  %v2584_v19 = vmul.f32 0.5, %v2560_v28 }
 0xb07   :  { %v2640_v3 = vmul.f32 %v2624_v52, %v2576_v29  ;;  %7295 = verf.f32 %v2600_v6  ;;  %v2654_v42 = vpack.c.bf16 %v2642_v31, %v2641_v1  ;;  %v2629_v24 = vadd.f32 1.0, %v7282_v11 }
 0xb08   :  { %v7284_v33 = vpop.eup %7283  ;;  %v2586_v29 = vmul.f32 0.5, %v2568_v27  ;;  %v10189_v1 = vsub.s32 5, %v7816_v16  ;;  %v7538_v27 = vld [vmem:[%s10185_s5] sm:$0x7f] }
 0xb09   :  { %v2653_v10 = vpack.c.bf16 %v2640_v3, %v2639_v36  ;;  %v2627_v48 = vadd.f32 1.0, %v7284_v33  ;;  %v2645_v61 = vmul.f32 %v2629_v24, %v2581_v5 }
 0xb0a   :  { %v7286_v37 = vpop.eup %7285  ;;  %v8887_v49 = vrot.slane %v7538_v27, %v10189_v1 }
 0xb0b   :  { %v2630_v51 = vadd.f32 1.0, %v7286_v37  ;;  %6642 = vmatprep.mubr.bf16.mxu1 %v2653_v10  ;;  %v2643_v2 = vmul.f32 %v2627_v48, %v2579_v47 }
 0xb0c   :  { %6643 = vmatmul.mubr.bf16.gmra.mxu1 %v2654_v42 }
 0xb0d   :  { %v7288_v62 = vpop.eup %7287  ;;  %v2646_v39 = vmul.f32 %v2630_v51, %v2582_v20 }
 0xb0e   :  { %v2628_v53 = vadd.f32 1.0, %v7288_v62 }
 0xb0f   :  { %v7290_v4 = vpop.eup %7289  ;;  %v2656_v40 = vpack.c.bf16 %v2646_v39, %v2645_v61 }
 0xb10   :  { %v2644_v9 = vmul.f32 %v2628_v53, %v2580_v12  ;;  %v7292_v26 = vpop.eup %7291  ;;  %v2633_v60 = vadd.f32 1.0, %v7290_v4 }
 0xb11   :  { %v2631_v59 = vadd.f32 1.0, %v7292_v26 }
 0xb12   :  { %v7294_v22 = vpop.eup %7293  ;;  %v2655_v32 = vpack.c.bf16 %v2644_v9, %v2643_v2  ;;  %v2649_v36 = vmul.f32 %v2633_v60, %v2585_v54 }
 0xb13   :  { %v2634_v23 = vadd.f32 1.0, %v7294_v22  ;;  %v2647_v31 = vmul.f32 %v2631_v59, %v2583_v45 }
 0xb14   :  { %6646 = vmatprep.mubr.bf16.mxu1 %v2655_v32  ;;  %v7296_v46 = vpop.eup %7295 }
 0xb15   :  { %6647 = vmatmul.mubr.bf16.gmra.mxu1 %v2656_v40  ;;  %v2632_v52 = vadd.f32 1.0, %v7296_v46  ;;  %v2650_v14 = vmul.f32 %v2634_v23, %v2586_v29 }
 0xb17   :  { %v2648_v6 = vmul.f32 %v2632_v52, %v2584_v19  ;;  %v2658_v11 = vpack.c.bf16 %v2650_v14, %v2649_v36 }
 0xb19   :  { %v2657_v3 = vpack.c.bf16 %v2648_v6, %v2647_v31 }
 0xb1b   :  { %6650 = vmatprep.mubr.bf16.mxu1 %v2657_v3 }
 0xb1d   :  { %6651 = vmatmul.mubr.bf16.gmra.mxu1 %v2658_v11 }
 0xbc4   :  { %v6640_v28 = vpop.f32.mrf.mxu1 }
 0xbc5   :  { %v2770_v33 = vadd.f32 %v6640_v28, %v8887_v49 }
 0xbc6   :  { %v2761_v55 = vpop.f32.mrf.mxu1 }
 0xbc7   :  { %v2762_v10 = vadd.f32 %v2761_v55, %v8887_v49  ;;  %v8896_v62 = vadd.f32 %v2770_v33, %v8526_v58 }
 0xbc8   :  { %v6641_v37 = vpop.f32.mrf.mxu1 }
 0xbc9   :  { %v8892_v42 = vadd.f32 %v2762_v10, %v8520_v7  ;;  %v2773_v51 = vadd.f32 %v6641_v37, %v8887_v49  ;;  %v2865_v4 = vsel %vm61_vm0, %v8896_v62, 0.0 }
 0xbca   :  { %v2764_v48 = vpop.f32.mrf.mxu1 }
 0xbcb   :  { %v2765_v24 = vadd.f32 %v2764_v48, %v8887_v49  ;;  %v2859_v20 = vsel %vm61_vm0, %v8892_v42, 0.0  ;;  %v8905_v53 = vadd.f32 %v2773_v51, %v8537_v18 }
 0xbcc   :  { %2860 = vadd.xlane.f32.xlu0 %v2859_v20  ;;  %v6644_v47 = vpop.f32.mrf.mxu1 }
 0xbcd   :  { %v8902_v12 = vadd.f32 %v2765_v24, %v8534_v57  ;;  %10209 = vst [vmem:[#allocation6_spill] sm:$0xff] %v8905_v53  ;;  %v2786_v5 = vadd.f32 %v6644_v47, %v8887_v49  ;;  %v2868_v18 = vsel %vm61_vm0, %v8905_v53, 0.0 }
 0xbce   :  { %v2777_v7 = vpop.f32.mrf.mxu1 }
 0xbcf   :  { %10208 = vst [vmem:[#allocation5_spill] sm:$0xff] %v8902_v12  ;;  %v2778_v39 = vadd.f32 %v2777_v7, %v8887_v49  ;;  %v2862_v58 = vsel %vm61_vm0, %v8902_v12, 0.0  ;;  %v8919_v26 = vadd.f32 %v2786_v5, %v8553_v38 }
 0xbd0   :  { %2863 = vadd.xlane.f32.xlu1 %v2862_v58  ;;  %2866 = vadd.xlane.f32.xlu0 %v2865_v4  ;;  %v6645_v2 = vpop.f32.mrf.mxu1 }
 0xbd1   :  { %v8914_v57 = vadd.f32 %v2778_v39, %v8550_v56  ;;  %10211 = vst [vmem:[#allocation8_spill] sm:$0xff] %v8919_v26  ;;  %v2789_v61 = vadd.f32 %v6645_v2, %v8887_v49  ;;  %v2877_v46 = vsel %vm61_vm0, %v8919_v26, 0.0 }
 0xbd2   :  { %v2780_v9 = vpop.f32.mrf.mxu1 }
 0xbd3   :  { %10210 = vst [vmem:[#allocation7_spill] sm:$0xff] %v8914_v57  ;;  %v2781_v22 = vadd.f32 %v2780_v9, %v8887_v49  ;;  %v2871_v32 = vsel %vm61_vm0, %v8914_v57, 0.0  ;;  %v8929_v40 = vadd.f32 %v2789_v61, %v8574_v63 }
 0xbd4   :  { %2869 = vadd.xlane.f32.xlu1 %v2868_v18  ;;  %2872 = vadd.xlane.f32.xlu0 %v2871_v32 }
 0xbd5   :  { %v8926_v23 = vadd.f32 %v2781_v22, %v8566_v8  ;;  %v6648_v56 = vpop.f32.mrf.mxu1  ;;  %10213 = vst [vmem:[#allocation10_spill] sm:$0xff] %v8929_v40  ;;  %v2880_v52 = vsel %vm61_vm0, %v8929_v40, 0.0 }
 0xbd6   :  { %v2802_v60 = vadd.f32 %v6648_v56, %v8887_v49 }
 0xbd7   :  { %10212 = vst [vmem:[#allocation9_spill] sm:$0xff] %v8926_v23  ;;  %v2793_v59 = vpop.f32.mrf.mxu1  ;;  %v2874_v38 = vsel %vm61_vm0, %v8926_v23, 0.0 }
 0xbd8   :  { %v2794_v29 = vadd.f32 %v2793_v59, %v8887_v49  ;;  %2875 = vadd.xlane.f32.xlu1 %v2874_v38  ;;  %2878 = vadd.xlane.f32.xlu0 %v2877_v46  ;;  %v8944_v54 = vadd.f32 %v2802_v60, %v8585_v13 }
 0xbd9   :  { %v6649_v45 = vpop.f32.mrf.mxu1 }
 0xbda   :  { %v8938_v8 = vadd.f32 %v2794_v29, %v8582_v43  ;;  %v2805_v63 = vadd.f32 %v6649_v45, %v8887_v49  ;;  %10215 = vst [vmem:[#allocation12_spill] sm:$0xff] %v8944_v54  ;;  %v2889_v28 = vsel %vm61_vm0, %v8944_v54, 0.0 }
 0xbdb   :  { %v2796_v19 = vpop.f32.mrf.mxu1 }
 0xbdc   :  { %10214 = vst [vmem:[#allocation11_spill] sm:$0xff] %v8938_v8  ;;  %v2797_v14 = vadd.f32 %v2796_v19, %v8887_v49  ;;  %2881 = vadd.xlane.f32.xlu1 %v2880_v52  ;;  %v2883_v31 = vsel %vm61_vm0, %v8938_v8, 0.0  ;;  %v8953_v36 = vadd.f32 %v2805_v63, %v8601_v35 }
 0xbdd   :  { %2884 = vadd.xlane.f32.xlu0 %v2883_v31  ;;  %v6652_v6 = vpop.f32.mrf.mxu1 }
 0xbde   :  { %v8950_v43 = vadd.f32 %v2797_v14, %v8598_v50  ;;  %10217 = vst [vmem:[#allocation14_spill] sm:$0xff] %v8953_v36  ;;  %v2818_v11 = vadd.f32 %v6652_v6, %v8887_v49  ;;  %v2892_v35 = vsel %vm61_vm0, %v8953_v36, 0.0 }
 0xbdf   :  { %v2809_v3 = vpop.f32.mrf.mxu1 }
 0xbe0   :  { %10216 = vst [vmem:[#allocation13_spill] sm:$0xff] %v8950_v43  ;;  %v2810_v13 = vadd.f32 %v2809_v3, %v8887_v49  ;;  %v2886_v27 = vsel %vm61_vm0, %v8950_v43, 0.0  ;;  %v8967_v10 = vadd.f32 %v2818_v11, %v8619_v0 }
 0xbe1   :  { %2887 = vadd.xlane.f32.xlu1 %v2886_v27  ;;  %2890 = vadd.xlane.f32.xlu0 %v2889_v28  ;;  %v6653_v55 = vpop.f32.mrf.mxu1 }
 0xbe2   :  { %v8962_v50 = vadd.f32 %v2810_v13, %v8614_v44  ;;  %10219 = vst [vmem:[#allocation16_spill] sm:$0xff] %v8967_v10  ;;  %v2821_v37 = vadd.f32 %v6653_v55, %v8887_v49  ;;  %v2901_v0 = vsel %vm61_vm0, %v8967_v10, 0.0 }
 0xbe3   :  { %v2812_v33 = vpop.f32.mrf.mxu1 }
 0xbe4   :  { %10218 = vst [vmem:[#allocation15_spill] sm:$0xff] %v8962_v50  ;;  %v2813_v51 = vadd.f32 %v2812_v33, %v8887_v49  ;;  %v2895_v48 = vsel %vm61_vm0, %v8962_v50, 0.0  ;;  %v8977_v44 = vadd.f32 %v2821_v37, %v8633_v15 }
 0xbe5   :  { %2893 = vadd.xlane.f32.xlu1 %v2892_v35  ;;  %2896 = vadd.xlane.f32.xlu0 %v2895_v48 }
 0xbe6   :  { %v8974_v24 = vadd.f32 %v2813_v51, %v8630_v17  ;;  %10221 = vst [vmem:[#allocation18_spill] sm:$0xff] %v8977_v44  ;;  %v2904_v49 = vsel %vm61_vm0, %v8977_v44, 0.0 }
 0xbe8   :  { %10220 = vst [vmem:[#allocation17_spill] sm:$0xff] %v8974_v24  ;;  %v2898_v20 = vsel %vm61_vm0, %v8974_v24, 0.0 }
 0xbe9   :  { %2899 = vadd.xlane.f32.xlu1 %v2898_v20  ;;  %2902 = vadd.xlane.f32.xlu0 %v2901_v0 }
 0xbed   :  { %2905 = vadd.xlane.f32.xlu1 %v2904_v49 }
 0xc55   :  { %v2861_v47 = vpop.xlane.xlu0 %2860 }
 0xc56   :  { %v2907_v7 = vmul.f32 0.03125, %v2861_v47 }
 0xc58   :  { %v8986_v17 = vsub.f32 %v8892_v42, %v2907_v7 }
 0xc59   :  { %v2864_v5 = vpop.xlane.xlu1 %2863  ;;  %v2867_v15 = vpop.xlane.xlu0 %2866 }
 0xc5a   :  { %v2908_v39 = vmul.f32 0.03125, %v2864_v5  ;;  %v2909_v58 = vmul.f32 0.03125, %v2867_v15  ;;  %v2939_v4 = vmul.f32 %v8986_v17, %v8986_v17 }
 0xc5c   :  { %v8991_v2 = vsub.f32 %v8902_v12, %v2908_v39  ;;  %v8994_v9 = vsub.f32 %v8896_v62, %v2909_v58  ;;  %v2955_v18 = vsel %vm61_vm0, %v2939_v4, 0.0 }
 0xc5d   :  { %v2870_v61 = vpop.xlane.xlu1 %2869  ;;  %2956 = vadd.xlane.f32.xlu0 %v2955_v18  ;;  %v2873_v22 = vpop.xlane.xlu0 %2872 }
 0xc5e   :  { %v2910_v32 = vmul.f32 0.03125, %v2870_v61  ;;  %v2911_v56 = vmul.f32 0.03125, %v2873_v22  ;;  %v2940_v59 = vmul.f32 %v8991_v2, %v8991_v2  ;;  %v2941_v38 = vmul.f32 %v8994_v9, %v8994_v9 }
 0xc60   :  { %v9002_v46 = vsub.f32 %v8905_v53, %v2910_v32  ;;  %v9005_v60 = vsub.f32 %v8914_v57, %v2911_v56  ;;  %v2958_v29 = vsel %vm61_vm0, %v2940_v59, 0.0  ;;  %v2961_v45 = vsel %vm61_vm0, %v2941_v38, 0.0 }
 0xc61   :  { %v2876_v63 = vpop.xlane.xlu1 %2875  ;;  %2959 = vadd.xlane.f32.xlu1 %v2958_v29  ;;  %2962 = vadd.xlane.f32.xlu0 %v2961_v45  ;;  %v2879_v19 = vpop.xlane.xlu0 %2878 }
 0xc62   :  { %v2912_v52 = vmul.f32 0.03125, %v2876_v63  ;;  %v2913_v14 = vmul.f32 0.03125, %v2879_v19  ;;  %v2942_v31 = vmul.f32 %v9002_v46, %v9002_v46  ;;  %v2943_v6 = vmul.f32 %v9005_v60, %v9005_v60 }
 0xc64   :  { %v9014_v3 = vsub.f32 %v8926_v23, %v2912_v52  ;;  %v9017_v11 = vsub.f32 %v8919_v26, %v2913_v14  ;;  %v2964_v13 = vsel %vm61_vm0, %v2942_v31, 0.0  ;;  %v2967_v27 = vsel %vm61_vm0, %v2943_v6, 0.0 }
 0xc65   :  { %v2882_v28 = vpop.xlane.xlu1 %2881  ;;  %2965 = vadd.xlane.f32.xlu1 %v2964_v13  ;;  %2968 = vadd.xlane.f32.xlu0 %v2967_v27 }
 0xc66   :  { %v2914_v55 = vmul.f32 0.03125, %v2882_v28  ;;  %v2885_v33 = vpop.xlane.xlu0 %2884  ;;  %v2944_v35 = vmul.f32 %v9014_v3, %v9014_v3  ;;  %v2945_v37 = vmul.f32 %v9017_v11, %v9017_v11 }
 0xc67   :  { %v2915_v51 = vmul.f32 0.03125, %v2885_v33 }
 0xc68   :  { %v9026_v48 = vsub.f32 %v8929_v40, %v2914_v55  ;;  %v2970_v20 = vsel %vm61_vm0, %v2944_v35, 0.0  ;;  %v2973_v0 = vsel %vm61_vm0, %v2945_v37, 0.0 }
 0xc69   :  { %v9031_v49 = vsub.f32 %v8938_v8, %v2915_v51  ;;  %2971 = vadd.xlane.f32.xlu1 %v2970_v20  ;;  %2974 = vadd.xlane.f32.xlu0 %v2973_v0 }
 0xc6a   :  { %v2888_v47 = vpop.xlane.xlu1 %2887  ;;  %v2891_v7 = vpop.xlane.xlu0 %2890  ;;  %v2946_v5 = vmul.f32 %v9026_v48, %v9026_v48 }
 0xc6b   :  { %v2916_v15 = vmul.f32 0.03125, %v2888_v47  ;;  %v2917_v39 = vmul.f32 0.03125, %v2891_v7  ;;  %v2947_v58 = vmul.f32 %v9031_v49, %v9031_v49 }
 0xc6c   :  { %v2976_v4 = vsel %vm61_vm0, %v2946_v5, 0.0 }
 0xc6d   :  { %v9039_v18 = vsub.f32 %v8950_v43, %v2916_v15  ;;  %v9042_v61 = vsub.f32 %v8944_v54, %v2917_v39  ;;  %2977 = vadd.xlane.f32.xlu1 %v2976_v4  ;;  %v2979_v22 = vsel %vm61_vm0, %v2947_v58, 0.0  ;;  %v7049_v4 = vld [vmem:[%s10181_s1 + $0x88] sm:$0xff]  }
 0xc6e   :  { %v2894_v32 = vpop.xlane.xlu1 %2893  ;;  %2980 = vadd.xlane.f32.xlu0 %v2979_v22  ;;  %v2897_v56 = vpop.xlane.xlu0 %2896  ;;  %6674 = vmatprep.subr.bf16.mxu1 %v7049_v4 }
 0xc6f   :  { %v2918_v59 = vmul.f32 0.03125, %v2894_v32  ;;  %v2919_v38 = vmul.f32 0.03125, %v2897_v56  ;;  %v2948_v29 = vmul.f32 %v9039_v18, %v9039_v18  ;;  %v2949_v45 = vmul.f32 %v9042_v61, %v9042_v61  ;;  %6675 = vmatpush3.bf16.msra.mxu1 %v7049_v4  ;;  %v7051_v32 = vld [vmem:[%s10181_s1 + $0x68] sm:$0xff]   ;;  %v7050_v56 = vld [vmem:[%s10181_s1 + $0x80] sm:$0xff]  }
 0xc70   :  { %6654 = vmatprep.subr.bf16.mxu0 %v7051_v32  ;;  %6676 = vmatprep.subr.bf16.mxu1 %v7050_v56  ;;  %v5805_v4 = vld [vmem:[%s10185_s5 + $0x8] sm:$0x7f] }
 0xc71   :  { %v9050_v63 = vsub.f32 %v8953_v36, %v2918_v59  ;;  %v9053_v19 = vsub.f32 %v8962_v50, %v2919_v38  ;;  %v2982_v52 = vsel %vm61_vm0, %v2948_v29, 0.0  ;;  %v2985_v14 = vsel %vm61_vm0, %v2949_v45, 0.0  ;;  %6655 = vmatpush3.bf16.msra.mxu0 %v7051_v32  ;;  %v7052_v59 = vld [vmem:[%s10181_s1 + $0x60] sm:$0xff]   ;;  %v9096_v38 = vld [vmem:[%s10181_s1 + $0xa8] sm:$0xff]  }
 0xc72   :  { %2983 = vadd.xlane.f32.xlu1 %v2982_v52  ;;  %v2900_v31 = vpop.xlane.xlu1 %2899  ;;  %2986 = vadd.xlane.f32.xlu0 %v2985_v14  ;;  %v2903_v6 = vpop.xlane.xlu0 %2902 }
 0xc73   :  { %v2920_v13 = vmul.f32 0.03125, %v2900_v31  ;;  %v2921_v27 = vmul.f32 0.03125, %v2903_v6  ;;  %v2950_v28 = vmul.f32 %v9050_v63, %v9050_v63  ;;  %v2951_v55 = vmul.f32 %v9053_v19, %v9053_v19  ;;  %6677 = vmatpush3.bf16.msra.mxu1 %v7050_v56  ;;  %6656 = vmatprep.subr.bf16.mxu0 %v7052_v59 }
 0xc75   :  { %v9062_v33 = vsub.f32 %v8974_v24, %v2920_v13  ;;  %v9065_v35 = vsub.f32 %v8967_v10, %v2921_v27  ;;  %v2988_v37 = vsel %vm61_vm0, %v2950_v28, 0.0  ;;  %v2991_v51 = vsel %vm61_vm0, %v2951_v55, 0.0  ;;  %6657 = vmatpush3.bf16.msra.mxu0 %v7052_v59 }
 0xc76   :  { %2989 = vadd.xlane.f32.xlu1 %v2988_v37  ;;  %v2906_v20 = vpop.xlane.xlu1 %2905  ;;  %2992 = vadd.xlane.f32.xlu0 %v2991_v51 }
 0xc77   :  { %v2922_v0 = vmul.f32 0.03125, %v2906_v20  ;;  %v2952_v47 = vmul.f32 %v9062_v33, %v9062_v33  ;;  %v2953_v7 = vmul.f32 %v9065_v35, %v9065_v35  ;;  %6694 = vmatprep.subr.bf16.mxu0 %v9096_v38 }
 0xc79   :  { %v9074_v5 = vsub.f32 %v8977_v44, %v2922_v0  ;;  %v2994_v15 = vsel %vm61_vm0, %v2952_v47, 0.0  ;;  %v2997_v39 = vsel %vm61_vm0, %v2953_v7, 0.0 }
 0xc7a   :  { %2995 = vadd.xlane.f32.xlu1 %v2994_v15  ;;  %2998 = vadd.xlane.f32.xlu0 %v2997_v39 }
 0xc7b   :  { %v2954_v58 = vmul.f32 %v9074_v5, %v9074_v5 }
 0xc7d   :  { %v3000_v22 = vsel %vm61_vm0, %v2954_v58, 0.0 }
 0xc7e   :  { %3001 = vadd.xlane.f32.xlu1 %v3000_v22 }
 0xce6   :  { %v2957_v29 = vpop.xlane.xlu0 %2956 }
 0xce7   :  { %v3003_v45 = vmul.f32 0.03125, %v2957_v29 }
 0xce9   :  { %v3019_v52 = vadd.f32 1e-05, %v3003_v45 }
 0xcea   :  { %v2960_v14 = vpop.xlane.xlu1 %2959  ;;  %v2963_v31 = vpop.xlane.xlu0 %2962 }
 0xceb   :  { %7297 = vrsqrt.f32 %v3019_v52  ;;  %v3004_v6 = vmul.f32 0.03125, %v2960_v14  ;;  %v3005_v13 = vmul.f32 0.03125, %v2963_v31  ;;  %v9104_v52 = vrot.slane %v5805_v4, %v273_v30 }
 0xced   :  { %v3020_v27 = vadd.f32 1e-05, %v3004_v6  ;;  %v3021_v28 = vadd.f32 1e-05, %v3005_v13 }
 0xcee   :  { %v2966_v55 = vpop.xlane.xlu1 %2965  ;;  %v2969_v37 = vpop.xlane.xlu0 %2968 }
 0xcef   :  { %7299 = vrsqrt.f32 %v3020_v27  ;;  %v3006_v51 = vmul.f32 0.03125, %v2966_v55  ;;  %v3007_v20 = vmul.f32 0.03125, %v2969_v37  ;;  %v10222_v27 = vsub.s32 1, %v7816_v16 }
 0xcf0   :  { %7301 = vrsqrt.f32 %v3021_v28 }
 0xcf1   :  { %v3022_v0 = vadd.f32 1e-05, %v3006_v51  ;;  %v3023_v47 = vadd.f32 1e-05, %v3007_v20  ;;  %v9109_v28 = vrot.slane %v5805_v4, %v10222_v27 }
 0xcf2   :  { %v2972_v7 = vpop.xlane.xlu1 %2971  ;;  %v2975_v15 = vpop.xlane.xlu0 %2974 }
 0xcf3   :  { %7303 = vrsqrt.f32 %v3022_v0  ;;  %v3008_v39 = vmul.f32 0.03125, %v2972_v7  ;;  %v3009_v58 = vmul.f32 0.03125, %v2975_v15 }
 0xcf4   :  { %7305 = vrsqrt.f32 %v3023_v47 }
 0xcf5   :  { %v3024_v22 = vadd.f32 1e-05, %v3008_v39  ;;  %v3025_v32 = vadd.f32 1e-05, %v3009_v58 }
 0xcf6   :  { %v2978_v56 = vpop.xlane.xlu1 %2977 }
 0xcf7   :  { %7307 = vrsqrt.f32 %v3024_v22  ;;  %v3010_v59 = vmul.f32 0.03125, %v2978_v56  ;;  %v2981_v29 = vpop.xlane.xlu0 %2980 }
 0xcf8   :  { %v7298_v45 = vpop.eup %7297  ;;  %7309 = vrsqrt.f32 %v3025_v32  ;;  %v3011_v14 = vmul.f32 0.03125, %v2981_v29 }
 0xcf9   :  { %v3051_v31 = vmul.f32 %v7298_v45, %v8986_v17  ;;  %v3026_v6 = vadd.f32 1e-05, %v3010_v59 }
 0xcfa   :  { %v3027_v13 = vadd.f32 1e-05, %v3011_v14 }
 0xcfb   :  { %7311 = vrsqrt.f32 %v3026_v6  ;;  %v2984_v55 = vpop.xlane.xlu1 %2983  ;;  %v2987_v37 = vpop.xlane.xlu0 %2986  ;;  %v3071_v20 = vmul.f32 %v9104_v52, %v3051_v31 }
 0xcfc   :  { %v7300_v51 = vpop.eup %7299  ;;  %7313 = vrsqrt.f32 %v3027_v13  ;;  %v3012_v0 = vmul.f32 0.03125, %v2984_v55  ;;  %v3013_v30 = vmul.f32 0.03125, %v2987_v37 }
 0xcfd   :  { %v7302_v47 = vpop.eup %7301  ;;  %v3052_v7 = vmul.f32 %v7300_v51, %v8991_v2  ;;  %v3091_v29 = vadd.f32 %v9109_v28, %v3071_v20 }
 0xcfe   :  { %v3053_v17 = vmul.f32 %v7302_v47, %v8994_v9  ;;  %v3028_v15 = vadd.f32 1e-05, %v3012_v0  ;;  %v3029_v39 = vadd.f32 1e-05, %v3013_v30 }
 0xcff   :  { %v3072_v58 = vmul.f32 %v9104_v52, %v3052_v7  ;;  %v2990_v4 = vpop.xlane.xlu1 %2989  ;;  %v2993_v22 = vpop.xlane.xlu0 %2992 }
 0xd00   :  { %v7304_v32 = vpop.eup %7303  ;;  %7315 = vrsqrt.f32 %v3028_v15  ;;  %v3014_v56 = vmul.f32 0.03125, %v2990_v4  ;;  %v3015_v59 = vmul.f32 0.03125, %v2993_v22  ;;  %v3073_v14 = vmul.f32 %v9104_v52, %v3053_v17 }
 0xd01   :  { %v7306_v45 = vpop.eup %7305  ;;  %v3054_v31 = vmul.f32 %v7304_v32, %v9002_v46  ;;  %7317 = vrsqrt.f32 %v3029_v39  ;;  %v3092_v2 = vadd.f32 %v9109_v28, %v3072_v58 }
 0xd02   :  { %v3055_v9 = vmul.f32 %v7306_v45, %v9005_v60  ;;  %v3030_v6 = vadd.f32 1e-05, %v3014_v56  ;;  %v3031_v13 = vadd.f32 1e-05, %v3015_v59  ;;  %v3093_v7 = vadd.f32 %v9109_v28, %v3073_v14 }
 0xd03   :  { %v3074_v27 = vmul.f32 %v9104_v52, %v3054_v31  ;;  %v2996_v55 = vpop.xlane.xlu1 %2995  ;;  %v2999_v37 = vpop.xlane.xlu0 %2998  ;;  %v9121_v51 = vpack.c.bf16 %v3092_v2, %v3091_v29 }
 0xd04   :  { %v7308_v0 = vpop.eup %7307  ;;  %v3075_v20 = vmul.f32 %v9104_v52, %v3055_v9  ;;  %7319 = vrsqrt.f32 %v3030_v6  ;;  %v3016_v30 = vmul.f32 0.03125, %v2996_v55  ;;  %v3017_v47 = vmul.f32 0.03125, %v2999_v37 }
 0xd05   :  { %v7310_v46 = vpop.eup %7309  ;;  %v3094_v17 = vadd.f32 %v9109_v28, %v3074_v27  ;;  %v3056_v60 = vmul.f32 %v7308_v0, %v9014_v3  ;;  %7321 = vrsqrt.f32 %v3031_v13  ;;  %6658 = vmatprep.mubr.msk.bf16.mxu0 %vm61_vm0, %v9121_v51  ;;  %6678 = vmatprep.mubr.msk.bf16.mxu1 %vm61_vm0, %v9121_v51  ;;  %v7054_v3 = vld [vmem:[%s10181_s1 + $0xa0] sm:$0xff]  }
 0xd06   :  { %v3057_v15 = vmul.f32 %v7310_v46, %v9017_v11  ;;  %v3032_v39 = vadd.f32 1e-05, %v3016_v30  ;;  %v3033_v58 = vadd.f32 1e-05, %v3017_v47  ;;  %v3095_v29 = vadd.f32 %v9109_v28, %v3075_v20 }
 0xd07   :  { %v9132_v4 = vpack.c.bf16 %v3094_v17, %v3093_v7  ;;  %v3076_v22 = vmul.f32 %v9104_v52, %v3056_v60  ;;  %v3002_v32 = vpop.xlane.xlu1 %3001 }
 0xd08   :  { %v7312_v56 = vpop.eup %7311  ;;  %7323 = vrsqrt.f32 %v3032_v39  ;;  %v3018_v59 = vmul.f32 0.03125, %v3002_v32  ;;  %v3077_v14 = vmul.f32 %v9104_v52, %v3057_v15 }
 0xd09   :  { %v7314_v45 = vpop.eup %7313  ;;  %v3058_v11 = vmul.f32 %v7312_v56, %v9026_v48  ;;  %7325 = vrsqrt.f32 %v3033_v58  ;;  %6659 = vmatmul.mubr.msk.bf16.vlgmr.msra.gmra.mxu0 %vm61_vm0, %v9132_v4  ;;  %6679 = vmatmul.mubr.msk.bf16.vlgmr.msra.gmra.mxu1 %vm61_vm0, %v9132_v4  ;;  %v3096_v31 = vadd.f32 %v9109_v28, %v3076_v22 }
 0xd0a   :  { %v3059_v2 = vmul.f32 %v7314_v45, %v9031_v49  ;;  %v3034_v9 = vadd.f32 1e-05, %v3018_v59  ;;  %6695 = vmatpush3.bf16.msra.mxu0 %v9096_v38  ;;  %v3097_v27 = vadd.f32 %v9109_v28, %v3077_v14 }
 0xd0b   :  { %v3078_v6 = vmul.f32 %v9104_v52, %v3058_v11  ;;  %v9149_v13 = vpack.c.bf16 %v3096_v31, %v3095_v29  ;;  %6696 = vmatprep.subr.bf16.mxu0 %v7054_v3 }
 0xd0c   :  { %7327 = vrsqrt.f32 %v3034_v9  ;;  %v3079_v38 = vmul.f32 %v9104_v52, %v3059_v2 }
 0xd0d   :  { %v7316_v48 = vpop.eup %7315  ;;  %6662 = vmatprep.mubr.msk.bf16.mxu0 %vm61_vm0, %v9149_v13  ;;  %6682 = vmatprep.mubr.msk.bf16.mxu1 %vm61_vm0, %v9149_v13  ;;  %v3098_v49 = vadd.f32 %v9109_v28, %v3078_v6 }
 0xd0e   :  { %v7318_v55 = vpop.eup %7317  ;;  %v3060_v37 = vmul.f32 %v7316_v48, %v9039_v18  ;;  %6697 = vmatpush3.bf16.msra.mxu0 %v7054_v3  ;;  %v3099_v18 = vadd.f32 %v9109_v28, %v3079_v38 }
 0xd0f   :  { %v3061_v0 = vmul.f32 %v7318_v55, %v9042_v61  ;;  %v9160_v20 = vpack.c.bf16 %v3098_v49, %v3097_v27 }
 0xd10   :  { %v3080_v30 = vmul.f32 %v9104_v52, %v3060_v37 }
 0xd11   :  { %v7320_v47 = vpop.eup %7319  ;;  %6663 = vmatmul.mubr.msk.bf16.gmra.mxu0 %vm61_vm0, %v9160_v20  ;;  %6683 = vmatmul.mubr.msk.bf16.gmra.mxu1 %vm61_vm0, %v9160_v20  ;;  %v3081_v7 = vmul.f32 %v9104_v52, %v3061_v0 }
 0xd12   :  { %v7322_v46 = vpop.eup %7321  ;;  %v3062_v17 = vmul.f32 %v7320_v47, %v9050_v63  ;;  %v3100_v61 = vadd.f32 %v9109_v28, %v3080_v30 }
 0xd13   :  { %v3063_v60 = vmul.f32 %v7322_v46, %v9053_v19  ;;  %v3101_v63 = vadd.f32 %v9109_v28, %v3081_v7 }
 0xd14   :  { %v3082_v15 = vmul.f32 %v9104_v52, %v3062_v17  ;;  %v9173_v39 = vpack.c.bf16 %v3100_v61, %v3099_v18 }
 0xd15   :  { %v7324_v58 = vpop.eup %7323  ;;  %v3083_v22 = vmul.f32 %v9104_v52, %v3063_v60 }
 0xd16   :  { %v7326_v32 = vpop.eup %7325  ;;  %v3064_v3 = vmul.f32 %v7324_v58, %v9062_v33  ;;  %6666 = vmatprep.mubr.msk.bf16.mxu0 %vm61_vm0, %v9173_v39  ;;  %6686 = vmatprep.mubr.msk.bf16.mxu1 %vm61_vm0, %v9173_v39  ;;  %v3102_v19 = vadd.f32 %v9109_v28, %v3082_v15 }
 0xd17   :  { %v3065_v56 = vmul.f32 %v7326_v32, %v9065_v35  ;;  %v3103_v14 = vadd.f32 %v9109_v28, %v3083_v22 }
 0xd18   :  { %v3084_v59 = vmul.f32 %v9104_v52, %v3064_v3  ;;  %v9185_v29 = vpack.c.bf16 %v3102_v19, %v3101_v63 }
 0xd19   :  { %v7328_v45 = vpop.eup %7327  ;;  %v3085_v33 = vmul.f32 %v9104_v52, %v3065_v56 }
 0xd1a   :  { %v3066_v11 = vmul.f32 %v7328_v45, %v9074_v5  ;;  %6667 = vmatmul.mubr.msk.bf16.gmra.mxu0 %vm61_vm0, %v9185_v29  ;;  %6687 = vmatmul.mubr.msk.bf16.gmra.mxu1 %vm61_vm0, %v9185_v29  ;;  %v3104_v31 = vadd.f32 %v9109_v28, %v3084_v59 }
 0xd1b   :  { %v3105_v5 = vadd.f32 %v9109_v28, %v3085_v33 }
 0xd1c   :  { %v3086_v35 = vmul.f32 %v9104_v52, %v3066_v11  ;;  %v9196_v2 = vpack.c.bf16 %v3104_v31, %v3103_v14 }
 0xd1e   :  { %6670 = vmatprep.mubr.msk.bf16.mxu0 %vm61_vm0, %v9196_v2  ;;  %6690 = vmatprep.mubr.msk.bf16.mxu1 %vm61_vm0, %v9196_v2  ;;  %v3106_v9 = vadd.f32 %v9109_v28, %v3086_v35 }
 0xd20   :  { %v9204_v6 = vpack.c.bf16 %v3106_v9, %v3105_v5 }
 0xd22   :  { %6671 = vmatmul.mubr.msk.bf16.gmra.mxu0 %vm61_vm0, %v9204_v6  ;;  %6691 = vmatmul.mubr.msk.bf16.gmra.mxu1 %vm61_vm0, %v9204_v6 }
 0xd23   :  { %6698 = vmatprep.mubr.msk.bf16.mxu0 %vm61_vm0, %v9121_v51 }
 0xd2a   :  { %6699 = vmatmul.mubr.msk.bf16.vlgmr.msra.gmra.mxu0 %vm61_vm0, %v9132_v4 }
 0xd2b   :  { %6702 = vmatprep.mubr.msk.bf16.mxu0 %vm61_vm0, %v9149_v13 }
 0xd32   :  { %6703 = vmatmul.mubr.msk.bf16.gmra.mxu0 %vm61_vm0, %v9160_v20 }
 0xd33   :  { %6706 = vmatprep.mubr.msk.bf16.mxu0 %vm61_vm0, %v9173_v39 }
 0xd3a   :  { %6707 = vmatmul.mubr.msk.bf16.gmra.mxu0 %vm61_vm0, %v9185_v29 }
 0xd3b   :  { %6710 = vmatprep.mubr.msk.bf16.mxu0 %vm61_vm0, %v9196_v2 }
 0xd42   :  { %6711 = vmatmul.mubr.msk.bf16.gmra.mxu0 %vm61_vm0, %v9204_v6 }
 0xdc9   :  { %v9226_v52 = vpop.f32.mrf.mxu0  ;;  %v6680_v28 = vpop.f32.mrf.mxu1 }
 0xdcb   :  { %v3200_v48 = vpop.f32.mrf.mxu0  ;;  %v3309_v27 = vpop.f32.mrf.mxu1 }
 0xdcd   :  { %v9228_v49 = vpop.f32.mrf.mxu0  ;;  %v6681_v55 = vpop.f32.mrf.mxu1 }
 0xdce   :  { %v9232_v37 = vpack.c.bf16 %v6681_v55, %v6680_v28 }
 0xdcf   :  { %v3203_v0 = vpop.f32.mrf.mxu0  ;;  %v3312_v30 = vpop.f32.mrf.mxu1 }
 0xdd0   :  { %v3481_v47 = vpack.c.bf16 %v3203_v0, %v3200_v48  ;;  %v9234_v46 = vpack.c.bf16 %v3312_v30, %v3309_v27 }
 0xdd1   :  { %v9236_v7 = vpop.f32.mrf.mxu0  ;;  %v6684_v17 = vpop.f32.mrf.mxu1 }
 0xdd2   :  { %6730 = vmatprep.mubr.msk.bf16.mxu1 %vm700_vm1, %v3481_v47 }
 0xdd3   :  { %v9239_v18 = vpop.f32.mrf.mxu0  ;;  %v3325_v61 = vpop.f32.mrf.mxu1 }
 0xdd5   :  { %v9241_v60 = vpop.f32.mrf.mxu0  ;;  %v6685_v15 = vpop.f32.mrf.mxu1 }
 0xdd7   :  { %v9245_v22 = vpop.f32.mrf.mxu0  ;;  %v3328_v32 = vpop.f32.mrf.mxu1 }
 0xdda   :  { %v9247_v3 = vpop.f32.mrf.mxu0  ;;  %v6688_v63 = vpop.f32.mrf.mxu1 }
 0xddc   :  { %v9249_v19 = vpop.f32.mrf.mxu0  ;;  %v3341_v56 = vpop.f32.mrf.mxu1 }
 0xdde   :  { %v9251_v59 = vpop.f32.mrf.mxu0  ;;  %v6689_v45 = vpop.f32.mrf.mxu1 }
 0xddf   :  { %v3494_v14 = vpack.c.bf16 %v6689_v45, %v6688_v63  ;;  %v3492_v63 = vpack.c.bf16 %v6685_v15, %v6684_v17 }
 0xde0   :  { %v9255_v33 = vpop.f32.mrf.mxu0  ;;  %v3344_v11 = vpop.f32.mrf.mxu1 }
 0xde2   :  { %v9257_v31 = vpop.f32.mrf.mxu0  ;;  %v6692_v35 = vpop.f32.mrf.mxu1 }
 0xde4   :  { %v9259_v5 = vpop.f32.mrf.mxu0  ;;  %v3357_v9 = vpop.f32.mrf.mxu1 }
 0xde6   :  { %v9261_v28 = vpop.f32.mrf.mxu0  ;;  %v6693_v48 = vpop.f32.mrf.mxu1 }
 0xde7   :  { %v3496_v55 = vpack.c.bf16 %v6693_v48, %v6692_v35 }
 0xde8   :  { %v9265_v0 = vpop.f32.mrf.mxu0  ;;  %v3360_v30 = vpop.f32.mrf.mxu1 }
 0xde9   :  { %v3543_v47 = vsel %vm700_vm1, %v3496_v55, 0  ;;  %v3495_v1 = vpack.c.bf16 %v3360_v30, %v3357_v9  ;;  %7006 = vmatprep.subr.msk.bf16.mxu1 %vm700_vm1, %v3496_v55  ;;  %v3537_v9 = vsel %vm700_vm1, %v3494_v14, 0  ;;  %v3493_v55 = vpack.c.bf16 %v3344_v11, %v3341_v56 }
 0xdea   :  { %v6700_v34 = vpop.f32.mrf.mxu0  ;;  %6715 = vmatpush3.bf16.xpose.msra.mxu1 %v3543_v47  ;;  %v3531_v56 = vsel %vm700_vm1, %v3492_v63, 0 }
 0xdeb   :  { %7007 = vmatprep.subr.msk.bf16.mxu1 %vm700_vm1, %v3495_v1  ;;  %v3540_v58 = vsel %vm700_vm1, %v3495_v1, 0  ;;  %v3534_v1 = vsel %vm700_vm1, %v3493_v55, 0 }
 0xdec   :  { %v3418_v21 = vpop.f32.mrf.mxu0 }
 0xdee   :  { %v6701_v41 = vpop.f32.mrf.mxu0 }
 0xdf0   :  { %v3421_v25 = vpop.f32.mrf.mxu0 }
 0xdf2   :  { %v6704_v27 = vpop.f32.mrf.mxu0  ;;  %6717 = vmatpush3.bf16.xpose.msra.mxu1 %v3540_v58 }
 0xdf3   :  { %7008 = vmatprep.subr.msk.bf16.mxu1 %vm700_vm1, %v3494_v14  ;;  %v3491_v14 = vpack.c.bf16 %v3328_v32, %v3325_v61  ;;  %v3522_v61 = vsel %vm700_vm1, %v9234_v46, 0  ;;  %v3794_v32 = vpack.c.bf16 %v3421_v25, %v3418_v21  ;;  %v3485_v25 = vpack.c.bf16 %v9255_v33, %v9249_v19  ;;  %v9350_v19 = vld [vmem:[%s10186_s6 + $0x88] sm:$0xff] }
 0xdf4   :  { %v3434_v35 = vpop.f32.mrf.mxu0  ;;  %v10224_v21 = vpack.c.bf16 %v9241_v60, %v9236_v7  ;;  %v9337_v7 = vld [vmem:[%s10186_s6 + $0x80] sm:$0xff] }
 0xdf5   :  { %v3528_v15 = vsel %vm700_vm1, %v3491_v14, 0 }
 0xdf6   :  { %v6705_v48 = vpop.f32.mrf.mxu0 }
 0xdf8   :  { %v3437_v38 = vpop.f32.mrf.mxu0 }
 0xdfa   :  { %v6708_v30 = vpop.f32.mrf.mxu0  ;;  %6719 = vmatpush3.bf16.xpose.msra.mxu1 %v3537_v9 }
 0xdfb   :  { %7009 = vmatprep.subr.msk.bf16.mxu1 %vm700_vm1, %v3493_v55  ;;  %v9380_v55 = vld [vmem:[%s10186_s6 + $0xb0] sm:$0xff] }
 0xdfc   :  { %v3450_v47 = vpop.f32.mrf.mxu0 }
 0xdfe   :  { %v6709_v24 = vpop.f32.mrf.mxu0 }
 0xdff   :  { %v3799_v17 = vpack.c.bf16 %v6709_v24, %v6708_v30  ;;  %v3795_v24 = vpack.c.bf16 %v6701_v41, %v6700_v34  ;;  %v3483_v41 = vpack.c.bf16 %v9245_v22, %v9239_v18  ;;  %v10223_v34 = vpack.c.bf16 %v9228_v49, %v9226_v52  ;;  %v9345_v22 = vld [vmem:[%s10186_s6 + $0x90] sm:$0xff] }
 0xe00   :  { %v3453_v44 = vpop.f32.mrf.mxu0  ;;  %v3487_v52 = vpack.c.bf16 %v9265_v0, %v9259_v5  ;;  %v10225_v49 = vpack.c.bf16 %v9251_v59, %v9247_v3  ;;  %v9362_v5 = vld [vmem:[%s10186_s6 + $0x98] sm:$0xff] }
 0xe01   :  { %v3798_v9 = vpack.c.bf16 %v3453_v44, %v3450_v47  ;;  %v7055_v44 = vld [vmem:[%s10181_s1 + $0x98] sm:$0xff]   ;;  %v9385_v47 = vld [vmem:[%s10186_s6 + $0xa8] sm:$0xff] }
 0xe02   :  { %v6712_v45 = vpop.f32.mrf.mxu0  ;;  %6721 = vmatpush3.bf16.xpose.msra.mxu1 %v3534_v1 }
 0xe03   :  { %7010 = vmatprep.subr.msk.bf16.mxu1 %vm700_vm1, %v3492_v63 }
 0xe04   :  { %v3466_v58 = vpop.f32.mrf.mxu0 }
 0xe06   :  { %v6713_v50 = vpop.f32.mrf.mxu0 }
 0xe07   :  { %v3801_v10 = vpack.c.bf16 %v6713_v50, %v6712_v45  ;;  %v3797_v50 = vpack.c.bf16 %v6705_v48, %v6704_v27  ;;  %v9367_v27 = vld [vmem:[%s10186_s6 + $0xa0] sm:$0xff] }
 0xe08   :  { %v3469_v43 = vpop.f32.mrf.mxu0 }
 0xe09   :  { %v3800_v11 = vpack.c.bf16 %v3469_v43, %v3466_v58  ;;  %6746 = vmatprep.subr.bf16.mxu0 %v3801_v10  ;;  %v3525_v43 = vsel %vm700_vm1, %v9232_v37, 0  ;;  %v9398_v58 = vld [vmem:[%s10186_s6 + $0xb8] sm:$0xff] }
 0xe0a   :  { %6723 = vmatpush3.bf16.xpose.msra.mxu1 %v3531_v56  ;;  %6747 = vmatpush3.bf16.msra.mxu0 %v3801_v10  ;;  %v3796_v10 = vpack.c.bf16 %v3437_v38, %v3434_v35  ;;  %v7056_v38 = vld [vmem:[%s10181_s1 + $0x90] sm:$0xff]  }
 0xe0b   :  { %7011 = vmatprep.subr.msk.bf16.mxu1 %vm700_vm1, %v3491_v14  ;;  %6748 = vmatprep.subr.bf16.mxu0 %v3800_v11  ;;  %v9403_v14 = vld [vmem:[%s10186_s6 + $0xc0] sm:$0xff] }
 0xe0e   :  { %6749 = vmatpush3.bf16.msra.mxu0 %v3800_v11 }
 0xe0f   :  { %6750 = vmatprep.subr.bf16.mxu0 %v3799_v17 }
 0xe12   :  { %6725 = vmatpush3.bf16.xpose.msra.mxu1 %v3528_v15  ;;  %6751 = vmatpush3.bf16.msra.mxu0 %v3799_v17 }
 0xe13   :  { %7012 = vmatprep.subr.msk.bf16.mxu1 %vm700_vm1, %v9232_v37  ;;  %6752 = vmatprep.subr.bf16.mxu0 %v3798_v9  ;;  %v10226_v37 = vpack.c.bf16 %v9261_v28, %v9257_v31 }
 0xe16   :  { %6753 = vmatpush3.bf16.msra.mxu0 %v3798_v9  ;;  %v9416_v9 = vld [vmem:[%s10186_s6 + $0xd0] sm:$0xff] }
 0xe17   :  { %6754 = vmatprep.subr.bf16.mxu0 %v3797_v50 }
 0xe1a   :  { %6727 = vmatpush3.bf16.xpose.msra.mxu1 %v3525_v43  ;;  %6755 = vmatpush3.bf16.msra.mxu0 %v3797_v50  ;;  %v9421_v43 = vld [vmem:[%s10186_s6 + $0xc8] sm:$0xff] }
 0xe1b   :  { %7013 = vmatprep.subr.msk.bf16.mxu1 %vm700_vm1, %v9234_v46  ;;  %6756 = vmatprep.subr.bf16.mxu0 %v3796_v10 }
 0xe1e   :  { %6757 = vmatpush3.bf16.msra.mxu0 %v3796_v10 }
 0xe1f   :  { %6758 = vmatprep.subr.bf16.mxu0 %v3795_v24 }
 0xe22   :  { %6729 = vmatpush3.bf16.xpose.msra.mxu1 %v3522_v61  ;;  %6759 = vmatpush3.bf16.msra.mxu0 %v3795_v24  ;;  %v9434_v61 = vld [vmem:[%s10186_s6 + $0xd8] sm:$0xff] }
 0xe23   :  { %6760 = vmatprep.subr.bf16.mxu0 %v3794_v32  ;;  %6798 = vmatprep.subr.bf16.mxu1 %v7055_v44 }
 0xe26   :  { %6761 = vmatpush3.bf16.msra.mxu0 %v3794_v32 }
 0xe29   :  { %6731 = vmatmul.mubr.msk.bf16.vlgmr.msra.gmra.mxu1 %vm700_vm1, %v10223_v34 }
 0xe2a   :  { %6734 = vmatprep.mubr.msk.bf16.mxu1 %vm700_vm1, %v3483_v41  ;;  %6799 = vmatpush3.bf16.msra.mxu1 %v7055_v44 }
 0xe2b   :  { %6800 = vmatprep.subr.bf16.mxu1 %v7056_v38 }
 0xe2e   :  { %6801 = vmatpush3.bf16.msra.mxu1 %v7056_v38  ;;  %v9439_v38 = vld [vmem:[%s10186_s6 + $0xe0] sm:$0xff] }
 0xe31   :  { %6735 = vmatmul.mubr.msk.bf16.gmra.mxu1 %vm700_vm1, %v10224_v21  ;;  %v9452_v21 = vld [vmem:[%s10186_s6 + $0xf0] sm:$0xff] }
 0xe32   :  { %6738 = vmatprep.mubr.msk.bf16.mxu1 %vm700_vm1, %v3485_v25 }
 0xe39   :  { %6739 = vmatmul.mubr.msk.bf16.gmra.mxu1 %vm700_vm1, %v10225_v49  ;;  %v9457_v49 = vld [vmem:[%s10186_s6 + $0xe8] sm:$0xff] }
 0xe3a   :  { %6742 = vmatprep.mubr.msk.bf16.mxu1 %vm700_vm1, %v3487_v52 }
 0xe41   :  { %6743 = vmatmul.mubr.msk.bf16.gmra.mxu1 %vm700_vm1, %v10226_v37 }
 0xe42   :  { %6802 = vmatprep.mubr.msk.bf16.mxu1 %vm61_vm0, %v9121_v51 }
 0xe49   :  { %6803 = vmatmul.mubr.msk.bf16.vlgmr.msra.gmra.mxu1 %vm61_vm0, %v9132_v4 }
 0xe4a   :  { %6806 = vmatprep.mubr.msk.bf16.mxu1 %vm61_vm0, %v9149_v13 }
 0xe51   :  { %6807 = vmatmul.mubr.msk.bf16.gmra.mxu1 %vm61_vm0, %v9160_v20 }
 0xe52   :  { %6810 = vmatprep.mubr.msk.bf16.mxu1 %vm61_vm0, %v9173_v39 }
 0xe59   :  { %6811 = vmatmul.mubr.msk.bf16.gmra.mxu1 %vm61_vm0, %v9185_v29 }
 0xe5a   :  { %6814 = vmatprep.mubr.msk.bf16.mxu1 %vm61_vm0, %v9196_v2 }
 0xe61   :  { %6815 = vmatmul.mubr.msk.bf16.gmra.mxu1 %vm61_vm0, %v9204_v6 }
 0xee9   :  { %v6732_v46 = vpop.f32.mrf.mxu1 }
 0xeea   :  { %v9354_v33 = vadd.f32 %v6732_v46, %v9345_v22 }
 0xeeb   :  { %v3579_v18 = vpop.f32.mrf.mxu1 }
 0xeec   :  { %v9340_v60 = vadd.f32 %v9337_v7, %v3579_v18 }
 0xeed   :  { %v6733_v3 = vpop.f32.mrf.mxu1 }
 0xeee   :  { %3642 = vmax.xlane.f32.xlu0 %v9340_v60  ;;  %v9372_v35 = vadd.f32 %v6733_v3, %v9362_v5  ;;  %v9470_v3 = vld [vmem:[%s10186_s6 + $0xf8] sm:$0xff] }
 0xeef   :  { %v3582_v59 = vpop.f32.mrf.mxu1 }
 0xef0   :  { %v9357_v31 = vadd.f32 %v9350_v19, %v3582_v59 }
 0xef1   :  { %v6736_v28 = vpop.f32.mrf.mxu1 }
 0xef2   :  { %3644 = vmax.xlane.f32.xlu1 %v9357_v31  ;;  %3646 = vmax.xlane.f32.xlu0 %v9354_v33  ;;  %v9390_v1 = vadd.f32 %v6736_v28, %v9380_v55 }
 0xef3   :  { %v3595_v0 = vpop.f32.mrf.mxu1 }
 0xef4   :  { %v9375_v48 = vadd.f32 %v9367_v27, %v3595_v0 }
 0xef5   :  { %v6737_v30 = vpop.f32.mrf.mxu1 }
 0xef6   :  { %3648 = vmax.xlane.f32.xlu1 %v9372_v35  ;;  %3650 = vmax.xlane.f32.xlu0 %v9375_v48  ;;  %v9408_v17 = vadd.f32 %v6737_v30, %v9398_v58 }
 0xef7   :  { %v3598_v63 = vpop.f32.mrf.mxu1 }
 0xef8   :  { %v9393_v45 = vadd.f32 %v9385_v47, %v3598_v63 }
 0xef9   :  { %v6740_v56 = vpop.f32.mrf.mxu1 }
 0xefa   :  { %3652 = vmax.xlane.f32.xlu1 %v9393_v45  ;;  %3654 = vmax.xlane.f32.xlu0 %v9390_v1  ;;  %v9426_v24 = vadd.f32 %v6740_v56, %v9416_v9 }
 0xefb   :  { %v3611_v11 = vpop.f32.mrf.mxu1 }
 0xefc   :  { %v9411_v15 = vadd.f32 %v9403_v14, %v3611_v11 }
 0xefd   :  { %v6741_v50 = vpop.f32.mrf.mxu1 }
 0xefe   :  { %3656 = vmax.xlane.f32.xlu1 %v9408_v17  ;;  %3658 = vmax.xlane.f32.xlu0 %v9411_v15  ;;  %v9444_v34 = vadd.f32 %v6741_v50, %v9434_v61 }
 0xeff   :  { %v3614_v10 = vpop.f32.mrf.mxu1 }
 0xf00   :  { %v9429_v44 = vadd.f32 %v9421_v43, %v3614_v10 }
 0xf01   :  { %v6744_v32 = vpop.f32.mrf.mxu1 }
 0xf02   :  { %3660 = vmax.xlane.f32.xlu1 %v9429_v44  ;;  %3662 = vmax.xlane.f32.xlu0 %v9426_v24  ;;  %v9462_v46 = vadd.f32 %v6744_v32, %v9452_v21 }
 0xf03   :  { %v3627_v41 = vpop.f32.mrf.mxu1 }
 0xf04   :  { %v9447_v25 = vadd.f32 %v9439_v38, %v3627_v41 }
 0xf05   :  { %v6745_v52 = vpop.f32.mrf.mxu1 }
 0xf06   :  { %3664 = vmax.xlane.f32.xlu1 %v9444_v34  ;;  %3666 = vmax.xlane.f32.xlu0 %v9447_v25  ;;  %v9475_v0 = vadd.f32 %v6745_v52, %v9470_v3 }
 0xf07   :  { %v3630_v37 = vpop.f32.mrf.mxu1 }
 0xf08   :  { %v9465_v18 = vadd.f32 %v9457_v49, %v3630_v37 }
 0xf09   :  { %v6804_v59 = vpop.f32.mrf.mxu1 }
 0xf0a   :  { %3668 = vmax.xlane.f32.xlu1 %v9465_v18  ;;  %3670 = vmax.xlane.f32.xlu0 %v9462_v46 }
 0xf0b   :  { %v4080_v28 = vpop.f32.mrf.mxu1 }
 0xf0d   :  { %v6805_v30 = vpop.f32.mrf.mxu1 }
 0xf0e   :  { %v4261_v63 = vpack.c.bf16 %v6805_v30, %v6804_v59  ;;  %3672 = vmax.xlane.f32.xlu1 %v9475_v0 }
 0xf0f   :  { %v4083_v56 = vpop.f32.mrf.mxu1 }
 0xf10   :  { %v4260_v11 = vpack.c.bf16 %v4083_v56, %v4080_v28 }
 0xf11   :  { %v6808_v50 = vpop.f32.mrf.mxu1 }
 0xf13   :  { %v4096_v10 = vpop.f32.mrf.mxu1 }
 0xf15   :  { %v6809_v32 = vpop.f32.mrf.mxu1 }
 0xf17   :  { %v4099_v41 = vpop.f32.mrf.mxu1 }
 0xf19   :  { %v6812_v37 = vpop.f32.mrf.mxu1 }
 0xf1b   :  { %v4112_v36 = vpop.f32.mrf.mxu1 }
 0xf1d   :  { %v6813_v8 = vpop.f32.mrf.mxu1 }
 0xf1e   :  { %v4265_v28 = vpack.c.bf16 %v6813_v8, %v6812_v37  ;;  %v4296_v8 = vsel %vm700_vm1, %v4261_v63, 0 }
 0xf1f   :  { %v4115_v54 = vpop.f32.mrf.mxu1 }
 0xf20   :  { %v4308_v56 = vsel %vm700_vm1, %v4265_v28, 0  ;;  %v4264_v53 = vpack.c.bf16 %v4115_v54, %v4112_v36 }
 0xf21   :  { %v6816_v23 = vpop.f32.mrf.mxu1 }
 0xf23   :  { %v4128_v40 = vpop.f32.mrf.mxu1 }
 0xf25   :  { %v6817_v57 = vpop.f32.mrf.mxu1 }
 0xf26   :  { %v4267_v26 = vpack.c.bf16 %v6817_v57, %v6816_v23  ;;  %v4263_v57 = vpack.c.bf16 %v6809_v32, %v6808_v50  ;;  %v4305_v23 = vsel %vm700_vm1, %v4264_v53, 0 }
 0xf27   :  { %v4131_v52 = vpop.f32.mrf.mxu1 }
 0xf28   :  { %v4314_v12 = vsel %vm700_vm1, %v4267_v26, 0  ;;  %v4266_v59 = vpack.c.bf16 %v4131_v52, %v4128_v40  ;;  %7014 = vmatprep.subr.msk.bf16.mxu1 %vm700_vm1, %v4267_v26  ;;  %v4262_v26 = vpack.c.bf16 %v4099_v41, %v4096_v10 }
 0xf29   :  { %6839 = vmatpush3.bf16.xpose.msra.mxu1 %v4314_v12  ;;  %v4302_v12 = vsel %vm700_vm1, %v4263_v57, 0 }
 0xf2a   :  { %7015 = vmatprep.subr.msk.bf16.mxu1 %vm700_vm1, %v4266_v59  ;;  %v4311_v30 = vsel %vm700_vm1, %v4266_v59, 0  ;;  %v4299_v40 = vsel %vm700_vm1, %v4262_v26, 0 }
 0xf31   :  { %6841 = vmatpush3.bf16.xpose.msra.mxu1 %v4311_v30 }
 0xf32   :  { %7016 = vmatprep.subr.msk.bf16.mxu1 %vm700_vm1, %v4265_v28 }
 0xf39   :  { %6843 = vmatpush3.bf16.xpose.msra.mxu1 %v4308_v56 }
 0xf3a   :  { %7017 = vmatprep.subr.msk.bf16.mxu1 %vm700_vm1, %v4264_v53  ;;  %v4293_v53 = vsel %vm700_vm1, %v4260_v11, 0 }
 0xf41   :  { %6845 = vmatpush3.bf16.xpose.msra.mxu1 %v4305_v23 }
 0xf42   :  { %7018 = vmatprep.subr.msk.bf16.mxu1 %vm700_vm1, %v4263_v57 }
 0xf49   :  { %6847 = vmatpush3.bf16.xpose.msra.mxu1 %v4302_v12 }
 0xf4a   :  { %7019 = vmatprep.subr.msk.bf16.mxu1 %vm700_vm1, %v4262_v26 }
 0xf51   :  { %6849 = vmatpush3.bf16.xpose.msra.mxu1 %v4299_v40 }
 0xf52   :  { %7020 = vmatprep.subr.msk.bf16.mxu1 %vm700_vm1, %v4261_v63 }
 0xf59   :  { %6851 = vmatpush3.bf16.xpose.msra.mxu1 %v4296_v8 }
 0xf5a   :  { %7021 = vmatprep.subr.msk.bf16.mxu1 %vm700_vm1, %v4260_v11 }
 0xf61   :  { %6853 = vmatpush3.bf16.xpose.msra.mxu1 %v4293_v53 }
 0xf77   :  { %v3643_v54 = vpop.xlane.xlu0 %3642 }
 0xf78   :  { %v3674_v36 = vsub.f32 %v9340_v60, %v3643_v54 }
 0xf7a   :  { %v3690_v50 = vmul.f32 1.442695, %v3674_v36 }
 0xf7b   :  { %v3645_v10 = vpop.xlane.xlu1 %3644  ;;  %v3647_v32 = vpop.xlane.xlu0 %3646 }
 0xf7c   :  { %7329 = vpow2.f32 %v3690_v50  ;;  %v3675_v41 = vsub.f32 %v9357_v31, %v3645_v10  ;;  %v3676_v37 = vsub.f32 %v9354_v33, %v3647_v32 }
 0xf7e   :  { %v3692_v52 = vmul.f32 1.442695, %v3675_v41  ;;  %v3694_v59 = vmul.f32 1.442695, %v3676_v37 }
 0xf7f   :  { %v3649_v63 = vpop.xlane.xlu1 %3648  ;;  %v3651_v28 = vpop.xlane.xlu0 %3650 }
 0xf80   :  { %7331 = vpow2.f32 %v3692_v52  ;;  %v3677_v30 = vsub.f32 %v9372_v35, %v3649_v63  ;;  %v3678_v11 = vsub.f32 %v9375_v48, %v3651_v28 }
 0xf81   :  { %7333 = vpow2.f32 %v3694_v59 }
 0xf82   :  { %v3696_v56 = vmul.f32 1.442695, %v3677_v30  ;;  %v3698_v60 = vmul.f32 1.442695, %v3678_v11 }
 0xf83   :  { %v3653_v57 = vpop.xlane.xlu1 %3652  ;;  %v3655_v23 = vpop.xlane.xlu0 %3654 }
 0xf84   :  { %7335 = vpow2.f32 %v3696_v56  ;;  %v3679_v12 = vsub.f32 %v9393_v45, %v3653_v57  ;;  %v3680_v31 = vsub.f32 %v9390_v1, %v3655_v23 }
 0xf85   :  { %7337 = vpow2.f32 %v3698_v60 }
 0xf86   :  { %v3700_v33 = vmul.f32 1.442695, %v3679_v12  ;;  %v3702_v26 = vmul.f32 1.442695, %v3680_v31 }
 0xf87   :  { %v3657_v40 = vpop.xlane.xlu1 %3656  ;;  %v3659_v8 = vpop.xlane.xlu0 %3658 }
 0xf88   :  { %7339 = vpow2.f32 %v3700_v33  ;;  %v3681_v35 = vsub.f32 %v9408_v17, %v3657_v40  ;;  %v3682_v48 = vsub.f32 %v9411_v15, %v3659_v8 }
 0xf89   :  { %v9503_v53 = vpop.eup %7329  ;;  %7341 = vpow2.f32 %v3702_v26 }
 0xf8a   :  { %v3704_v54 = vmul.f32 1.442695, %v3681_v35  ;;  %v3706_v36 = vmul.f32 1.442695, %v3682_v48  ;;  %3722 = vadd.xlane.f32.xlu0 %v9503_v53 }
 0xf8b   :  { %v3661_v45 = vpop.xlane.xlu1 %3660  ;;  %v3663_v50 = vpop.xlane.xlu0 %3662 }
 0xf8c   :  { %7343 = vpow2.f32 %v3704_v54  ;;  %v3683_v1 = vsub.f32 %v9429_v44, %v3661_v45  ;;  %v3684_v10 = vsub.f32 %v9426_v24, %v3663_v50  ;;  %v7057_v45 = vld [vmem:[%s10181_s1 + $0x78] sm:$0xff]  }
 0xf8d   :  { %v9508_v32 = vpop.eup %7331  ;;  %7345 = vpow2.f32 %v3706_v36  ;;  %6778 = vmatprep.subr.bf16.mxu0 %v7057_v45 }
 0xf8e   :  { %v9510_v17 = vpop.eup %7333  ;;  %v3708_v15 = vmul.f32 1.442695, %v3683_v1  ;;  %v3710_v41 = vmul.f32 1.442695, %v3684_v10  ;;  %3724 = vadd.xlane.f32.xlu1 %v9508_v32 }
 0xf8f   :  { %3726 = vadd.xlane.f32.xlu0 %v9510_v17  ;;  %v3665_v37 = vpop.xlane.xlu1 %3664  ;;  %v3667_v52 = vpop.xlane.xlu0 %3666 }
 0xf90   :  { %7347 = vpow2.f32 %v3708_v15  ;;  %v3685_v59 = vsub.f32 %v9444_v34, %v3665_v37  ;;  %v3686_v44 = vsub.f32 %v9447_v25, %v3667_v52 }
 0xf91   :  { %v9516_v63 = vpop.eup %7335  ;;  %7349 = vpow2.f32 %v3710_v41 }
 0xf92   :  { %v9518_v24 = vpop.eup %7337  ;;  %v3712_v28 = vmul.f32 1.442695, %v3685_v59  ;;  %v3714_v30 = vmul.f32 1.442695, %v3686_v44  ;;  %3728 = vadd.xlane.f32.xlu1 %v9516_v63 }
 0xf93   :  { %3730 = vadd.xlane.f32.xlu0 %v9518_v24  ;;  %v3669_v11 = vpop.xlane.xlu1 %3668  ;;  %v3671_v56 = vpop.xlane.xlu0 %3670 }
 0xf94   :  { %7351 = vpow2.f32 %v3712_v28  ;;  %v3687_v60 = vsub.f32 %v9465_v18, %v3669_v11  ;;  %v3688_v34 = vsub.f32 %v9462_v46, %v3671_v56 }
 0xf95   :  { %v9524_v57 = vpop.eup %7339  ;;  %7353 = vpow2.f32 %v3714_v30 }
 0xf96   :  { %v9526_v25 = vpop.eup %7341  ;;  %v3716_v23 = vmul.f32 1.442695, %v3687_v60  ;;  %v3718_v12 = vmul.f32 1.442695, %v3688_v34  ;;  %3732 = vadd.xlane.f32.xlu1 %v9524_v57 }
 0xf97   :  { %3734 = vadd.xlane.f32.xlu0 %v9526_v25  ;;  %v3673_v31 = vpop.xlane.xlu1 %3672 }
 0xf98   :  { %7355 = vpow2.f32 %v3716_v23  ;;  %v3689_v33 = vsub.f32 %v9475_v0, %v3673_v31 }
 0xf99   :  { %v9531_v26 = vpop.eup %7343  ;;  %7357 = vpow2.f32 %v3718_v12 }
 0xf9a   :  { %v9533_v18 = vpop.eup %7345  ;;  %v3720_v46 = vmul.f32 1.442695, %v3689_v33  ;;  %3736 = vadd.xlane.f32.xlu1 %v9531_v26 }
 0xf9b   :  { %3738 = vadd.xlane.f32.xlu0 %v9533_v18 }
 0xf9c   :  { %7359 = vpow2.f32 %v3720_v46 }
 0xf9d   :  { %v9537_v40 = vpop.eup %7347 }
 0xf9e   :  { %v9539_v8 = vpop.eup %7349  ;;  %3740 = vadd.xlane.f32.xlu1 %v9537_v40 }
 0xf9f   :  { %3742 = vadd.xlane.f32.xlu0 %v9539_v8 }
 0xfa1   :  { %v9543_v0 = vpop.eup %7351 }
 0xfa2   :  { %v9545_v35 = vpop.eup %7353  ;;  %3744 = vadd.xlane.f32.xlu1 %v9543_v0 }
 0xfa3   :  { %3746 = vadd.xlane.f32.xlu0 %v9545_v35 }
 0xfa5   :  { %v9549_v48 = vpop.eup %7355 }
 0xfa6   :  { %v9551_v54 = vpop.eup %7357  ;;  %3748 = vadd.xlane.f32.xlu1 %v9549_v48 }
 0xfa7   :  { %3750 = vadd.xlane.f32.xlu0 %v9551_v54 }
 0xfa9   :  { %v9555_v36 = vpop.eup %7359 }
 0xfaa   :  { %3752 = vadd.xlane.f32.xlu1 %v9555_v36 }
0x1013   :  { %v3723_v50 = vpop.xlane.xlu0 %3722 }
0x1014   :  { %7361 = vrcp.f32 %v3723_v50 }
0x1017   :  { %v3725_v1 = vpop.xlane.xlu1 %3724 }
0x1018   :  { %7363 = vrcp.f32 %v3725_v1  ;;  %v3727_v10 = vpop.xlane.xlu0 %3726 }
0x1019   :  { %7365 = vrcp.f32 %v3727_v10 }
0x101b   :  { %v3729_v15 = vpop.xlane.xlu1 %3728 }
0x101c   :  { %7367 = vrcp.f32 %v3729_v15  ;;  %v3731_v41 = vpop.xlane.xlu0 %3730 }
0x101d   :  { %7369 = vrcp.f32 %v3731_v41 }
0x101f   :  { %v3733_v37 = vpop.xlane.xlu1 %3732 }
0x1020   :  { %7371 = vrcp.f32 %v3733_v37  ;;  %v3735_v52 = vpop.xlane.xlu0 %3734 }
0x1021   :  { %7373 = vrcp.f32 %v3735_v52  ;;  %v7362_v59 = vpop.eup %7361 }
0x1022   :  { %v3770_v11 = vmul.f32 %v7362_v59, %v9503_v53  ;;  %v7058_v53 = vld [vmem:[%s10181_s1 + $0x70] sm:$0xff]  }
0x1023   :  { %v3737_v44 = vpop.xlane.xlu1 %3736 }
0x1024   :  { %7375 = vrcp.f32 %v3737_v44  ;;  %v3739_v28 = vpop.xlane.xlu0 %3738  ;;  %v7059_v44 = vld [vmem:[%s10181_s1 + $0xb8] sm:$0xff]  }
0x1025   :  { %v7364_v30 = vpop.eup %7363  ;;  %7377 = vrcp.f32 %v3739_v28 }
0x1026   :  { %v3771_v56 = vmul.f32 %v7364_v30, %v9508_v32  ;;  %v7366_v60 = vpop.eup %7365 }
0x1027   :  { %v3741_v34 = vpop.xlane.xlu1 %3740  ;;  %v3772_v33 = vmul.f32 %v7366_v60, %v9510_v17 }
0x1028   :  { %7379 = vrcp.f32 %v3741_v34  ;;  %v3743_v23 = vpop.xlane.xlu0 %3742  ;;  %v3786_v12 = vpack.c.bf16 %v3771_v56, %v3770_v11 }
0x1029   :  { %v7368_v31 = vpop.eup %7367  ;;  %7381 = vrcp.f32 %v3743_v23 }
0x102a   :  { %v3773_v46 = vmul.f32 %v7368_v31, %v9516_v63  ;;  %6762 = vmatprep.mubr.bf16.mxu0 %v3786_v12  ;;  %v7370_v50 = vpop.eup %7369 }
0x102b   :  { %v3745_v1 = vpop.xlane.xlu1 %3744  ;;  %v3774_v41 = vmul.f32 %v7370_v50, %v9518_v24 }
0x102c   :  { %v3787_v10 = vpack.c.bf16 %v3773_v46, %v3772_v33  ;;  %7383 = vrcp.f32 %v3745_v1  ;;  %v3747_v15 = vpop.xlane.xlu0 %3746 }
0x102d   :  { %v7372_v32 = vpop.eup %7371  ;;  %7385 = vrcp.f32 %v3747_v15 }
0x102e   :  { %6763 = vmatmul.mubr.bf16.vlgmr.msra.gmra.mxu0 %v3787_v10  ;;  %v3775_v17 = vmul.f32 %v7372_v32, %v9524_v57  ;;  %v7374_v37 = vpop.eup %7373 }
0x102f   :  { %6779 = vmatpush3.bf16.msra.mxu0 %v7057_v45  ;;  %v3749_v63 = vpop.xlane.xlu1 %3748  ;;  %v3776_v30 = vmul.f32 %v7374_v37, %v9526_v25 }
0x1030   :  { %7387 = vrcp.f32 %v3749_v63  ;;  %v3751_v52 = vpop.xlane.xlu0 %3750  ;;  %v3788_v59 = vpack.c.bf16 %v3775_v17, %v3774_v41  ;;  %6780 = vmatprep.subr.bf16.mxu0 %v7058_v53 }
0x1031   :  { %v7376_v28 = vpop.eup %7375  ;;  %7389 = vrcp.f32 %v3751_v52 }
0x1032   :  { %6766 = vmatprep.mubr.bf16.mxu0 %v3788_v59  ;;  %v3777_v24 = vmul.f32 %v7376_v28, %v9531_v26  ;;  %v7378_v11 = vpop.eup %7377 }
0x1033   :  { %v3753_v57 = vpop.xlane.xlu1 %3752  ;;  %6781 = vmatpush3.bf16.msra.mxu0 %v7058_v53  ;;  %v3778_v60 = vmul.f32 %v7378_v11, %v9533_v18 }
0x1034   :  { %7391 = vrcp.f32 %v3753_v57  ;;  %v3789_v45 = vpack.c.bf16 %v3777_v24, %v3776_v30  ;;  %6818 = vmatprep.subr.bf16.mxu0 %v7059_v44 }
0x1035   :  { %v7380_v56 = vpop.eup %7379 }
0x1036   :  { %6767 = vmatmul.mubr.bf16.gmra.mxu0 %v3789_v45  ;;  %v3779_v34 = vmul.f32 %v7380_v56, %v9537_v40  ;;  %v7382_v23 = vpop.eup %7381 }
0x1037   :  { %v3780_v25 = vmul.f32 %v7382_v23, %v9539_v8  ;;  %v7060_v8 = vld [vmem:[%s10181_s1 + $0xb0] sm:$0xff]  }
0x1038   :  { %v3790_v12 = vpack.c.bf16 %v3779_v34, %v3778_v60 }
0x1039   :  { %v7384_v31 = vpop.eup %7383 }
0x103a   :  { %6770 = vmatprep.mubr.bf16.mxu0 %v3790_v12  ;;  %v3781_v26 = vmul.f32 %v7384_v31, %v9543_v0  ;;  %v7386_v33 = vpop.eup %7385 }
0x103b   :  { %v3782_v1 = vmul.f32 %v7386_v33, %v9545_v35 }
0x103c   :  { %v3791_v46 = vpack.c.bf16 %v3781_v26, %v3780_v25 }
0x103d   :  { %v7388_v50 = vpop.eup %7387 }
0x103e   :  { %6771 = vmatmul.mubr.bf16.gmra.mxu0 %v3791_v46  ;;  %v3783_v10 = vmul.f32 %v7388_v50, %v9549_v48  ;;  %v7390_v15 = vpop.eup %7389 }
0x103f   :  { %v3784_v40 = vmul.f32 %v7390_v15, %v9551_v54 }
0x1040   :  { %v3792_v18 = vpack.c.bf16 %v3783_v10, %v3782_v1 }
0x1041   :  { %v7392_v53 = vpop.eup %7391 }
0x1042   :  { %6774 = vmatprep.mubr.bf16.mxu0 %v3792_v18  ;;  %v3785_v32 = vmul.f32 %v7392_v53, %v9555_v36 }
0x1044   :  { %v3793_v41 = vpack.c.bf16 %v3785_v32, %v3784_v40 }
0x1046   :  { %6775 = vmatmul.mubr.bf16.gmra.mxu0 %v3793_v41 }
0x1047   :  { %6782 = vmatprep.mubr.msk.bf16.mxu0 %vm61_vm0, %v9121_v51 }
0x104e   :  { %6783 = vmatmul.mubr.msk.bf16.vlgmr.msra.gmra.mxu0 %vm61_vm0, %v9132_v4 }
0x104f   :  { %6786 = vmatprep.mubr.msk.bf16.mxu0 %vm61_vm0, %v9149_v13  ;;  %6819 = vmatpush3.bf16.msra.mxu0 %v7059_v44 }
0x1050   :  { %6820 = vmatprep.subr.bf16.mxu0 %v7060_v8 }
0x1053   :  { %6821 = vmatpush3.bf16.msra.mxu0 %v7060_v8 }
0x1056   :  { %6787 = vmatmul.mubr.msk.bf16.gmra.mxu0 %vm61_vm0, %v9160_v20 }
0x1057   :  { %6790 = vmatprep.mubr.msk.bf16.mxu0 %vm61_vm0, %v9173_v39 }
0x105e   :  { %6791 = vmatmul.mubr.msk.bf16.gmra.mxu0 %vm61_vm0, %v9185_v29 }
0x105f   :  { %6794 = vmatprep.mubr.msk.bf16.mxu0 %vm61_vm0, %v9196_v2 }
0x1066   :  { %6795 = vmatmul.mubr.msk.bf16.gmra.mxu0 %vm61_vm0, %v9204_v6 }
0x1067   :  { %6822 = vmatprep.mubr.msk.bf16.mxu0 %vm61_vm0, %v9121_v51  ;;  %v7061_v51 = vld [vmem:[%s10182_s2 + $0x10] sm:$0xff]  }
0x1068   :  { %6920 = vmatprep.subr.bf16.mxu1 %v7061_v51 }
0x106e   :  { %6823 = vmatmul.mubr.msk.bf16.vlgmr.msra.gmra.mxu0 %vm61_vm0, %v9132_v4 }
0x106f   :  { %6826 = vmatprep.mubr.msk.bf16.mxu0 %vm61_vm0, %v9149_v13 }
0x1076   :  { %6827 = vmatmul.mubr.msk.bf16.gmra.mxu0 %vm61_vm0, %v9160_v20 }
0x1077   :  { %6830 = vmatprep.mubr.msk.bf16.mxu0 %vm61_vm0, %v9173_v39 }
0x107e   :  { %6831 = vmatmul.mubr.msk.bf16.gmra.mxu0 %vm61_vm0, %v9185_v29 }
0x107f   :  { %6834 = vmatprep.mubr.msk.bf16.mxu0 %vm61_vm0, %v9196_v2 }
0x1086   :  { %6835 = vmatmul.mubr.msk.bf16.gmra.mxu0 %vm61_vm0, %v9204_v6 }
0x10ee   :  { %v9621_v4 = vpop.f32.mrf.mxu0 }
0x10f0   :  { %v3836_v13 = vpop.f32.mrf.mxu0 }
0x10f2   :  { %v6765_v20 = vpop.f32.mrf.mxu0 }
0x10f3   :  { %v3900_v39 = vpack.c.bf16 %v6765_v20, %v9621_v4 }
0x10f4   :  { %v3839_v0 = vpop.f32.mrf.mxu0 }
0x10f5   :  { %v3899_v4 = vpack.c.bf16 %v3839_v0, %v3836_v13 }
0x10f6   :  { %v9624_v35 = vpop.f32.mrf.mxu0 }
0x10f8   :  { %v3852_v29 = vpop.f32.mrf.mxu0 }
0x10fa   :  { %v9626_v48 = vpop.f32.mrf.mxu0 }
0x10fb   :  { %v3902_v2 = vpack.c.bf16 %v9626_v48, %v9624_v35 }
0x10fc   :  { %v3855_v6 = vpop.f32.mrf.mxu0 }
0x10fe   :  { %v9630_v54 = vpop.f32.mrf.mxu0 }
0x1100   :  { %v3868_v36 = vpop.f32.mrf.mxu0 }
0x1102   :  { %v9632_v17 = vpop.f32.mrf.mxu0 }
0x1103   :  { %v3904_v37 = vpack.c.bf16 %v9632_v17, %v9630_v54 }
0x1104   :  { %v3871_v63 = vpop.f32.mrf.mxu0 }
0x1105   :  { %v3903_v13 = vpack.c.bf16 %v3871_v63, %v3868_v36 }
0x1106   :  { %v9636_v52 = vpop.f32.mrf.mxu0 }
0x1108   :  { %v3884_v59 = vpop.f32.mrf.mxu0 }
0x110a   :  { %v9638_v44 = vpop.f32.mrf.mxu0 }
0x110b   :  { %v3906_v28 = vpack.c.bf16 %v9638_v44, %v9636_v52 }
0x110c   :  { %v3887_v30 = vpop.f32.mrf.mxu0 }
0x110e   :  { %v6784_v24 = vpop.f32.mrf.mxu0 }
0x1110   :  { %v3971_v11 = vpop.f32.mrf.mxu0 }
0x1112   :  { %v6785_v57 = vpop.f32.mrf.mxu0 }
0x1113   :  { %v4253_v60 = vpack.c.bf16 %v6785_v57, %v6784_v24 }
0x1114   :  { %v3974_v45 = vpop.f32.mrf.mxu0 }
0x1115   :  { %v4252_v56 = vpack.c.bf16 %v3974_v45, %v3971_v11  ;;  %v3901_v11 = vpack.c.bf16 %v3855_v6, %v3852_v29 }
0x1116   :  { %v6788_v34 = vpop.f32.mrf.mxu0 }
0x1117   :  { %6854 = vmatprep.mubr.msk.bf16.mxu1 %vm700_vm1, %v4252_v56 }
0x1118   :  { %v3987_v23 = vpop.f32.mrf.mxu0  ;;  %6855 = vmatmul.mubr.msk.bf16.vlgmr.msra.gmra.mxu1 %vm700_vm1, %v4253_v60 }
0x1119   :  { %6921 = vmatpush3.bf16.msra.mxu1 %v7061_v51 }
0x111a   :  { %v6789_v12 = vpop.f32.mrf.mxu0 }
0x111b   :  { %v4255_v26 = vpack.c.bf16 %v6789_v12, %v6788_v34 }
0x111c   :  { %v3990_v31 = vpop.f32.mrf.mxu0 }
0x111d   :  { %v4254_v25 = vpack.c.bf16 %v3990_v31, %v3987_v23  ;;  %v3905_v31 = vpack.c.bf16 %v3887_v30, %v3884_v59 }
0x111e   :  { %v6792_v33 = vpop.f32.mrf.mxu0 }
0x111f   :  { %6858 = vmatprep.mubr.msk.bf16.mxu1 %vm700_vm1, %v4254_v25 }
0x1120   :  { %v4003_v46 = vpop.f32.mrf.mxu0  ;;  %6859 = vmatmul.mubr.msk.bf16.gmra.mxu1 %vm700_vm1, %v4255_v26 }
0x1122   :  { %v6793_v50 = vpop.f32.mrf.mxu0 }
0x1123   :  { %v4257_v15 = vpack.c.bf16 %v6793_v50, %v6792_v33 }
0x1124   :  { %v4006_v1 = vpop.f32.mrf.mxu0 }
0x1125   :  { %v4256_v10 = vpack.c.bf16 %v4006_v1, %v4003_v46 }
0x1126   :  { %v6796_v18 = vpop.f32.mrf.mxu0 }
0x1127   :  { %6862 = vmatprep.mubr.msk.bf16.mxu1 %vm700_vm1, %v4256_v10 }
0x1128   :  { %v4019_v53 = vpop.f32.mrf.mxu0  ;;  %6863 = vmatmul.mubr.msk.bf16.gmra.mxu1 %vm700_vm1, %v4257_v15 }
0x112a   :  { %v6797_v40 = vpop.f32.mrf.mxu0 }
0x112b   :  { %v4259_v8 = vpack.c.bf16 %v6797_v40, %v6796_v18 }
0x112c   :  { %v4022_v32 = vpop.f32.mrf.mxu0 }
0x112d   :  { %v4258_v41 = vpack.c.bf16 %v4022_v32, %v4019_v53 }
0x112e   :  { %v6824_v51 = vpop.f32.mrf.mxu0 }
0x112f   :  { %6866 = vmatprep.mubr.msk.bf16.mxu1 %vm700_vm1, %v4258_v41 }
0x1130   :  { %v4189_v20 = vpop.f32.mrf.mxu0  ;;  %6867 = vmatmul.mubr.msk.bf16.gmra.mxu1 %vm700_vm1, %v4259_v8 }
0x1131   :  { %6922 = vmatprep.mubr.msk.bf16.mxu1 %vm700_vm1, %v3899_v4 }
0x1132   :  { %v6825_v35 = vpop.f32.mrf.mxu0 }
0x1133   :  { %v4566_v63 = vpack.c.bf16 %v6825_v35, %v6824_v51 }
0x1134   :  { %v4192_v48 = vpop.f32.mrf.mxu0 }
0x1135   :  { %v4565_v59 = vpack.c.bf16 %v4192_v48, %v4189_v20 }
0x1136   :  { %v6828_v24 = vpop.f32.mrf.mxu0 }
0x1138   :  { %v4205_v57 = vpop.f32.mrf.mxu0  ;;  %6923 = vmatmul.mubr.msk.bf16.vlgmr.msra.gmra.mxu1 %vm700_vm1, %v3900_v39 }
0x1139   :  { %6926 = vmatprep.mubr.msk.bf16.mxu1 %vm700_vm1, %v3901_v11 }
0x113a   :  { %v6829_v45 = vpop.f32.mrf.mxu0 }
0x113b   :  { %v4568_v17 = vpack.c.bf16 %v6829_v45, %v6828_v24 }
0x113c   :  { %v4208_v56 = vpop.f32.mrf.mxu0 }
0x113e   :  { %v6832_v60 = vpop.f32.mrf.mxu0 }
0x1140   :  { %v4221_v0 = vpop.f32.mrf.mxu0  ;;  %6927 = vmatmul.mubr.msk.bf16.gmra.mxu1 %vm700_vm1, %v3902_v2 }
0x1141   :  { %6930 = vmatprep.mubr.msk.bf16.mxu1 %vm700_vm1, %v3903_v13 }
0x1142   :  { %v6833_v34 = vpop.f32.mrf.mxu0 }
0x1143   :  { %v4570_v2 = vpack.c.bf16 %v6833_v34, %v6832_v60 }
0x1144   :  { %v4224_v23 = vpop.f32.mrf.mxu0 }
0x1145   :  { %v4569_v54 = vpack.c.bf16 %v4224_v23, %v4221_v0 }
0x1146   :  { %v6836_v12 = vpop.f32.mrf.mxu0 }
0x1148   :  { %v4237_v25 = vpop.f32.mrf.mxu0  ;;  %6931 = vmatmul.mubr.msk.bf16.gmra.mxu1 %vm700_vm1, %v3904_v37  ;;  %v4567_v37 = vpack.c.bf16 %v4208_v56, %v4205_v57 }
0x1149   :  { %6934 = vmatprep.mubr.msk.bf16.mxu1 %vm700_vm1, %v3905_v31 }
0x114a   :  { %v6837_v39 = vpop.f32.mrf.mxu0 }
0x114b   :  { %v4572_v29 = vpack.c.bf16 %v6837_v39, %v6836_v12 }
0x114c   :  { %v4240_v6 = vpop.f32.mrf.mxu0 }
0x114d   :  { %v4571_v36 = vpack.c.bf16 %v4240_v6, %v4237_v25  ;;  %6870 = vmatprep.subr.bf16.mxu0 %v4572_v29 }
0x114e   :  { %6871 = vmatpush3.bf16.msra.mxu0 %v4572_v29 }
0x114f   :  { %6872 = vmatprep.subr.bf16.mxu0 %v4571_v36 }
0x1150   :  { %6935 = vmatmul.mubr.msk.bf16.gmra.mxu1 %vm700_vm1, %v3906_v28 }
0x1152   :  { %6873 = vmatpush3.bf16.msra.mxu0 %v4571_v36 }
0x1153   :  { %6874 = vmatprep.subr.bf16.mxu0 %v4570_v2 }
0x1156   :  { %6875 = vmatpush3.bf16.msra.mxu0 %v4570_v2 }
0x1157   :  { %6876 = vmatprep.subr.bf16.mxu0 %v4569_v54 }
0x115a   :  { %6877 = vmatpush3.bf16.msra.mxu0 %v4569_v54 }
0x115b   :  { %6878 = vmatprep.subr.bf16.mxu0 %v4568_v17 }
0x115e   :  { %6879 = vmatpush3.bf16.msra.mxu0 %v4568_v17 }
0x115f   :  { %6880 = vmatprep.subr.bf16.mxu0 %v4567_v37 }
0x1162   :  { %6881 = vmatpush3.bf16.msra.mxu0 %v4567_v37 }
0x1163   :  { %6882 = vmatprep.subr.bf16.mxu0 %v4566_v63 }
0x1166   :  { %6883 = vmatpush3.bf16.msra.mxu0 %v4566_v63 }
0x1167   :  { %6884 = vmatprep.subr.bf16.mxu0 %v4565_v59 }
0x116a   :  { %6885 = vmatpush3.bf16.msra.mxu0 %v4565_v59 }
0x11d8   :  { %v6856_v52 = vpop.f32.mrf.mxu1 }
0x11d9   :  { %v4359_v33 = vadd.f32 %v6856_v52, %v9345_v22 }
0x11da   :  { %v4350_v44 = vpop.f32.mrf.mxu1 }
0x11db   :  { %v4351_v28 = vadd.f32 %v9337_v7, %v4350_v44 }
0x11dc   :  { %v6857_v30 = vpop.f32.mrf.mxu1 }
0x11dd   :  { %4413 = vmax.xlane.f32.xlu0 %v4351_v28  ;;  %v4362_v10 = vadd.f32 %v6857_v30, %v9362_v5 }
0x11de   :  { %v4353_v26 = vpop.f32.mrf.mxu1 }
0x11df   :  { %v4354_v46 = vadd.f32 %v9350_v19, %v4353_v26 }
0x11e0   :  { %v6860_v50 = vpop.f32.mrf.mxu1 }
0x11e1   :  { %4415 = vmax.xlane.f32.xlu1 %v4354_v46  ;;  %4417 = vmax.xlane.f32.xlu0 %v4359_v33  ;;  %v4375_v7 = vadd.f32 %v6860_v50, %v9380_v55 }
0x11e2   :  { %v4366_v1 = vpop.f32.mrf.mxu1 }
0x11e3   :  { %v4367_v15 = vadd.f32 %v9367_v27, %v4366_v1 }
0x11e4   :  { %v6861_v18 = vpop.f32.mrf.mxu1 }
0x11e5   :  { %4419 = vmax.xlane.f32.xlu1 %v4362_v10  ;;  %4421 = vmax.xlane.f32.xlu0 %v4367_v15  ;;  %v4378_v19 = vadd.f32 %v6861_v18, %v9398_v58 }
0x11e6   :  { %v4369_v53 = vpop.f32.mrf.mxu1 }
0x11e7   :  { %v4370_v40 = vadd.f32 %v9385_v47, %v4369_v53 }
0x11e8   :  { %v6864_v32 = vpop.f32.mrf.mxu1 }
0x11e9   :  { %4423 = vmax.xlane.f32.xlu1 %v4370_v40  ;;  %4425 = vmax.xlane.f32.xlu0 %v4375_v7  ;;  %v9674_v27 = vadd.f32 %v6864_v32, %v9416_v9 }
0x11ea   :  { %v4382_v22 = vpop.f32.mrf.mxu1 }
0x11eb   :  { %v4383_v41 = vadd.f32 %v9403_v14, %v4382_v22 }
0x11ec   :  { %v6865_v8 = vpop.f32.mrf.mxu1 }
0x11ed   :  { %4427 = vmax.xlane.f32.xlu1 %v4378_v19  ;;  %4429 = vmax.xlane.f32.xlu0 %v4383_v41  ;;  %v9679_v4 = vadd.f32 %v6865_v8, %v9434_v61 }
0x11ee   :  { %v4385_v5 = vpop.f32.mrf.mxu1 }
0x11ef   :  { %v4386_v51 = vadd.f32 %v9421_v43, %v4385_v5 }
0x11f0   :  { %v6868_v55 = vpop.f32.mrf.mxu1 }
0x11f1   :  { %4431 = vmax.xlane.f32.xlu1 %v4386_v51  ;;  %4433 = vmax.xlane.f32.xlu0 %v9674_v27  ;;  %v9687_v20 = vadd.f32 %v6868_v55, %v9452_v21 }
0x11f2   :  { %v4398_v47 = vpop.f32.mrf.mxu1 }
0x11f3   :  { %v9682_v58 = vadd.f32 %v9439_v38, %v4398_v47 }
0x11f4   :  { %v6869_v14 = vpop.f32.mrf.mxu1 }
0x11f5   :  { %4435 = vmax.xlane.f32.xlu1 %v9679_v4  ;;  %4437 = vmax.xlane.f32.xlu0 %v9682_v58  ;;  %v9695_v61 = vadd.f32 %v6869_v14, %v9470_v3 }
0x11f6   :  { %v4401_v9 = vpop.f32.mrf.mxu1 }
0x11f7   :  { %v9690_v43 = vadd.f32 %v9457_v49, %v4401_v9 }
0x11f9   :  { %4439 = vmax.xlane.f32.xlu1 %v9690_v43  ;;  %4441 = vmax.xlane.f32.xlu0 %v9687_v20 }
0x11fd   :  { %4443 = vmax.xlane.f32.xlu1 %v9695_v61 }
0x1266   :  { %v4414_v38 = vpop.xlane.xlu0 %4413 }
0x1267   :  { %v4445_v35 = vsub.f32 %v4351_v28, %v4414_v38 }
0x1269   :  { %v4461_v48 = vmul.f32 1.442695, %v4445_v35 }
0x126a   :  { %v4416_v24 = vpop.xlane.xlu1 %4415  ;;  %v4418_v11 = vpop.xlane.xlu0 %4417 }
0x126b   :  { %7393 = vpow2.f32 %v4461_v48  ;;  %v4446_v21 = vsub.f32 %v4354_v46, %v4416_v24  ;;  %v4447_v57 = vsub.f32 %v4359_v33, %v4418_v11  ;;  %v7062_v24 = vld [vmem:[%s10182_s2 + $0x18] sm:$0xff]  }
0x126c   :  { %6902 = vmatprep.subr.bf16.mxu0 %v7062_v24 }
0x126d   :  { %v4463_v45 = vmul.f32 1.442695, %v4446_v21  ;;  %v4465_v49 = vmul.f32 1.442695, %v4447_v57 }
0x126e   :  { %v4420_v56 = vpop.xlane.xlu1 %4419  ;;  %v4422_v60 = vpop.xlane.xlu0 %4421 }
0x126f   :  { %7395 = vpow2.f32 %v4463_v45  ;;  %v4448_v13 = vsub.f32 %v4362_v10, %v4420_v56  ;;  %v4449_v0 = vsub.f32 %v4367_v15, %v4422_v60 }
0x1270   :  { %7397 = vpow2.f32 %v4465_v49 }
0x1271   :  { %v4467_v3 = vmul.f32 1.442695, %v4448_v13  ;;  %v4469_v34 = vmul.f32 1.442695, %v4449_v0 }
0x1272   :  { %v4424_v23 = vpop.xlane.xlu1 %4423  ;;  %v4426_v12 = vpop.xlane.xlu0 %4425 }
0x1273   :  { %7399 = vpow2.f32 %v4467_v3  ;;  %v4450_v31 = vsub.f32 %v4370_v40, %v4424_v23  ;;  %v4451_v25 = vsub.f32 %v4375_v7, %v4426_v12 }
0x1274   :  { %7401 = vpow2.f32 %v4469_v34 }
0x1275   :  { %v4471_v39 = vmul.f32 1.442695, %v4450_v31  ;;  %v4473_v29 = vmul.f32 1.442695, %v4451_v25 }
0x1276   :  { %v4428_v6 = vpop.xlane.xlu1 %4427  ;;  %v4430_v36 = vpop.xlane.xlu0 %4429 }
0x1277   :  { %7403 = vpow2.f32 %v4471_v39  ;;  %v4452_v2 = vsub.f32 %v4378_v19, %v4428_v6  ;;  %v4453_v54 = vsub.f32 %v4383_v41, %v4430_v36 }
0x1278   :  { %v9698_v17 = vpop.eup %7393  ;;  %7405 = vpow2.f32 %v4473_v29 }
0x1279   :  { %v4475_v37 = vmul.f32 1.442695, %v4452_v2  ;;  %v4477_v63 = vmul.f32 1.442695, %v4453_v54  ;;  %4493 = vadd.xlane.f32.xlu0 %v9698_v17 }
0x127a   :  { %v4432_v59 = vpop.xlane.xlu1 %4431  ;;  %v4434_v52 = vpop.xlane.xlu0 %4433 }
0x127b   :  { %7407 = vpow2.f32 %v4475_v37  ;;  %v4454_v44 = vsub.f32 %v4386_v51, %v4432_v59  ;;  %v4455_v28 = vsub.f32 %v9674_v27, %v4434_v52 }
0x127c   :  { %v9702_v30 = vpop.eup %7395  ;;  %7409 = vpow2.f32 %v4477_v63 }
0x127d   :  { %v9704_v26 = vpop.eup %7397  ;;  %v4479_v33 = vmul.f32 1.442695, %v4454_v44  ;;  %v4481_v46 = vmul.f32 1.442695, %v4455_v28  ;;  %4495 = vadd.xlane.f32.xlu1 %v9702_v30 }
0x127e   :  { %4497 = vadd.xlane.f32.xlu0 %v9704_v26  ;;  %v4436_v50 = vpop.xlane.xlu1 %4435  ;;  %v4438_v1 = vpop.xlane.xlu0 %4437 }
0x127f   :  { %7411 = vpow2.f32 %v4479_v33  ;;  %v4456_v10 = vsub.f32 %v9679_v4, %v4436_v50  ;;  %v4457_v15 = vsub.f32 %v9682_v58, %v4438_v1 }
0x1280   :  { %v9710_v18 = vpop.eup %7399  ;;  %7413 = vpow2.f32 %v4481_v46 }
0x1281   :  { %v9712_v53 = vpop.eup %7401  ;;  %v4483_v7 = vmul.f32 1.442695, %v4456_v10  ;;  %v4485_v40 = vmul.f32 1.442695, %v4457_v15  ;;  %4499 = vadd.xlane.f32.xlu1 %v9710_v18 }
0x1282   :  { %4501 = vadd.xlane.f32.xlu0 %v9712_v53  ;;  %v4440_v32 = vpop.xlane.xlu1 %4439  ;;  %v4442_v22 = vpop.xlane.xlu0 %4441 }
0x1283   :  { %7415 = vpow2.f32 %v4483_v7  ;;  %v4458_v19 = vsub.f32 %v9690_v43, %v4440_v32  ;;  %v4459_v41 = vsub.f32 %v9687_v20, %v4442_v22 }
0x1284   :  { %v9718_v8 = vpop.eup %7403  ;;  %7417 = vpow2.f32 %v4485_v40 }
0x1285   :  { %v9720_v5 = vpop.eup %7405  ;;  %v4487_v27 = vmul.f32 1.442695, %v4458_v19  ;;  %v4489_v51 = vmul.f32 1.442695, %v4459_v41  ;;  %4503 = vadd.xlane.f32.xlu1 %v9718_v8 }
0x1286   :  { %4505 = vadd.xlane.f32.xlu0 %v9720_v5  ;;  %v4444_v55 = vpop.xlane.xlu1 %4443 }
0x1287   :  { %7419 = vpow2.f32 %v4487_v27  ;;  %v4460_v47 = vsub.f32 %v9695_v61, %v4444_v55 }
0x1288   :  { %v9725_v4 = vpop.eup %7407  ;;  %7421 = vpow2.f32 %v4489_v51 }
0x1289   :  { %v9727_v58 = vpop.eup %7409  ;;  %v4491_v14 = vmul.f32 1.442695, %v4460_v47  ;;  %4507 = vadd.xlane.f32.xlu1 %v9725_v4 }
0x128a   :  { %4509 = vadd.xlane.f32.xlu0 %v9727_v58 }
0x128b   :  { %7423 = vpow2.f32 %v4491_v14 }
0x128c   :  { %v9731_v9 = vpop.eup %7411 }
0x128d   :  { %v9733_v20 = vpop.eup %7413  ;;  %4511 = vadd.xlane.f32.xlu1 %v9731_v9 }
0x128e   :  { %4513 = vadd.xlane.f32.xlu0 %v9733_v20 }
0x1290   :  { %v9737_v43 = vpop.eup %7415 }
0x1291   :  { %v9739_v61 = vpop.eup %7417  ;;  %4515 = vadd.xlane.f32.xlu1 %v9737_v43 }
0x1292   :  { %4517 = vadd.xlane.f32.xlu0 %v9739_v61 }
0x1294   :  { %v9743_v38 = vpop.eup %7419 }
0x1295   :  { %v9745_v35 = vpop.eup %7421  ;;  %4519 = vadd.xlane.f32.xlu1 %v9743_v38 }
0x1296   :  { %4521 = vadd.xlane.f32.xlu0 %v9745_v35 }
0x1298   :  { %v9749_v48 = vpop.eup %7423 }
0x1299   :  { %4523 = vadd.xlane.f32.xlu1 %v9749_v48 }
0x1302   :  { %v4494_v11 = vpop.xlane.xlu0 %4493 }
0x1303   :  { %7425 = vrcp.f32 %v4494_v11 }
0x1306   :  { %v4496_v21 = vpop.xlane.xlu1 %4495 }
0x1307   :  { %7427 = vrcp.f32 %v4496_v21  ;;  %v4498_v57 = vpop.xlane.xlu0 %4497 }
0x1308   :  { %7429 = vrcp.f32 %v4498_v57 }
0x130a   :  { %v4500_v45 = vpop.xlane.xlu1 %4499 }
0x130b   :  { %7431 = vrcp.f32 %v4500_v45  ;;  %v4502_v49 = vpop.xlane.xlu0 %4501 }
0x130c   :  { %7433 = vrcp.f32 %v4502_v49 }
0x130e   :  { %v4504_v56 = vpop.xlane.xlu1 %4503 }
0x130f   :  { %7435 = vrcp.f32 %v4504_v56  ;;  %v4506_v60 = vpop.xlane.xlu0 %4505 }
0x1310   :  { %7437 = vrcp.f32 %v4506_v60  ;;  %v7426_v13 = vpop.eup %7425 }
0x1311   :  { %v4541_v23 = vmul.f32 %v7426_v13, %v9698_v17 }
0x1312   :  { %v4508_v0 = vpop.xlane.xlu1 %4507 }
0x1313   :  { %7439 = vrcp.f32 %v4508_v0  ;;  %v4510_v3 = vpop.xlane.xlu0 %4509 }
0x1314   :  { %v7428_v34 = vpop.eup %7427  ;;  %7441 = vrcp.f32 %v4510_v3 }
0x1315   :  { %v4542_v12 = vmul.f32 %v7428_v34, %v9702_v30  ;;  %v7430_v31 = vpop.eup %7429 }
0x1316   :  { %v4512_v25 = vpop.xlane.xlu1 %4511  ;;  %v4543_v36 = vmul.f32 %v7430_v31, %v9704_v26 }
0x1317   :  { %7443 = vrcp.f32 %v4512_v25  ;;  %v4514_v39 = vpop.xlane.xlu0 %4513  ;;  %v4557_v29 = vpack.c.bf16 %v4542_v12, %v4541_v23 }
0x1318   :  { %v7432_v6 = vpop.eup %7431  ;;  %7445 = vrcp.f32 %v4514_v39 }
0x1319   :  { %v4544_v2 = vmul.f32 %v7432_v6, %v9710_v18  ;;  %6886 = vmatprep.mubr.bf16.mxu0 %v4557_v29  ;;  %v7434_v54 = vpop.eup %7433 }
0x131a   :  { %v4516_v37 = vpop.xlane.xlu1 %4515  ;;  %v4545_v52 = vmul.f32 %v7434_v54, %v9712_v53 }
0x131b   :  { %v4558_v63 = vpack.c.bf16 %v4544_v2, %v4543_v36  ;;  %7447 = vrcp.f32 %v4516_v37  ;;  %v4518_v59 = vpop.xlane.xlu0 %4517  ;;  %v6924_v2 = vpop.f32.mrf.mxu1 }
0x131c   :  { %v7436_v17 = vpop.eup %7435  ;;  %7449 = vrcp.f32 %v4518_v59 }
0x131d   :  { %6887 = vmatmul.mubr.bf16.vlgmr.msra.gmra.mxu0 %v4558_v63  ;;  %v4546_v44 = vmul.f32 %v7436_v17, %v9718_v8  ;;  %v7438_v28 = vpop.eup %7437  ;;  %v4872_v54 = vpop.f32.mrf.mxu1 }
0x131e   :  { %v4520_v30 = vpop.xlane.xlu1 %4519  ;;  %6903 = vmatpush3.bf16.msra.mxu0 %v7062_v24  ;;  %v4547_v50 = vmul.f32 %v7438_v28, %v9720_v5 }
0x131f   :  { %7451 = vrcp.f32 %v4520_v30  ;;  %v4522_v26 = vpop.xlane.xlu0 %4521  ;;  %v4559_v33 = vpack.c.bf16 %v4546_v44, %v4545_v52  ;;  %v6925_v37 = vpop.f32.mrf.mxu1 }
0x1320   :  { %v7440_v46 = vpop.eup %7439  ;;  %7453 = vrcp.f32 %v4522_v26 }
0x1321   :  { %6890 = vmatprep.mubr.bf16.mxu0 %v4559_v33  ;;  %v4548_v1 = vmul.f32 %v7440_v46, %v9725_v4  ;;  %v7442_v10 = vpop.eup %7441  ;;  %v4875_v63 = vpop.f32.mrf.mxu1 }
0x1322   :  { %v4524_v15 = vpop.xlane.xlu1 %4523  ;;  %v4549_v7 = vmul.f32 %v7442_v10, %v9727_v58  ;;  %v9783_v10 = vld [vmem:[%s10185_s5 + $0x8] sm:$0x7f] }
0x1323   :  { %7455 = vrcp.f32 %v4524_v15  ;;  %v4560_v18 = vpack.c.bf16 %v4548_v1, %v4547_v50  ;;  %v6928_v59 = vpop.f32.mrf.mxu1  ;;  %v10227_v15 = vsub.s32 2, %v7816_v16 }
0x1324   :  { %v7444_v53 = vpop.eup %7443 }
0x1325   :  { %6891 = vmatmul.mubr.bf16.gmra.mxu0 %v4560_v18  ;;  %v4550_v40 = vmul.f32 %v7444_v53, %v9731_v9  ;;  %v7446_v32 = vpop.eup %7445  ;;  %v4888_v17 = vpop.f32.mrf.mxu1  ;;  %v9788_v18 = vrot.slane %v9783_v10, %v10227_v15 }
0x1326   :  { %v4551_v41 = vmul.f32 %v7446_v32, %v9733_v20 }
0x1327   :  { %v4561_v22 = vpack.c.bf16 %v4550_v40, %v4549_v7  ;;  %v6929_v52 = vpop.f32.mrf.mxu1 }
0x1328   :  { %v7448_v19 = vpop.eup %7447 }
0x1329   :  { %6894 = vmatprep.mubr.bf16.mxu0 %v4561_v22  ;;  %v4552_v8 = vmul.f32 %v7448_v19, %v9737_v43  ;;  %v7450_v5 = vpop.eup %7449  ;;  %v4891_v44 = vpop.f32.mrf.mxu1 }
0x132a   :  { %v4553_v55 = vmul.f32 %v7450_v5, %v9739_v61 }
0x132b   :  { %v4562_v27 = vpack.c.bf16 %v4552_v8, %v4551_v41  ;;  %v6932_v26 = vpop.f32.mrf.mxu1 }
0x132c   :  { %v7452_v51 = vpop.eup %7451 }
0x132d   :  { %6895 = vmatmul.mubr.bf16.gmra.mxu0 %v4562_v27  ;;  %v4554_v47 = vmul.f32 %v7452_v51, %v9743_v38  ;;  %v7454_v4 = vpop.eup %7453  ;;  %v4904_v40 = vpop.f32.mrf.mxu1  ;;  %v10229_v27 = vld [vmem:[#allocation5_spill] sm:$0xff] }
0x132e   :  { %v4555_v9 = vmul.f32 %v7454_v4, %v9745_v35 }
0x132f   :  { %v4563_v58 = vpack.c.bf16 %v4554_v47, %v4553_v55 }
0x1330   :  { %v7456_v14 = vpop.eup %7455 }
0x1331   :  { %6898 = vmatprep.mubr.bf16.mxu0 %v4563_v58  ;;  %v4556_v24 = vmul.f32 %v7456_v14, %v9749_v48 }
0x1333   :  { %v4564_v11 = vpack.c.bf16 %v4556_v24, %v4555_v9  ;;  %v10230_v24 = vld [vmem:[#allocation8_spill] sm:$0xff] }
0x1335   :  { %6899 = vmatmul.mubr.bf16.gmra.mxu0 %v4564_v11 }
0x13dd   :  { %v6888_v20 = vpop.f32.mrf.mxu0 }
0x13df   :  { %v4607_v43 = vpop.f32.mrf.mxu0 }
0x13e1   :  { %v6889_v21 = vpop.f32.mrf.mxu0 }
0x13e2   :  { %v4671_v49 = vpack.c.bf16 %v6889_v21, %v6888_v20 }
0x13e3   :  { %v4610_v57 = vpop.f32.mrf.mxu0 }
0x13e4   :  { %v4670_v45 = vpack.c.bf16 %v4610_v57, %v4607_v43  ;;  %v10231_v43 = vld [vmem:[#allocation7_spill] sm:$0xff] }
0x13e5   :  { %v6892_v56 = vpop.f32.mrf.mxu0 }
0x13e6   :  { %6904 = vmatprep.mubr.msk.bf16.mxu0 %vm700_vm1, %v4670_v45 }
0x13e7   :  { %v4623_v61 = vpop.f32.mrf.mxu0  ;;  %6905 = vmatmul.mubr.msk.bf16.vlgmr.msra.gmra.mxu0 %vm700_vm1, %v4671_v49 }
0x13e9   :  { %v6893_v38 = vpop.f32.mrf.mxu0 }
0x13ea   :  { %v4673_v35 = vpack.c.bf16 %v6893_v38, %v6892_v56 }
0x13eb   :  { %v4626_v60 = vpop.f32.mrf.mxu0 }
0x13ec   :  { %v4672_v13 = vpack.c.bf16 %v4626_v60, %v4623_v61 }
0x13ed   :  { %v6896_v0 = vpop.f32.mrf.mxu0 }
0x13ee   :  { %6908 = vmatprep.mubr.msk.bf16.mxu0 %vm700_vm1, %v4672_v13 }
0x13ef   :  { %v4639_v48 = vpop.f32.mrf.mxu0  ;;  %6909 = vmatmul.mubr.msk.bf16.gmra.mxu0 %vm700_vm1, %v4673_v35 }
0x13f1   :  { %v6897_v3 = vpop.f32.mrf.mxu0 }
0x13f2   :  { %v4675_v12 = vpack.c.bf16 %v6897_v3, %v6896_v0 }
0x13f3   :  { %v4642_v34 = vpop.f32.mrf.mxu0 }
0x13f4   :  { %v4674_v23 = vpack.c.bf16 %v4642_v34, %v4639_v48  ;;  %v10232_v48 = vld [vmem:[#allocation10_spill] sm:$0xff]  ;;  %v10233_v34 = vld [vmem:[#allocation9_spill] sm:$0xff] }
0x13f5   :  { %v6900_v31 = vpop.f32.mrf.mxu0 }
0x13f6   :  { %6912 = vmatprep.mubr.msk.bf16.mxu0 %vm700_vm1, %v4674_v23 }
0x13f7   :  { %v4655_v25 = vpop.f32.mrf.mxu0  ;;  %6913 = vmatmul.mubr.msk.bf16.gmra.mxu0 %vm700_vm1, %v4675_v12 }
0x13f9   :  { %v6901_v39 = vpop.f32.mrf.mxu0 }
0x13fa   :  { %v4677_v36 = vpack.c.bf16 %v6901_v39, %v6900_v31 }
0x13fb   :  { %v4658_v29 = vpop.f32.mrf.mxu0 }
0x13fc   :  { %v4676_v6 = vpack.c.bf16 %v4658_v29, %v4655_v25 }
0x13fe   :  { %6916 = vmatprep.mubr.msk.bf16.mxu0 %vm700_vm1, %v4676_v6 }
0x13ff   :  { %6917 = vmatmul.mubr.msk.bf16.gmra.mxu0 %vm700_vm1, %v4677_v36  ;;  %v10234_v36 = vld [vmem:[#allocation12_spill] sm:$0xff] }
0x14a7   :  { %v6906_v28 = vpop.f32.mrf.mxu0 }
0x14a8   :  { %v4881_v30 = vadd.f32 %v6924_v2, %v6906_v28 }
0x14a9   :  { %v4745_v33 = vpop.f32.mrf.mxu0 }
0x14aa   :  { %v4873_v46 = vadd.f32 %v4872_v54, %v4745_v33  ;;  %v4937_v1 = vadd.f32 %v4881_v30, %v8896_v62  ;;  %v10228_v62 = vld [vmem:[#allocation6_spill] sm:$0xff] }
0x14ab   :  { %v6907_v50 = vpop.f32.mrf.mxu0 }
0x14ac   :  { %v4935_v53 = vadd.f32 %v4873_v46, %v8892_v42  ;;  %v4884_v7 = vadd.f32 %v6925_v37, %v6907_v50  ;;  %v9796_v5 = vadd.f32 %v9788_v18, %v4937_v1  ;;  %v6933_v42 = vpop.f32.mrf.mxu1  ;;  %v10236_v50 = vld [vmem:[#allocation14_spill] sm:$0xff] }
0x14ad   :  { %v4748_v32 = vpop.f32.mrf.mxu0 }
0x14ae   :  { %v9792_v22 = vadd.f32 %v9788_v18, %v4935_v53  ;;  %v4876_v19 = vadd.f32 %v4875_v63, %v4748_v32  ;;  %v4938_v41 = vadd.f32 %v4884_v7, %v10228_v62  ;;  %v4977_v45 = vsel %vm61_vm0, %v9796_v5, 0.0  ;;  %v4907_v56 = vpop.f32.mrf.mxu1  ;;  %v10237_v53 = vld [vmem:[#allocation13_spill] sm:$0xff] }
0x14af   :  { %v6910_v8 = vpop.f32.mrf.mxu0 }
0x14b0   :  { %v4936_v51 = vadd.f32 %v4876_v19, %v10229_v27  ;;  %v4897_v55 = vadd.f32 %v6928_v59, %v6910_v8  ;;  %v4971_v47 = vsel %vm61_vm0, %v9792_v22, 0.0  ;;  %v9805_v9 = vadd.f32 %v9788_v18, %v4938_v41  ;;  %v6936_v25 = vpop.f32.mrf.mxu1  ;;  %v10235_v59 = vld [vmem:[#allocation11_spill] sm:$0xff] }
0x14b1   :  { %4972 = vadd.xlane.f32.xlu0 %v4971_v47  ;;  %v4761_v4 = vpop.f32.mrf.mxu0 }
0x14b2   :  { %v9802_v58 = vadd.f32 %v9788_v18, %v4936_v51  ;;  %v4889_v14 = vadd.f32 %v4888_v17, %v4761_v4  ;;  %v4941_v11 = vadd.f32 %v4897_v55, %v10230_v24  ;;  %v4980_v0 = vsel %vm61_vm0, %v9805_v9, 0.0  ;;  %v4920_v28 = vpop.f32.mrf.mxu1 }
0x14b3   :  { %v6911_v20 = vpop.f32.mrf.mxu0 }
0x14b4   :  { %v4939_v21 = vadd.f32 %v4889_v14, %v10231_v43  ;;  %v4900_v57 = vadd.f32 %v6929_v52, %v6911_v20  ;;  %v4974_v49 = vsel %vm61_vm0, %v9802_v58, 0.0  ;;  %v9817_v13 = vadd.f32 %v9788_v18, %v4941_v11  ;;  %v6937_v62 = vpop.f32.mrf.mxu1  ;;  %v10239_v14 = vld [vmem:[#allocation15_spill] sm:$0xff] }
0x14b5   :  { %4978 = vadd.xlane.f32.xlu0 %v4977_v45  ;;  %4975 = vadd.xlane.f32.xlu1 %v4974_v49  ;;  %v4764_v61 = vpop.f32.mrf.mxu0 }
0x14b6   :  { %v9814_v38 = vadd.f32 %v9788_v18, %v4939_v21  ;;  %v4892_v60 = vadd.f32 %v4891_v44, %v4764_v61  ;;  %v4942_v3 = vadd.f32 %v4900_v57, %v10232_v48  ;;  %v4989_v37 = vsel %vm61_vm0, %v9817_v13, 0.0  ;;  %v4923_v43 = vpop.f32.mrf.mxu1  ;;  %v10240_v61 = vld [vmem:[#allocation18_spill] sm:$0xff] }
0x14b7   :  { %v6914_v35 = vpop.f32.mrf.mxu0 }
0x14b8   :  { %v4940_v23 = vadd.f32 %v4892_v60, %v10233_v34  ;;  %v4913_v12 = vadd.f32 %v6932_v26, %v6914_v35  ;;  %v4983_v31 = vsel %vm61_vm0, %v9814_v38, 0.0  ;;  %v9832_v63 = vadd.f32 %v9788_v18, %v4942_v3  ;;  %v10241_v35 = vld [vmem:[#allocation17_spill] sm:$0xff] }
0x14b9   :  { %4981 = vadd.xlane.f32.xlu1 %v4980_v0  ;;  %4984 = vadd.xlane.f32.xlu0 %v4983_v31  ;;  %v4777_v39 = vpop.f32.mrf.mxu0 }
0x14ba   :  { %v9826_v29 = vadd.f32 %v9788_v18, %v4940_v23  ;;  %v4905_v6 = vadd.f32 %v4904_v40, %v4777_v39  ;;  %v4945_v2 = vadd.f32 %v4913_v12, %v10234_v36  ;;  %v4992_v32 = vsel %vm61_vm0, %v9832_v63, 0.0 }
0x14bb   :  { %v6915_v54 = vpop.f32.mrf.mxu0 }
0x14bc   :  { %v4943_v17 = vadd.f32 %v4905_v6, %v10235_v59  ;;  %v4916_v52 = vadd.f32 %v6933_v42, %v6915_v54  ;;  %v4986_v44 = vsel %vm61_vm0, %v9826_v29, 0.0  ;;  %v9841_v46 = vadd.f32 %v9788_v18, %v4945_v2  ;;  %v10238_v42 = vld [vmem:[#allocation16_spill] sm:$0xff] }
0x14bd   :  { %4990 = vadd.xlane.f32.xlu0 %v4989_v37  ;;  %4987 = vadd.xlane.f32.xlu1 %v4986_v44  ;;  %v4780_v30 = vpop.f32.mrf.mxu0 }
0x14be   :  { %v9838_v26 = vadd.f32 %v9788_v18, %v4943_v17  ;;  %v4908_v33 = vadd.f32 %v4907_v56, %v4780_v30  ;;  %v4946_v1 = vadd.f32 %v4916_v52, %v10236_v50  ;;  %v5001_v47 = vsel %vm61_vm0, %v9841_v46, 0.0 }
0x14bf   :  { %v6918_v15 = vpop.f32.mrf.mxu0 }
0x14c0   :  { %v4944_v7 = vadd.f32 %v4908_v33, %v10237_v53  ;;  %v4929_v40 = vadd.f32 %v6936_v25, %v6918_v15  ;;  %v4995_v19 = vsel %vm61_vm0, %v9838_v26, 0.0  ;;  %v9853_v51 = vadd.f32 %v9788_v18, %v4946_v1 }
0x14c1   :  { %4993 = vadd.xlane.f32.xlu1 %v4992_v32  ;;  %4996 = vadd.xlane.f32.xlu0 %v4995_v19  ;;  %v4793_v41 = vpop.f32.mrf.mxu0 }
0x14c2   :  { %v9850_v8 = vadd.f32 %v9788_v18, %v4944_v7  ;;  %v4921_v27 = vadd.f32 %v4920_v28, %v4793_v41  ;;  %v4949_v4 = vadd.f32 %v4929_v40, %v10238_v42  ;;  %v5004_v49 = vsel %vm61_vm0, %v9853_v51, 0.0 }
0x14c3   :  { %v6919_v55 = vpop.f32.mrf.mxu0 }
0x14c4   :  { %v4947_v24 = vadd.f32 %v4921_v27, %v10239_v14  ;;  %v4932_v11 = vadd.f32 %v6937_v62, %v6919_v55  ;;  %v4998_v20 = vsel %vm61_vm0, %v9850_v8, 0.0  ;;  %v9867_v56 = vadd.f32 %v9788_v18, %v4949_v4 }
0x14c5   :  { %5002 = vadd.xlane.f32.xlu0 %v5001_v47  ;;  %4999 = vadd.xlane.f32.xlu1 %v4998_v20  ;;  %v4796_v21 = vpop.f32.mrf.mxu0 }
0x14c6   :  { %v9862_v57 = vadd.f32 %v9788_v18, %v4947_v24  ;;  %v4924_v45 = vadd.f32 %v4923_v43, %v4796_v21  ;;  %v4950_v60 = vadd.f32 %v4932_v11, %v10240_v61  ;;  %v5013_v12 = vsel %vm61_vm0, %v9867_v56, 0.0 }
0x14c8   :  { %v4948_v0 = vadd.f32 %v4924_v45, %v10241_v35  ;;  %v5007_v48 = vsel %vm61_vm0, %v9862_v57, 0.0  ;;  %v9877_v34 = vadd.f32 %v9788_v18, %v4950_v60 }
0x14c9   :  { %5005 = vadd.xlane.f32.xlu1 %v5004_v49  ;;  %5008 = vadd.xlane.f32.xlu0 %v5007_v48 }
0x14ca   :  { %v9874_v3 = vadd.f32 %v9788_v18, %v4948_v0  ;;  %v5016_v31 = vsel %vm61_vm0, %v9877_v34, 0.0 }
0x14cc   :  { %v5010_v23 = vsel %vm61_vm0, %v9874_v3, 0.0 }
0x14cd   :  { %5011 = vadd.xlane.f32.xlu1 %v5010_v23  ;;  %5014 = vadd.xlane.f32.xlu0 %v5013_v12 }
0x14d1   :  { %5017 = vadd.xlane.f32.xlu1 %v5016_v31 }
0x153a   :  { %v4973_v25 = vpop.xlane.xlu0 %4972 }
0x153b   :  { %v5019_v39 = vmul.f32 0.03125, %v4973_v25 }
0x153d   :  { %v9886_v6 = vsub.f32 %v9792_v22, %v5019_v39  ;;  %v7063_v39 = vld [vmem:[%s10183_s3 + $0x18] sm:$0xff]  }
0x153e   :  { %v4979_v36 = vpop.xlane.xlu0 %4978  ;;  %v4976_v18 = vpop.xlane.xlu1 %4975  ;;  %6938 = vmatprep.subr.bf16.mxu0 %v7063_v39 }
0x153f   :  { %v5021_v2 = vmul.f32 0.03125, %v4979_v36  ;;  %v5020_v54 = vmul.f32 0.03125, %v4976_v18  ;;  %v5051_v37 = vmul.f32 %v9886_v6, %v9886_v6  ;;  %6939 = vmatpush3.bf16.msra.mxu0 %v7063_v39 }
0x1541   :  { %v9891_v59 = vsub.f32 %v9796_v5, %v5021_v2  ;;  %v9894_v17 = vsub.f32 %v9802_v58, %v5020_v54  ;;  %v5067_v52 = vsel %vm61_vm0, %v5051_v37, 0.0 }
0x1542   :  { %v4982_v44 = vpop.xlane.xlu1 %4981  ;;  %v4985_v28 = vpop.xlane.xlu0 %4984  ;;  %5068 = vadd.xlane.f32.xlu0 %v5067_v52 }
0x1543   :  { %v5022_v30 = vmul.f32 0.03125, %v4982_v44  ;;  %v5023_v33 = vmul.f32 0.03125, %v4985_v28  ;;  %v5052_v50 = vmul.f32 %v9894_v17, %v9894_v17  ;;  %v5053_v1 = vmul.f32 %v9891_v59, %v9891_v59 }
0x1545   :  { %v9902_v15 = vsub.f32 %v9805_v9, %v5022_v30  ;;  %v9905_v53 = vsub.f32 %v9814_v38, %v5023_v33  ;;  %v5070_v7 = vsel %vm61_vm0, %v5052_v50, 0.0  ;;  %v5073_v40 = vsel %vm61_vm0, %v5053_v1, 0.0 }
0x1546   :  { %v4991_v32 = vpop.xlane.xlu0 %4990  ;;  %v4988_v19 = vpop.xlane.xlu1 %4987  ;;  %5071 = vadd.xlane.f32.xlu1 %v5070_v7  ;;  %5074 = vadd.xlane.f32.xlu0 %v5073_v40 }
0x1547   :  { %v5025_v62 = vmul.f32 0.03125, %v4991_v32  ;;  %v5024_v41 = vmul.f32 0.03125, %v4988_v19  ;;  %v5054_v27 = vmul.f32 %v9902_v15, %v9902_v15  ;;  %v5055_v55 = vmul.f32 %v9905_v53, %v9905_v53 }
0x1549   :  { %v9914_v47 = vsub.f32 %v9817_v13, %v5025_v62  ;;  %v9917_v42 = vsub.f32 %v9826_v29, %v5024_v41  ;;  %v5076_v4 = vsel %vm61_vm0, %v5054_v27, 0.0  ;;  %v5079_v14 = vsel %vm61_vm0, %v5055_v55, 0.0 }
0x154a   :  { %v4994_v24 = vpop.xlane.xlu1 %4993  ;;  %v4997_v11 = vpop.xlane.xlu0 %4996  ;;  %5077 = vadd.xlane.f32.xlu1 %v5076_v4  ;;  %5080 = vadd.xlane.f32.xlu0 %v5079_v14 }
0x154b   :  { %v5026_v20 = vmul.f32 0.03125, %v4994_v24  ;;  %v5027_v43 = vmul.f32 0.03125, %v4997_v11  ;;  %v5056_v21 = vmul.f32 %v9917_v42, %v9917_v42  ;;  %v5057_v45 = vmul.f32 %v9914_v47, %v9914_v47 }
0x154d   :  { %v9926_v49 = vsub.f32 %v9832_v63, %v5026_v20  ;;  %v9929_v61 = vsub.f32 %v9838_v26, %v5027_v43  ;;  %v5082_v60 = vsel %vm61_vm0, %v5056_v21, 0.0  ;;  %v5085_v35 = vsel %vm61_vm0, %v5057_v45, 0.0 }
0x154e   :  { %v5003_v0 = vpop.xlane.xlu0 %5002  ;;  %v5000_v48 = vpop.xlane.xlu1 %4999  ;;  %5083 = vadd.xlane.f32.xlu1 %v5082_v60  ;;  %5086 = vadd.xlane.f32.xlu0 %v5085_v35 }
0x154f   :  { %v5029_v23 = vmul.f32 0.03125, %v5003_v0  ;;  %v5028_v12 = vmul.f32 0.03125, %v5000_v48  ;;  %v5058_v31 = vmul.f32 %v9926_v49, %v9926_v49  ;;  %v5059_v25 = vmul.f32 %v9929_v61, %v9929_v61 }
0x1551   :  { %v9941_v36 = vsub.f32 %v9841_v46, %v5029_v23  ;;  %v9944_v18 = vsub.f32 %v9850_v8, %v5028_v12  ;;  %v5088_v2 = vsel %vm61_vm0, %v5058_v31, 0.0  ;;  %v5091_v54 = vsel %vm61_vm0, %v5059_v25, 0.0  ;;  %v7064_v12 = vld [vmem:[%s10183_s3 + $0x10] sm:$0xff]   ;;  %v7065_v31 = vld [vmem:[%s10184_s4 + $0x78] sm:$0xff]  }
0x1552   :  { %v5006_v37 = vpop.xlane.xlu1 %5005  ;;  %5089 = vadd.xlane.f32.xlu1 %v5088_v2  ;;  %5092 = vadd.xlane.f32.xlu0 %v5091_v54  ;;  %v5009_v52 = vpop.xlane.xlu0 %5008 }
0x1553   :  { %v5030_v44 = vmul.f32 0.03125, %v5006_v37  ;;  %v5031_v28 = vmul.f32 0.03125, %v5009_v52  ;;  %v5060_v30 = vmul.f32 %v9944_v18, %v9944_v18  ;;  %v5061_v33 = vmul.f32 %v9941_v36, %v9941_v36  ;;  %6940 = vmatprep.subr.bf16.mxu0 %v7064_v12  ;;  %6958 = vmatprep.subr.bf16.mxu1 %v7065_v31 }
0x1554   :  { %6941 = vmatpush3.bf16.msra.mxu0 %v7064_v12  ;;  %6959 = vmatpush3.bf16.msra.mxu1 %v7065_v31  ;;  %v10242_v12 = vsub.s32 3, %v7816_v16 }
0x1555   :  { %v9953_v50 = vsub.f32 %v9853_v51, %v5030_v44  ;;  %v9956_v1 = vsub.f32 %v9862_v57, %v5031_v28  ;;  %v5094_v7 = vsel %vm61_vm0, %v5060_v30, 0.0  ;;  %v5097_v40 = vsel %vm61_vm0, %v5061_v33, 0.0 }
0x1556   :  { %5095 = vadd.xlane.f32.xlu1 %v5094_v7  ;;  %v5012_v32 = vpop.xlane.xlu1 %5011  ;;  %5098 = vadd.xlane.f32.xlu0 %v5097_v40  ;;  %v5015_v19 = vpop.xlane.xlu0 %5014  ;;  %v9993_v31 = vrot.slane %v9783_v10, %v10242_v12 }
0x1557   :  { %v5032_v62 = vmul.f32 0.03125, %v5012_v32  ;;  %v5033_v41 = vmul.f32 0.03125, %v5015_v19  ;;  %v5062_v27 = vmul.f32 %v9953_v50, %v9953_v50  ;;  %v5063_v55 = vmul.f32 %v9956_v1, %v9956_v1 }
0x1559   :  { %v9965_v4 = vsub.f32 %v9874_v3, %v5032_v62  ;;  %v9968_v14 = vsub.f32 %v9867_v56, %v5033_v41  ;;  %v5100_v24 = vsel %vm61_vm0, %v5062_v27, 0.0  ;;  %v5103_v11 = vsel %vm61_vm0, %v5063_v55, 0.0 }
0x155a   :  { %5101 = vadd.xlane.f32.xlu1 %v5100_v24  ;;  %v5018_v20 = vpop.xlane.xlu1 %5017  ;;  %5104 = vadd.xlane.f32.xlu0 %v5103_v11 }
0x155b   :  { %v5034_v43 = vmul.f32 0.03125, %v5018_v20  ;;  %v5064_v21 = vmul.f32 %v9965_v4, %v9965_v4  ;;  %v5065_v45 = vmul.f32 %v9968_v14, %v9968_v14 }
0x155d   :  { %v9977_v60 = vsub.f32 %v9877_v34, %v5034_v43  ;;  %v5106_v35 = vsel %vm61_vm0, %v5064_v21, 0.0  ;;  %v5109_v0 = vsel %vm61_vm0, %v5065_v45, 0.0 }
0x155e   :  { %5107 = vadd.xlane.f32.xlu1 %v5106_v35  ;;  %5110 = vadd.xlane.f32.xlu0 %v5109_v0 }
0x155f   :  { %v5066_v48 = vmul.f32 %v9977_v60, %v9977_v60 }
0x1561   :  { %v5112_v23 = vsel %vm61_vm0, %v5066_v48, 0.0 }
0x1562   :  { %5113 = vadd.xlane.f32.xlu1 %v5112_v23 }
0x15cb   :  { %v5069_v25 = vpop.xlane.xlu0 %5068 }
0x15cc   :  { %v5115_v39 = vmul.f32 0.03125, %v5069_v25 }
0x15ce   :  { %v5131_v2 = vadd.f32 1e-05, %v5115_v39 }
0x15cf   :  { %v5072_v54 = vpop.xlane.xlu1 %5071  ;;  %v5075_v37 = vpop.xlane.xlu0 %5074 }
0x15d0   :  { %7457 = vrsqrt.f32 %v5131_v2  ;;  %v5116_v52 = vmul.f32 0.03125, %v5072_v54  ;;  %v5117_v44 = vmul.f32 0.03125, %v5075_v37 }
0x15d2   :  { %v5132_v28 = vadd.f32 1e-05, %v5116_v52  ;;  %v5133_v30 = vadd.f32 1e-05, %v5117_v44 }
0x15d3   :  { %v5078_v33 = vpop.xlane.xlu1 %5077  ;;  %v5081_v7 = vpop.xlane.xlu0 %5080 }
0x15d4   :  { %7459 = vrsqrt.f32 %v5132_v28  ;;  %v5118_v40 = vmul.f32 0.03125, %v5078_v33  ;;  %v5119_v32 = vmul.f32 0.03125, %v5081_v7  ;;  %v10243_v7 = vsub.s32 4, %v7816_v16 }
0x15d5   :  { %7461 = vrsqrt.f32 %v5133_v30 }
0x15d6   :  { %v5134_v19 = vadd.f32 1e-05, %v5118_v40  ;;  %v5135_v62 = vadd.f32 1e-05, %v5119_v32  ;;  %v10000_v40 = vrot.slane %v9783_v10, %v10243_v7 }
0x15d7   :  { %v5084_v41 = vpop.xlane.xlu1 %5083  ;;  %v5087_v27 = vpop.xlane.xlu0 %5086 }
0x15d8   :  { %7463 = vrsqrt.f32 %v5134_v19  ;;  %v5120_v55 = vmul.f32 0.03125, %v5084_v41  ;;  %v5121_v24 = vmul.f32 0.03125, %v5087_v27 }
0x15d9   :  { %7465 = vrsqrt.f32 %v5135_v62 }
0x15da   :  { %v5136_v11 = vadd.f32 1e-05, %v5120_v55  ;;  %v5137_v20 = vadd.f32 1e-05, %v5121_v24 }
0x15db   :  { %v5090_v43 = vpop.xlane.xlu1 %5089  ;;  %v5093_v21 = vpop.xlane.xlu0 %5092 }
0x15dc   :  { %7467 = vrsqrt.f32 %v5136_v11  ;;  %v5122_v45 = vmul.f32 0.03125, %v5090_v43  ;;  %v5123_v35 = vmul.f32 0.03125, %v5093_v21 }
0x15dd   :  { %v7458_v0 = vpop.eup %7457  ;;  %7469 = vrsqrt.f32 %v5137_v20 }
0x15de   :  { %v5138_v48 = vadd.f32 1e-05, %v5122_v45  ;;  %v5139_v23 = vadd.f32 1e-05, %v5123_v35  ;;  %v5163_v2 = vmul.f32 %v7458_v0, %v9886_v6 }
0x15df   :  { %v5096_v25 = vpop.xlane.xlu1 %5095  ;;  %v5099_v39 = vpop.xlane.xlu0 %5098 }
0x15e0   :  { %7471 = vrsqrt.f32 %v5138_v48  ;;  %v5124_v54 = vmul.f32 0.03125, %v5096_v25  ;;  %v5125_v37 = vmul.f32 0.03125, %v5099_v39  ;;  %v5183_v6 = vmul.f32 %v9993_v31, %v5163_v2 }
0x15e1   :  { %v7460_v52 = vpop.eup %7459  ;;  %7473 = vrsqrt.f32 %v5139_v23 }
0x15e2   :  { %v7462_v44 = vpop.eup %7461  ;;  %v5140_v28 = vadd.f32 1e-05, %v5124_v54  ;;  %v5141_v30 = vadd.f32 1e-05, %v5125_v37  ;;  %v5164_v33 = vmul.f32 %v7460_v52, %v9894_v17  ;;  %v5203_v0 = vadd.f32 %v10000_v40, %v5183_v6 }
0x15e3   :  { %v5165_v32 = vmul.f32 %v7462_v44, %v9891_v59  ;;  %v5102_v19 = vpop.xlane.xlu1 %5101  ;;  %v5105_v62 = vpop.xlane.xlu0 %5104 }
0x15e4   :  { %7475 = vrsqrt.f32 %v5140_v28  ;;  %v5126_v41 = vmul.f32 0.03125, %v5102_v19  ;;  %v5127_v27 = vmul.f32 0.03125, %v5105_v62  ;;  %v5184_v55 = vmul.f32 %v9993_v31, %v5164_v33 }
0x15e5   :  { %v7464_v24 = vpop.eup %7463  ;;  %v5185_v11 = vmul.f32 %v9993_v31, %v5165_v32  ;;  %7477 = vrsqrt.f32 %v5141_v30 }
0x15e6   :  { %v7466_v17 = vpop.eup %7465  ;;  %v5166_v20 = vmul.f32 %v7464_v24, %v9902_v15  ;;  %v5142_v43 = vadd.f32 1e-05, %v5126_v41  ;;  %v5143_v21 = vadd.f32 1e-05, %v5127_v27  ;;  %v5204_v59 = vadd.f32 %v10000_v40, %v5184_v55 }
0x15e7   :  { %v5108_v45 = vpop.xlane.xlu1 %5107  ;;  %v5111_v35 = vpop.xlane.xlu0 %5110  ;;  %v5167_v48 = vmul.f32 %v7466_v17, %v9905_v53  ;;  %v5205_v2 = vadd.f32 %v10000_v40, %v5185_v11 }
0x15e8   :  { %v5186_v23 = vmul.f32 %v9993_v31, %v5166_v20  ;;  %7479 = vrsqrt.f32 %v5142_v43  ;;  %v5128_v12 = vmul.f32 0.03125, %v5108_v45  ;;  %v5129_v25 = vmul.f32 0.03125, %v5111_v35 }
0x15e9   :  { %v7468_v39 = vpop.eup %7467  ;;  %7481 = vrsqrt.f32 %v5143_v21  ;;  %v5219_v15 = vpack.c.bf16 %v5204_v59, %v5203_v0  ;;  %v5187_v54 = vmul.f32 %v9993_v31, %v5167_v48 }
0x15ea   :  { %v7470_v37 = vpop.eup %7469  ;;  %v5206_v52 = vadd.f32 %v10000_v40, %v5186_v23  ;;  %v5144_v44 = vadd.f32 1e-05, %v5128_v12  ;;  %v5145_v28 = vadd.f32 1e-05, %v5129_v25  ;;  %v5168_v30 = vmul.f32 %v7468_v39, %v9917_v42 }
0x15eb   :  { %v5169_v53 = vmul.f32 %v7470_v37, %v9914_v47  ;;  %6942 = vmatprep.mubr.msk.bf16.mxu0 %vm61_vm0, %v5219_v15  ;;  %v5114_v33 = vpop.xlane.xlu1 %5113  ;;  %v5207_v6 = vadd.f32 %v10000_v40, %v5187_v54 }
0x15ec   :  { %v5220_v7 = vpack.c.bf16 %v5206_v52, %v5205_v2  ;;  %7483 = vrsqrt.f32 %v5144_v44  ;;  %v5130_v32 = vmul.f32 0.03125, %v5114_v33  ;;  %v5188_v19 = vmul.f32 %v9993_v31, %v5168_v30 }
0x15ed   :  { %v7472_v62 = vpop.eup %7471  ;;  %7485 = vrsqrt.f32 %v5145_v28  ;;  %v5189_v42 = vmul.f32 %v9993_v31, %v5169_v53 }
0x15ee   :  { %v7474_v41 = vpop.eup %7473  ;;  %v5170_v27 = vmul.f32 %v7472_v62, %v9926_v49  ;;  %v5146_v55 = vadd.f32 1e-05, %v5130_v32  ;;  %6943 = vmatmul.mubr.msk.bf16.vlgmr.msra.gmra.mxu0 %vm61_vm0, %v5220_v7  ;;  %v5208_v47 = vadd.f32 %v10000_v40, %v5188_v19 }
0x15ef   :  { %v5171_v24 = vmul.f32 %v7474_v41, %v9929_v61  ;;  %v5209_v21 = vadd.f32 %v10000_v40, %v5189_v42  ;;  %v7071_v42 = vld [vmem:[%s10184_s4 + $0x48] sm:$0xff]  }
0x15f0   :  { %7487 = vrsqrt.f32 %v5146_v55  ;;  %v5221_v11 = vpack.c.bf16 %v5208_v47, %v5207_v6  ;;  %v5190_v17 = vmul.f32 %v9993_v31, %v5170_v27  ;;  %v7067_v55 = vld [vmem:[%s10184_s4 + $0x68] sm:$0xff]   ;;  %v7070_v47 = vld [vmem:[%s10184_s4 + $0x50] sm:$0xff]  }
0x15f1   :  { %v7476_v20 = vpop.eup %7475  ;;  %v5191_v45 = vmul.f32 %v9993_v31, %v5171_v24  ;;  %v7072_v24 = vld [vmem:[%s10184_s4 + $0x40] sm:$0xff]  }
0x15f2   :  { %v7478_v43 = vpop.eup %7477  ;;  %6946 = vmatprep.mubr.msk.bf16.mxu0 %vm61_vm0, %v5221_v11  ;;  %v5210_v49 = vadd.f32 %v10000_v40, %v5190_v17  ;;  %v5172_v59 = vmul.f32 %v7476_v20, %v9944_v18  ;;  %v10244_v11 = vsub.s32 6, %v7816_v16 }
0x15f3   :  { %v5173_v35 = vmul.f32 %v7478_v43, %v9941_v36  ;;  %v5211_v25 = vadd.f32 %v10000_v40, %v5191_v45 }
0x15f4   :  { %v5222_v0 = vpack.c.bf16 %v5210_v49, %v5209_v21  ;;  %v5192_v61 = vmul.f32 %v9993_v31, %v5172_v59  ;;  %v10080_v17 = vrot.slane %v9783_v10, %v10244_v11 }
0x15f5   :  { %v7480_v48 = vpop.eup %7479  ;;  %v5193_v2 = vmul.f32 %v9993_v31, %v5173_v35 }
0x15f6   :  { %v7482_v23 = vpop.eup %7481  ;;  %v5174_v12 = vmul.f32 %v7480_v48, %v9953_v50  ;;  %6947 = vmatmul.mubr.msk.bf16.gmra.mxu0 %vm61_vm0, %v5222_v0  ;;  %v5212_v39 = vadd.f32 %v10000_v40, %v5192_v61 }
0x15f7   :  { %v5175_v18 = vmul.f32 %v7482_v23, %v9956_v1  ;;  %v5213_v52 = vadd.f32 %v10000_v40, %v5193_v2 }
0x15f8   :  { %v5223_v15 = vpack.c.bf16 %v5212_v39, %v5211_v25  ;;  %v5194_v36 = vmul.f32 %v9993_v31, %v5174_v12 }
0x15f9   :  { %v7484_v54 = vpop.eup %7483  ;;  %v5195_v28 = vmul.f32 %v9993_v31, %v5175_v18 }
0x15fa   :  { %v7486_v37 = vpop.eup %7485  ;;  %6950 = vmatprep.mubr.msk.bf16.mxu0 %vm61_vm0, %v5223_v15  ;;  %v5214_v50 = vadd.f32 %v10000_v40, %v5194_v36  ;;  %v5176_v44 = vmul.f32 %v7484_v54, %v9965_v4 }
0x15fb   :  { %v5177_v30 = vmul.f32 %v7486_v37, %v9968_v14  ;;  %v5215_v32 = vadd.f32 %v10000_v40, %v5195_v28 }
0x15fc   :  { %v5224_v53 = vpack.c.bf16 %v5214_v50, %v5213_v52  ;;  %v5196_v1 = vmul.f32 %v9993_v31, %v5176_v44 }
0x15fd   :  { %v7488_v33 = vpop.eup %7487  ;;  %v5197_v62 = vmul.f32 %v9993_v31, %v5177_v30 }
0x15fe   :  { %v5178_v7 = vmul.f32 %v7488_v33, %v9977_v60  ;;  %6951 = vmatmul.mubr.msk.bf16.gmra.mxu0 %vm61_vm0, %v5224_v53  ;;  %v5216_v19 = vadd.f32 %v10000_v40, %v5196_v1  ;;  %v7066_v60 = vld [vmem:[%s10184_s4 + $0x70] sm:$0xff]  }
0x15ff   :  { %v5217_v14 = vadd.f32 %v10000_v40, %v5197_v62  ;;  %6960 = vmatprep.subr.bf16.mxu1 %v7066_v60 }
0x1600   :  { %v5225_v6 = vpack.c.bf16 %v5216_v19, %v5215_v32  ;;  %v5198_v4 = vmul.f32 %v9993_v31, %v5178_v7  ;;  %6961 = vmatpush3.bf16.msra.mxu1 %v7066_v60  ;;  %v7068_v31 = vld [vmem:[%s10184_s4 + $0x60] sm:$0xff]  }
0x1601   :  { %6962 = vmatprep.subr.bf16.mxu1 %v7067_v55 }
0x1602   :  { %6954 = vmatprep.mubr.msk.bf16.mxu0 %vm61_vm0, %v5225_v6  ;;  %v5218_v41 = vadd.f32 %v10000_v40, %v5198_v4  ;;  %v7069_v40 = vld [vmem:[%s10184_s4 + $0x58] sm:$0xff]  }
0x1604   :  { %v5226_v27 = vpack.c.bf16 %v5218_v41, %v5217_v14  ;;  %6963 = vmatpush3.bf16.msra.mxu1 %v7067_v55 }
0x1605   :  { %6964 = vmatprep.subr.bf16.mxu1 %v7068_v31 }
0x1606   :  { %6955 = vmatmul.mubr.msk.bf16.gmra.mxu0 %vm61_vm0, %v5226_v27 }
0x1608   :  { %6965 = vmatpush3.bf16.msra.mxu1 %v7068_v31 }
0x1609   :  { %6966 = vmatprep.subr.bf16.mxu1 %v7069_v40 }
0x160c   :  { %6967 = vmatpush3.bf16.msra.mxu1 %v7069_v40 }
0x160d   :  { %6968 = vmatprep.subr.bf16.mxu1 %v7070_v47 }
0x1610   :  { %6969 = vmatpush3.bf16.msra.mxu1 %v7070_v47 }
0x1611   :  { %6970 = vmatprep.subr.bf16.mxu1 %v7071_v42 }
0x1614   :  { %6971 = vmatpush3.bf16.msra.mxu1 %v7071_v42 }
0x1615   :  { %6972 = vmatprep.subr.bf16.mxu1 %v7072_v24 }
0x1618   :  { %6973 = vmatpush3.bf16.msra.mxu1 %v7072_v24 }
0x16ae   :  { %v6944_v20 = vpop.f32.mrf.mxu0 }
0x16af   :  { %v5315_v43 = vadd.f32 %v6944_v20, %v10080_v17 }
0x16b0   :  { %v5306_v21 = vpop.f32.mrf.mxu0 }
0x16b1   :  { %v5307_v49 = vadd.f32 %v5306_v21, %v10080_v17  ;;  %v5387_v59 = vmul.f32 0.70710677, %v5315_v43 }
0x16b2   :  { %v6945_v45 = vpop.f32.mrf.mxu0 }
0x16b3   :  { %v5385_v35 = vmul.f32 0.70710677, %v5307_v49  ;;  %v5318_v0 = vadd.f32 %v6945_v45, %v10080_v17  ;;  %v5369_v4 = vmul.f32 0.5, %v5307_v49  ;;  %v5371_v49 = vmul.f32 0.5, %v5315_v43 }
0x16b4   :  { %v5309_v61 = vpop.f32.mrf.mxu0 }
0x16b5   :  { %7489 = verf.f32 %v5385_v35  ;;  %v5388_v48 = vmul.f32 0.70710677, %v5318_v0  ;;  %v5310_v23 = vadd.f32 %v5309_v61, %v10080_v17  ;;  %v5372_v47 = vmul.f32 0.5, %v5318_v0 }
0x16b6   :  { %7491 = verf.f32 %v5387_v59  ;;  %v6948_v12 = vpop.f32.mrf.mxu0 }
0x16b7   :  { %7493 = verf.f32 %v5388_v48  ;;  %v5386_v10 = vmul.f32 0.70710677, %v5310_v23  ;;  %v10087_v25 = vadd.f32 %v6948_v12, %v10080_v17  ;;  %v5370_v11 = vmul.f32 0.5, %v5310_v23 }
0x16b8   :  { %v5322_v39 = vpop.f32.mrf.mxu0 }
0x16b9   :  { %7495 = verf.f32 %v5386_v10  ;;  %v10090_v2 = vadd.f32 %v5322_v39, %v10080_v17  ;;  %v5391_v18 = vmul.f32 0.70710677, %v10087_v25 }
0x16ba   :  { %v6949_v15 = vpop.f32.mrf.mxu0 }
0x16bb   :  { %v5389_v36 = vmul.f32 0.70710677, %v10090_v2  ;;  %v5334_v54 = vadd.f32 %v6949_v15, %v10080_v17 }
0x16bc   :  { %v5325_v37 = vpop.f32.mrf.mxu0 }
0x16bd   :  { %7497 = verf.f32 %v5389_v36  ;;  %v5392_v52 = vmul.f32 0.70710677, %v5334_v54  ;;  %v5326_v50 = vadd.f32 %v5325_v37, %v10080_v17 }
0x16be   :  { %7499 = verf.f32 %v5391_v18  ;;  %v6952_v44 = vpop.f32.mrf.mxu0 }
0x16bf   :  { %7501 = verf.f32 %v5392_v52  ;;  %v5390_v28 = vmul.f32 0.70710677, %v5326_v50  ;;  %v10097_v30 = vadd.f32 %v6952_v44, %v10080_v17 }
0x16c0   :  { %v5338_v53 = vpop.f32.mrf.mxu0 }
0x16c1   :  { %7503 = verf.f32 %v5390_v28  ;;  %v5395_v1 = vmul.f32 0.70710677, %v10097_v30  ;;  %v10101_v7 = vadd.f32 %v5338_v53, %v10080_v17 }
0x16c2   :  { %v7490_v33 = vpop.eup %7489  ;;  %v6953_v32 = vpop.f32.mrf.mxu0 }
0x16c3   :  { %v7492_v19 = vpop.eup %7491  ;;  %v10104_v62 = vadd.f32 %v6953_v32, %v10080_v17  ;;  %v5393_v14 = vmul.f32 0.70710677, %v10101_v7  ;;  %v5417_v27 = vadd.f32 1.0, %v7490_v33  ;;  %7505 = verf.f32 %v5395_v1 }
0x16c4   :  { %v7494_v6 = vpop.eup %7493  ;;  %v5341_v41 = vpop.f32.mrf.mxu0  ;;  %v5419_v40 = vadd.f32 1.0, %v7492_v19  ;;  %v5376_v19 = vmul.f32 0.5, %v5334_v54 }
0x16c5   :  { %v5420_v60 = vadd.f32 1.0, %v7494_v6  ;;  %v5396_v55 = vmul.f32 0.70710677, %v10104_v62  ;;  %7507 = verf.f32 %v5393_v14  ;;  %v5342_v42 = vadd.f32 %v5341_v41, %v10080_v17 }
0x16c6   :  { %v7496_v31 = vpop.eup %7495  ;;  %v6956_v24 = vpop.f32.mrf.mxu0  ;;  %v5433_v61 = vmul.f32 %v5417_v27, %v5369_v4  ;;  %v5435_v10 = vmul.f32 %v5419_v40, %v5371_v49  ;;  %v5373_v4 = vmul.f32 0.5, %v10090_v2  ;;  %v5374_v14 = vmul.f32 0.5, %v5326_v50 }
0x16c7   :  { %v5418_v20 = vadd.f32 1.0, %v7496_v31  ;;  %7509 = verf.f32 %v5396_v55  ;;  %v10110_v21 = vadd.f32 %v6956_v24, %v10080_v17  ;;  %v5436_v59 = vmul.f32 %v5420_v60, %v5372_v47 }
0x16c8   :  { %v5394_v45 = vmul.f32 0.70710677, %v5342_v42  ;;  %v5354_v35 = vpop.f32.mrf.mxu0  ;;  %v5375_v27 = vmul.f32 0.5, %v10087_v25  ;;  %v5377_v25 = vmul.f32 0.5, %v10101_v7 }
0x16c9   :  { %v5434_v48 = vmul.f32 %v5418_v20, %v5370_v11  ;;  %v5399_v0 = vmul.f32 0.70710677, %v10110_v21  ;;  %v5355_v39 = vadd.f32 %v5354_v35, %v10080_v17  ;;  %v5450_v52 = vpack.c.bf16 %v5436_v59, %v5435_v10 }
0x16ca   :  { %v7498_v12 = vpop.eup %7497  ;;  %7511 = verf.f32 %v5394_v45  ;;  %v6957_v18 = vpop.f32.mrf.mxu0  ;;  %v5380_v45 = vmul.f32 0.5, %v10104_v62  ;;  %v5378_v35 = vmul.f32 0.5, %v5342_v42 }
0x16cb   :  { %v7500_v23 = vpop.eup %7499  ;;  %v5366_v15 = vadd.f32 %v6957_v18, %v10080_v17  ;;  %v5449_v36 = vpack.c.bf16 %v5434_v48, %v5433_v61  ;;  %v5397_v43 = vmul.f32 0.70710677, %v5355_v39  ;;  %v5421_v28 = vadd.f32 1.0, %v7498_v12 }
0x16cc   :  { %v7502_v37 = vpop.eup %7501  ;;  %v5357_v44 = vpop.f32.mrf.mxu0  ;;  %7513 = verf.f32 %v5399_v0  ;;  %v5423_v32 = vadd.f32 1.0, %v7500_v23  ;;  %v5379_v48 = vmul.f32 0.5, %v10097_v30  ;;  %v5381_v7 = vmul.f32 0.5, %v5355_v39 }
0x16cd   :  { %v5424_v53 = vadd.f32 1.0, %v7502_v37  ;;  %v5400_v1 = vmul.f32 0.70710677, %v5366_v15  ;;  %6974 = vmatprep.mubr.bf16.mxu1 %v5449_v36  ;;  %7515 = verf.f32 %v5397_v43  ;;  %v5358_v6 = vadd.f32 %v5357_v44, %v10080_v17 }
0x16ce   :  { %v7504_v33 = vpop.eup %7503  ;;  %6975 = vmatmul.mubr.bf16.vlgmr.msra.gmra.mxu1 %v5450_v52  ;;  %v5437_v31 = vmul.f32 %v5421_v28, %v5373_v4  ;;  %v5439_v24 = vmul.f32 %v5423_v32, %v5375_v27  ;;  %v5383_v30 = vmul.f32 0.5, %v10110_v21 }
0x16cf   :  { %v5422_v41 = vadd.f32 1.0, %v7504_v33  ;;  %7517 = verf.f32 %v5400_v1  ;;  %v5440_v60 = vmul.f32 %v5424_v53, %v5376_v19  ;;  %v5398_v55 = vmul.f32 0.70710677, %v5358_v6 }
0x16d0   :  { %v7506_v47 = vpop.eup %7505  ;;  %v5384_v1 = vmul.f32 0.5, %v5366_v15  ;;  %v5382_v42 = vmul.f32 0.5, %v5358_v6  ;;  %v10245_v15 = vsub.s32 5, %v7816_v16 }
0x16d1   :  { %v5438_v40 = vmul.f32 %v5422_v41, %v5374_v14  ;;  %7519 = verf.f32 %v5398_v55  ;;  %v5452_v49 = vpack.c.bf16 %v5440_v60, %v5439_v24  ;;  %v5427_v50 = vadd.f32 1.0, %v7506_v47  ;;  %v7540_v60 = vld [vmem:[%s10185_s5 + $0x8] sm:$0x7f]  ;;  %s7563_s5 = smov [#allocation2]  }
0x16d2   :  { %v7508_v11 = vpop.eup %7507  ;;  %v10127_v55 = vrot.slane %v7540_v60, %v10245_v15  ;;  %s5660_s19 = sshll.u32 %s7563_s5, 4  ;;  %s5661_s19 = int_to_ptr.vmem [resolvable:$true] %s5660_s19 }
0x16d3   :  { %v5451_v54 = vpack.c.bf16 %v5438_v40, %v5437_v31  ;;  %v5425_v59 = vadd.f32 1.0, %v7508_v11  ;;  %v5443_v36 = vmul.f32 %v5427_v50, %v5379_v48  ;;  %s7541_s1 = scalar_lea.vmem %s5661_s19, 2048  ;;  %p7546_p1 = scmp.lt.s32.totalorder %s5661_s19, %s5661_s19 }
0x16d4   :  { %v7510_v20 = vpop.eup %7509  ;;  %p7542_p0 = scmp.ne.s32.totalorder %s5661_s19, %s7541_s1  ;;  %p7547_p2 = scmp.lt.s32.totalorder %s7541_s1, %s7541_s1 }
0x16d5   :  { %v5428_v17 = vadd.f32 1.0, %v7510_v20  ;;  %6978 = vmatprep.mubr.bf16.mxu1 %v5451_v54  ;;  %v5441_v0 = vmul.f32 %v5425_v59, %v5377_v25 }
0x16d6   :  { %6979 = vmatmul.mubr.bf16.gmra.mxu1 %v5452_v49  ;;  %p7548_p3 = por %p7547_p2, %p7546_p1 }
0x16d7   :  { %v7512_v2 = vpop.eup %7511  ;;  %v5444_v12 = vmul.f32 %v5428_v17, %v5380_v45 }
0x16d8   :  { %v5426_v61 = vadd.f32 1.0, %v7512_v2  ;;  %p7549_p4 = pnand %p7548_p3, %p7542_p0 }
0x16d9   :  { %v7514_v10 = vpop.eup %7513  ;;  %v5454_v43 = vpack.c.bf16 %v5444_v12, %v5443_v36 }
0x16da   :  { %v5442_v18 = vmul.f32 %v5426_v61, %v5378_v35  ;;  %v7516_v23 = vpop.eup %7515  ;;  %v5431_v62 = vadd.f32 1.0, %v7514_v10 }
0x16db   :  { %v5429_v28 = vadd.f32 1.0, %v7516_v23 }
0x16dc   :  { %v7518_v37 = vpop.eup %7517  ;;  %v5453_v52 = vpack.c.bf16 %v5442_v18, %v5441_v0  ;;  %v5447_v14 = vmul.f32 %v5431_v62, %v5383_v30 }
0x16dd   :  { %v5432_v44 = vadd.f32 1.0, %v7518_v37  ;;  %v5445_v19 = vmul.f32 %v5429_v28, %v5381_v7 }
0x16de   :  { %6982 = vmatprep.mubr.bf16.mxu1 %v5453_v52  ;;  %v7520_v53 = vpop.eup %7519 }
0x16df   :  { %6983 = vmatmul.mubr.bf16.gmra.mxu1 %v5454_v43  ;;  %v5430_v33 = vadd.f32 1.0, %v7520_v53  ;;  %v5448_v32 = vmul.f32 %v5432_v44, %v5384_v1 }
0x16e1   :  { %v5446_v4 = vmul.f32 %v5430_v33, %v5382_v42  ;;  %v5456_v27 = vpack.c.bf16 %v5448_v32, %v5447_v14 }
0x16e3   :  { %v5455_v41 = vpack.c.bf16 %v5446_v4, %v5445_v19 }
0x16e5   :  { %6986 = vmatprep.mubr.bf16.mxu1 %v5455_v41 }
0x16e7   :  { %6987 = vmatmul.mubr.bf16.gmra.mxu1 %v5456_v27 }
0x178e   :  { %v6976_v39 = vpop.f32.mrf.mxu1 }
0x178f   :  { %v5569_v6 = vadd.f32 %v6976_v39, %v10127_v55 }
0x1790   :  { %v5560_v21 = vpop.f32.mrf.mxu1 }
0x1791   :  { %v5625_v31 = vadd.f32 %v5569_v6, %v9796_v5  ;;  %v5561_v40 = vadd.f32 %v5560_v21, %v10127_v55 }
0x1792   :  { %v6977_v47 = vpop.f32.mrf.mxu1 }
0x1793   :  { %5641 = vst.msk [vmem:[#allocation2 + $0x10] sm:$0xff] %vm61_vm0, %v5625_v31  ;;  %v5623_v24 = vadd.f32 %v5561_v40, %v9792_v22  ;;  %v5572_v11 = vadd.f32 %v6977_v47, %v10127_v55 }
0x1794   :  { %v5563_v54 = vpop.f32.mrf.mxu1 }
0x1795   :  { %5639 = vst.msk [vmem:[#allocation2] sm:$0xff] %vm61_vm0, %v5623_v24  ;;  %v5626_v16 = vadd.f32 %v5572_v11, %v9805_v9  ;;  %v5564_v20 = vadd.f32 %v5563_v54, %v10127_v55 }
0x1796   :  { %v6980_v49 = vpop.f32.mrf.mxu1 }
0x1797   :  { %5642 = vst.msk [vmem:[#allocation2 + $0x18] sm:$0xff] %vm61_vm0, %v5626_v16  ;;  %v5624_v5 = vadd.f32 %v5564_v20, %v9802_v58  ;;  %v5585_v17 = vadd.f32 %v6980_v49, %v10127_v55 }
0x1798   :  { %v5576_v59 = vpop.f32.mrf.mxu1 }
0x1799   :  { %5640 = vst.msk [vmem:[#allocation2 + $0x8] sm:$0xff] %vm61_vm0, %v5624_v5  ;;  %v5629_v22 = vadd.f32 %v5585_v17, %v9817_v13  ;;  %v5577_v2 = vadd.f32 %v5576_v59, %v10127_v55 }
0x179a   :  { %v6981_v50 = vpop.f32.mrf.mxu1 }
0x179b   :  { %5645 = vst.msk [vmem:[#allocation2 + $0x30] sm:$0xff] %vm61_vm0, %v5629_v22  ;;  %v5627_v9 = vadd.f32 %v5577_v2, %v9814_v38  ;;  %v5588_v45 = vadd.f32 %v6981_v50, %v10127_v55 }
0x179c   :  { %v5579_v25 = vpop.f32.mrf.mxu1 }
0x179d   :  { %5643 = vst.msk [vmem:[#allocation2 + $0x20] sm:$0xff] %vm61_vm0, %v5627_v9  ;;  %v5630_v58 = vadd.f32 %v5588_v45, %v9832_v63  ;;  %v5580_v35 = vadd.f32 %v5579_v25, %v10127_v55 }
0x179f   :  { %5646 = vst.msk [vmem:[#allocation2 + $0x38] sm:$0xff] %vm61_vm0, %v5630_v58  ;;  %v5628_v13 = vadd.f32 %v5580_v35, %v9826_v29  ;;  %v6984_v61 = vpop.f32.mrf.mxu1 }
0x17a0   :  { %v5601_v48 = vadd.f32 %v6984_v61, %v10127_v55 }
0x17a1   :  { %5644 = vst.msk [vmem:[#allocation2 + $0x28] sm:$0xff] %vm61_vm0, %v5628_v13  ;;  %v5592_v12 = vpop.f32.mrf.mxu1 }
0x17a2   :  { %v5633_v38 = vadd.f32 %v5601_v48, %v9841_v46  ;;  %v5593_v10 = vadd.f32 %v5592_v12, %v10127_v55 }
0x17a3   :  { %v6985_v0 = vpop.f32.mrf.mxu1 }
0x17a4   :  { %5649 = vst.msk [vmem:[#allocation2 + $0x50] sm:$0xff] %vm61_vm0, %v5633_v38  ;;  %v5631_v63 = vadd.f32 %v5593_v10, %v9838_v26  ;;  %v5604_v18 = vadd.f32 %v6985_v0, %v10127_v55 }
0x17a5   :  { %v5595_v23 = vpop.f32.mrf.mxu1 }
0x17a6   :  { %5647 = vst.msk [vmem:[#allocation2 + $0x40] sm:$0xff] %vm61_vm0, %v5631_v63  ;;  %v5634_v29 = vadd.f32 %v5604_v18, %v9853_v51  ;;  %v5596_v36 = vadd.f32 %v5595_v23, %v10127_v55 }
0x17a7   :  { %v6988_v37 = vpop.f32.mrf.mxu1 }
0x17a8   :  { %5650 = vst.msk [vmem:[#allocation2 + $0x58] sm:$0xff] %vm61_vm0, %v5634_v29  ;;  %v5632_v46 = vadd.f32 %v5596_v36, %v9850_v8  ;;  %v5617_v52 = vadd.f32 %v6988_v37, %v10127_v55 }
0x17a9   :  { %v5608_v43 = vpop.f32.mrf.mxu1 }
0x17aa   :  { %5648 = vst.msk [vmem:[#allocation2 + $0x48] sm:$0xff] %vm61_vm0, %v5632_v46  ;;  %v5637_v26 = vadd.f32 %v5617_v52, %v9867_v56  ;;  %v5609_v44 = vadd.f32 %v5608_v43, %v10127_v55 }
0x17ab   :  { %v6989_v28 = vpop.f32.mrf.mxu1 }
0x17ac   :  { %5653 = vst.msk [vmem:[#allocation2 + $0x70] sm:$0xff] %vm61_vm0, %v5637_v26  ;;  %v5635_v51 = vadd.f32 %v5609_v44, %v9862_v57  ;;  %v5620_v53 = vadd.f32 %v6989_v28, %v10127_v55 }
0x17ad   :  { %v5611_v62 = vpop.f32.mrf.mxu1 }
0x17ae   :  { %5651 = vst.msk [vmem:[#allocation2 + $0x60] sm:$0xff] %vm61_vm0, %v5635_v51  ;;  %v5638_v8 = vadd.f32 %v5620_v53, %v9877_v34  ;;  %v5612_v1 = vadd.f32 %v5611_v62, %v10127_v55 }
0x17b0   :  { %5654 = vst.msk [vmem:[#allocation2 + $0x78] sm:$0xff] %vm61_vm0, %v5638_v8  ;;  %v5636_v56 = vadd.f32 %v5612_v1, %v9874_v3 }
0x17b2   :  { %5652 = vst.msk [vmem:[#allocation2 + $0x68] sm:$0xff] %vm61_vm0, %v5636_v56 }
0x17b3   :  { %7552 = shalt.err (!%p7549_p4)
}
0x17b4   :  { %s7564_s20 = smov 128   ;;  %s7565_s21 = smov 8  }
0x17b5   :  { %5666 = dma.vmem_to_hbm [thread:$0]  %s5661_s19, 2048, %s10187_s7, [#allocation3], %s7564_s20, %s7564_s20, %s7565_s21  }
0x17b6   :  { %7561 = dma.done.wait [#allocation3], 2048  }
0x17b7   :  { %7562 = vsyncadd [#allocation3], 4294965248 }
0x17b8   :  { %5670 = vsyncpa [#allocation3], 1 }

</bundles_post_ra>
